<compile_context>
chip_gen: v5e
topology: v5e:2x2
jax: 0.10.0
libtpu: 0.0.40
codegen_flags: <defaults>
</compile_context>

<pallas_src>
import jax
import jax.numpy as jnp
from jax import lax
from jax.experimental import pallas as pl
from jax.experimental.pallas import tpu as pltpu


# ----------------------------------------------------------------------------
# Pallas kernels
# ----------------------------------------------------------------------------
def bilstm_kernel(x_ref, w_ih_ref, w_hh_ref, b_ref,
                  out_ref, hfin_ref, cfin_ref, xw_ref):
    """One bidirectional LSTM layer, both directions interleaved.

    x_ref    : (T, B, E)      layer input (embedding or previous layer's (T,B,2H))
    w_ih_ref : (2, E, 4H)     fused input weights  [i|f|o|g], dir 0 = fwd, 1 = bwd
    w_hh_ref : (2, H, 4H)     fused recurrent weights
    b_ref    : (2, 1, 4H)     combined bias (b_ih + b_hh)
    out_ref  : (T, B, 2H)     per-step hidden outputs, fwd in [:, :, :H], bwd in [:, :, H:]
    hfin_ref : (2, B, H)      final hidden state per direction
    cfin_ref : (2, B, H)      final cell state per direction
    xw_ref   : (2, T, B, 4H)  VMEM scratch: precomputed input projection per direction
    """
    T, B, E = x_ref.shape
    H = hfin_ref.shape[-1]

    # ---- Hoisted input projection (one lane-dense matmul per direction). ----
    # Bias folded into the expression; results stored straight into the scratch
    # slices (no zeros-init accumulator, no extra full-size temporary).
    x2d = x_ref[...].reshape(T * B, E)
    xw_ref[0] = (jnp.dot(x2d, w_ih_ref[0], preferred_element_type=jnp.float32)
                 + b_ref[0]).reshape(T, B, 4 * H)
    xw_ref[1] = (jnp.dot(x2d, w_ih_ref[1], preferred_element_type=jnp.float32)
                 + b_ref[1]).reshape(T, B, 4 * H)

    w_hh_f = w_hh_ref[0]                   # loop-invariant (H, 4H)
    w_hh_b = w_hh_ref[1]
    xw_f = xw_ref.at[0]                    # (T, B, 4H) views, no load
    xw_b = xw_ref.at[1]

    def lstm_cell(gates, c_prev):
        # Fused gate layout [i | f | o | g]: one sigmoid over 3H, one tanh over H.
        sig = jax.nn.sigmoid(gates[:, :3 * H])
        g_g = jnp.tanh(gates[:, 3 * H:])
        i_g = sig[:, 0 * H:1 * H]
        f_g = sig[:, 1 * H:2 * H]
        o_g = sig[:, 2 * H:3 * H]
        c_new = f_g * c_prev + i_g * g_g
        h_new = o_g * jnp.tanh(c_new)
        return h_new, c_new

    def step(s, carry):
        h_f, c_f, h_b, c_b = carry
        t_f = s                            # forward:  0 .. T-1
        t_b = T - 1 - s                    # backward: T-1 .. 0
        # Two independent h @ W_hh pushes: one direction's MXU work overlaps the
        # other's EUP/VPU gate tail within the same step.
        g_f = xw_f[t_f] + jnp.dot(h_f, w_hh_f, preferred_element_type=jnp.float32)
        g_b = xw_b[t_b] + jnp.dot(h_b, w_hh_b, preferred_element_type=jnp.float32)
        h_f, c_f = lstm_cell(g_f, c_f)
        h_b, c_b = lstm_cell(g_b, c_b)
        out_ref[t_f, :, 0:H] = h_f
        out_ref[t_b, :, H:2 * H] = h_b
        return h_f, c_f, h_b, c_b

    # Right-size the unroll: each unrolled step keeps ~2*(B,4H) f32 gates live; keep
    # it under ~1/4 of the 256 KiB vreg file to avoid spills at large B/H.
    live_bytes_per_step = 2 * B * 4 * H * 4
    unroll = max(1, min(T, 8 if live_bytes_per_step <= (64 << 10) else 2))

    z = jnp.zeros((B, H), jnp.float32)
    h_f, c_f, h_b, c_b = lax.fori_loop(0, T, step, (z, z, z, z), unroll=unroll)

    hfin_ref[0] = h_f
    cfin_ref[0] = c_f
    hfin_ref[1] = h_b
    cfin_ref[1] = c_b


def heads_kernel(hf_ref, cf_ref, wh_ref, bh_ref, wc_ref, bc_ref, ho_ref, co_ref):
    """Both Linear heads in one call.

    hf_ref/cf_ref : (2, B, H)  layer-0 final states (dir 0 = fwd, dir 1 = bwd).
    wh_ref/wc_ref : (2, H, H)  fc weights split over the fwd/bwd feature halves.
    Equivalent to concat([h_fwd, h_bwd], -1) @ W + b without materializing the concat.
    """
    ho_ref[...] = (jnp.dot(hf_ref[0], wh_ref[0], preferred_element_type=jnp.float32)
                   + jnp.dot(hf_ref[1], wh_ref[1], preferred_element_type=jnp.float32)
                   + bh_ref[...])
    co_ref[...] = (jnp.dot(cf_ref[0], wc_ref[0], preferred_element_type=jnp.float32)
                   + jnp.dot(cf_ref[1], wc_ref[1], preferred_element_type=jnp.float32)
                   + bc_ref[...])


# ----------------------------------------------------------------------------
# Wrappers
# ----------------------------------------------------------------------------
def bilstm_layer(x, w_ih, w_hh, b, H):
    """One bidirectional LSTM layer. x: (T, B, E). Returns out (T,B,2H), hfin, cfin (2,B,H)."""
    T, B, E = x.shape
    f32 = 4
    footprint = f32 * (T * B * E                               # input
                       + 2 * (E * 4 * H + H * 4 * H + 4 * H)   # weights + bias
                       + T * B * 2 * H                         # output
                       + 4 * B * H                             # final states
                       + 2 * T * B * 4 * H)                    # xw scratch
    vmem_limit = int(min(max(2 * footprint + (4 << 20), 32 << 20), 128 << 20))

    vmem = pltpu.MemorySpace.VMEM
    out, hfin, cfin = pl.pallas_call(
        bilstm_kernel,
        out_shape=(jax.ShapeDtypeStruct((T, B, 2 * H), jnp.float32),
                   jax.ShapeDtypeStruct((2, B, H), jnp.float32),
                   jax.ShapeDtypeStruct((2, B, H), jnp.float32)),
        in_specs=[pl.BlockSpec(memory_space=vmem)] * 4,
        out_specs=(pl.BlockSpec(memory_space=vmem),
                   pl.BlockSpec(memory_space=vmem),
                   pl.BlockSpec(memory_space=vmem)),
        scratch_shapes=[pltpu.VMEM((2, T, B, 4 * H), jnp.float32)],
        compiler_params=pltpu.CompilerParams(vmem_limit_bytes=vmem_limit),
    )(x, w_ih, w_hh, b)
    return out, hfin, cfin


def encoder_forward(params, x):
    T, B = x.shape
    H = params["fc_hidden_w"].shape[1]

    # nn.Embedding lookup (gather) as JAX glue; dropout p=0.0 is identity.
    emb = params["embedding"][x]                          # (T, B, E)

    # Pad batch once to a sublane multiple (8) for dense vregs; sliced off at the end.
    Bp = max(8, ((B + 7) // 8) * 8)
    if Bp != B:
        emb = jnp.pad(emb, ((0, 0), (0, Bp - B), (0, 0)))

    hfin0 = cfin0 = None
    inp = emb
    out = None
    for li, (w_ih, w_hh, b) in enumerate(params["lstm"]):
        out, hfin, cfin = bilstm_layer(inp, w_ih, w_hh, b, H)
        if li == 0:
            hfin0, cfin0 = hfin, cfin
        inp = out                                         # (T, Bp, 2H) — no concat needed

    # The kernel already wrote (T, B, 2H) = [fwd || bwd]; no concatenate needed.
    encoder_states = out[:, :B]                           # (T, B, 2H)

    # Both heads in one pallas_call; fc weights split over fwd/bwd halves.
    vmem = pltpu.MemorySpace.VMEM
    wh = params["fc_hidden_w"].reshape(2, H, H)
    wc = params["fc_cell_w"].reshape(2, H, H)
    hidden_p, cell_p = pl.pallas_call(
        heads_kernel,
        out_shape=(jax.ShapeDtypeStruct((Bp, H), jnp.float32),
                   jax.ShapeDtypeStruct((Bp, H), jnp.float32)),
        in_specs=[pl.BlockSpec(memory_space=vmem)] * 6,
        out_specs=(pl.BlockSpec(memory_space=vmem),
                   pl.BlockSpec(memory_space=vmem)),
    )(hfin0, cfin0, wh, params["fc_hidden_b"].reshape(1, H),
      wc, params["fc_cell_b"].reshape(1, H))

    hidden = hidden_p[:B][None]                           # (1, B, H)
    cell = cell_p[:B][None]                               # (1, B, H)
    return encoder_states, hidden, cell


# ----------------------------------------------------------------------------
# Pure-JAX reference (same fused [i|f|o|g] weight layout) for verification
# ----------------------------------------------------------------------------
def _lstm_dir_ref(x, w_ih, w_hh, b, reverse):
    T, B, _ = x.shape
    H = w_hh.shape[0]
    xw = (x.reshape(T * B, -1) @ w_ih + b).reshape(T, B, 4 * H)
    seq = xw[::-1] if reverse else xw

    def step(carry, xw_t):
        h, c = carry
        g = xw_t + h @ w_hh
        i_g = jax.nn.sigmoid(g[:, 0 * H:1 * H])
        f_g = jax.nn.sigmoid(g[:, 1 * H:2 * H])
        o_g = jax.nn.sigmoid(g[:, 2 * H:3 * H])
        g_g = jnp.tanh(g[:, 3 * H:4 * H])
        c = f_g * c + i_g * g_g
        h = o_g * jnp.tanh(c)
        return (h, c), h

    (h_f, c_f), ys = lax.scan(step, (jnp.zeros((B, H)), jnp.zeros((B, H))), seq)
    if reverse:
        ys = ys[::-1]
    return ys, h_f, c_f


def encoder_forward_ref(params, x):
    xin = params["embedding"][x]
    h0 = c0 = None
    for li, (w_ih, w_hh, b) in enumerate(params["lstm"]):
        yf, hf, cf = _lstm_dir_ref(xin, w_ih[0], w_hh[0], b[0], False)
        yb, hb, cb = _lstm_dir_ref(xin, w_ih[1], w_hh[1], b[1], True)
        xin = jnp.concatenate([yf, yb], axis=-1)
        if li == 0:
            h0 = jnp.concatenate([hf, hb], axis=-1)
            c0 = jnp.concatenate([cf, cb], axis=-1)
    enc = xin
    hidden = (h0 @ params["fc_hidden_w"] + params["fc_hidden_b"])[None]
    cell = (c0 @ params["fc_cell_w"] + params["fc_cell_b"])[None]
    return enc, hidden, cell


# ----------------------------------------------------------------------------
# Deterministic parameter init (shapes from Encoder.__init__, gates fused [i|f|o|g])
# ----------------------------------------------------------------------------
def init_params(key, vocab_size, embedding_size, hidden_size, num_layers):
    H = hidden_size
    keys = iter(jax.random.split(key, 8 + 4 * num_layers))
    p = {}
    p["embedding"] = jax.random.normal(
        next(keys), (vocab_size, embedding_size), jnp.float32)

    k = 1.0 / (H ** 0.5)
    lstm = []
    in_sz = embedding_size
    for _ in range(num_layers):
        w_ih = jax.random.uniform(next(keys), (2, in_sz, 4 * H), jnp.float32, -k, k)
        w_hh = jax.random.uniform(next(keys), (2, H, 4 * H), jnp.float32, -k, k)
        b_ih = jax.random.uniform(next(keys), (2, 1, 4 * H), jnp.float32, -k, k)
        b_hh = jax.random.uniform(next(keys), (2, 1, 4 * H), jnp.float32, -k, k)
        lstm.append((w_ih, w_hh, b_ih + b_hh))
        in_sz = 2 * H
    p["lstm"] = lstm

    kf = 1.0 / ((2 * H) ** 0.5)
    p["fc_hidden_w"] = jax.random.uniform(next(keys), (2 * H, H), jnp.float32, -kf, kf)
    p["fc_hidden_b"] = jax.random.uniform(next(keys), (H,), jnp.float32, -kf, kf)
    p["fc_cell_w"] = jax.random.uniform(next(keys), (2 * H, H), jnp.float32, -kf, kf)
    p["fc_cell_b"] = jax.random.uniform(next(keys), (H,), jnp.float32, -kf, kf)
    return p


if __name__ == "__main__":
    vocab_size, embedding_size, hidden_size, num_layers = 20, 32, 32, 2
    seq_len, batch = 8, 2

    key = jax.random.PRNGKey(0)
    pkey, xkey = jax.random.split(key)
    params = init_params(pkey, vocab_size, embedding_size, hidden_size, num_layers)
    x = jax.random.randint(xkey, (seq_len, batch), 0, vocab_size, dtype=jnp.int32)

    fwd = jax.jit(encoder_forward)
    enc, hid, cell = fwd(params, x)
    jax.block_until_ready((enc, hid, cell))

    assert enc.shape == (seq_len, batch, 2 * hidden_size)
    assert hid.shape == (1, batch, hidden_size)
    assert cell.shape == (1, batch, hidden_size)

    enc_r, hid_r, cell_r = encoder_forward_ref(params, x)
    for a, b in ((enc, enc_r), (hid, hid_r), (cell, cell_r)):
        assert jnp.allclose(a, b, atol=1e-4, rtol=1e-4), float(jnp.max(jnp.abs(a - b)))

    print("KERNEL_OK")
</pallas_src>

<mosaic_0001>
module attributes {stable_mosaic.version = 11 : i64} {
  func.func @bilstm_kernel(%arg0: memref<8x8x32xf32, #tpu.memory_space<vmem>>, %arg1: memref<2x32x128xf32, #tpu.memory_space<vmem>>, %arg2: memref<2x32x128xf32, #tpu.memory_space<vmem>>, %arg3: memref<2x1x128xf32, #tpu.memory_space<vmem>>, %arg4: memref<8x8x64xf32, #tpu.memory_space<vmem>>, %arg5: memref<2x8x32xf32, #tpu.memory_space<vmem>>, %arg6: memref<2x8x32xf32, #tpu.memory_space<vmem>>, %arg7: memref<2x8x8x128xf32, #tpu.memory_space<vmem>>) attributes {dimension_semantics = [], scalar_prefetch = 0 : i64, scratch_operands = 1 : i64, tpu.core_type = #tpu.core_type<tc>} {
    %c0 = arith.constant 0 : index
    %c0_0 = arith.constant 0 : index
    %c0_1 = arith.constant 0 : index
    %0 = vector.load %arg0[%c0, %c0_0, %c0_1] : memref<8x8x32xf32, #tpu.memory_space<vmem>>, vector<8x8x32xf32>
    %1 = vector.shape_cast %0 : vector<8x8x32xf32> to vector<64x32xf32>
    %c0_2 = arith.constant 0 : index
    %c0_3 = arith.constant 0 : index
    %c0_4 = arith.constant 0 : index
    %2 = vector.load %arg1[%c0_2, %c0_3, %c0_4] : memref<2x32x128xf32, #tpu.memory_space<vmem>>, vector<1x32x128xf32>
    %3 = vector.shape_cast %2 : vector<1x32x128xf32> to vector<32x128xf32>
    %cst = arith.constant dense<0.000000e+00> : vector<64x128xf32>
    %4 = tpu.matmul %1, %3, %cst {dimension_numbers = #tpu.dot_dimension_numbers<[1], [0], [0], [1], [0, 0, 1, 1], [], []>} : vector<64x32xf32>, vector<32x128xf32>, vector<64x128xf32> -> vector<64x128xf32>
    %c0_5 = arith.constant 0 : index
    %c0_6 = arith.constant 0 : index
    %c0_7 = arith.constant 0 : index
    %5 = vector.load %arg3[%c0_5, %c0_6, %c0_7] : memref<2x1x128xf32, #tpu.memory_space<vmem>>, vector<1x1x128xf32>
    %6 = vector.shape_cast %5 : vector<1x1x128xf32> to vector<1x128xf32>
    %7 = vector.broadcast %6 : vector<1x128xf32> to vector<64x128xf32>
    %8 = arith.addf %4, %7 : vector<64x128xf32>
    %9 = vector.shape_cast %8 : vector<64x128xf32> to vector<8x8x128xf32>
    %c0_8 = arith.constant 0 : index
    %c0_9 = arith.constant 0 : index
    %c0_10 = arith.constant 0 : index
    %c0_11 = arith.constant 0 : index
    %10 = vector.load %arg7[%c0_8, %c0_9, %c0_10, %c0_11] : memref<2x8x8x128xf32, #tpu.memory_space<vmem>>, vector<1x8x8x128xf32>
    %11 = vector.shape_cast %10 : vector<1x8x8x128xf32> to vector<8x8x128xf32>
    %12 = vector.shape_cast %9 : vector<8x8x128xf32> to vector<1x8x8x128xf32>
    tpu.vector_store %arg7[%c0_8, %c0_9, %c0_10, %c0_11], %12 {strides = array<i32>} : memref<2x8x8x128xf32, #tpu.memory_space<vmem>>, vector<1x8x8x128xf32>,
    %c1 = arith.constant 1 : index
    %c0_12 = arith.constant 0 : index
    %c0_13 = arith.constant 0 : index
    %13 = vector.load %arg1[%c1, %c0_12, %c0_13] : memref<2x32x128xf32, #tpu.memory_space<vmem>>, vector<1x32x128xf32>
    %14 = vector.shape_cast %13 : vector<1x32x128xf32> to vector<32x128xf32>
    %cst_14 = arith.constant dense<0.000000e+00> : vector<64x128xf32>
    %15 = tpu.matmul %1, %14, %cst_14 {dimension_numbers = #tpu.dot_dimension_numbers<[1], [0], [0], [1], [0, 0, 1, 1], [], []>} : vector<64x32xf32>, vector<32x128xf32>, vector<64x128xf32> -> vector<64x128xf32>
    %c1_15 = arith.constant 1 : index
    %c0_16 = arith.constant 0 : index
    %c0_17 = arith.constant 0 : index
    %16 = vector.load %arg3[%c1_15, %c0_16, %c0_17] : memref<2x1x128xf32, #tpu.memory_space<vmem>>, vector<1x1x128xf32>
    %17 = vector.shape_cast %16 : vector<1x1x128xf32> to vector<1x128xf32>
    %18 = vector.broadcast %17 : vector<1x128xf32> to vector<64x128xf32>
    %19 = arith.addf %15, %18 : vector<64x128xf32>
    %20 = vector.shape_cast %19 : vector<64x128xf32> to vector<8x8x128xf32>
    %c1_18 = arith.constant 1 : index
    %c0_19 = arith.constant 0 : index
    %c0_20 = arith.constant 0 : index
    %c0_21 = arith.constant 0 : index
    %21 = vector.load %arg7[%c1_18, %c0_19, %c0_20, %c0_21] : memref<2x8x8x128xf32, #tpu.memory_space<vmem>>, vector<1x8x8x128xf32>
    %22 = vector.shape_cast %21 : vector<1x8x8x128xf32> to vector<8x8x128xf32>
    %23 = vector.shape_cast %20 : vector<8x8x128xf32> to vector<1x8x8x128xf32>
    tpu.vector_store %arg7[%c1_18, %c0_19, %c0_20, %c0_21], %23 {strides = array<i32>} : memref<2x8x8x128xf32, #tpu.memory_space<vmem>>, vector<1x8x8x128xf32>,
    %c0_22 = arith.constant 0 : index
    %c0_23 = arith.constant 0 : index
    %c0_24 = arith.constant 0 : index
    %24 = vector.load %arg2[%c0_22, %c0_23, %c0_24] : memref<2x32x128xf32, #tpu.memory_space<vmem>>, vector<1x32x128xf32>
    %25 = vector.shape_cast %24 : vector<1x32x128xf32> to vector<32x128xf32>
    %c1_25 = arith.constant 1 : index
    %c0_26 = arith.constant 0 : index
    %c0_27 = arith.constant 0 : index
    %26 = vector.load %arg2[%c1_25, %c0_26, %c0_27] : memref<2x32x128xf32, #tpu.memory_space<vmem>>, vector<1x32x128xf32>
    %27 = vector.shape_cast %26 : vector<1x32x128xf32> to vector<32x128xf32>
    %cst_28 = arith.constant 0.000000e+00 : f32
    %28 = vector.broadcast %cst_28 : f32 to vector<8x32xf32>
    %c0_i32 = arith.constant 0 : i32
    %c1_i32 = arith.constant 1 : i32
    %c0_i32_29 = arith.constant 0 : i32
    %c7_i32 = arith.constant 7 : i32
    %29 = arith.subi %c7_i32, %c0_i32_29 : i32
    %c0_i32_30 = arith.constant 0 : i32
    %c0_i32_31 = arith.constant 0 : i32
    %c0_i32_32 = arith.constant 0 : i32
    %30 = tpu.memref_slice %arg7[%c0_i32, %c0_i32_30, %c0_i32_31, %c0_i32_32] : memref<2x8x8x128xf32, #tpu.memory_space<vmem>> -> memref<1x8x8x128xf32, #tpu.memory_space<vmem>>
    %31 = tpu.memref_squeeze %30 : memref<1x8x8x128xf32, #tpu.memory_space<vmem>> -> memref<8x8x128xf32, #tpu.memory_space<vmem>>
    %32 = arith.index_cast %c0_i32_29 : i32 to index
    %c0_33 = arith.constant 0 : index
    %c0_34 = arith.constant 0 : index
    %33 = vector.load %31[%32, %c0_33, %c0_34] : memref<8x8x128xf32, #tpu.memory_space<vmem>>, vector<1x8x128xf32>
    %34 = vector.shape_cast %33 : vector<1x8x128xf32> to vector<8x128xf32>
    %cst_35 = arith.constant dense<0.000000e+00> : vector<8x128xf32>
    %35 = tpu.matmul %28, %25, %cst_35 {dimension_numbers = #tpu.dot_dimension_numbers<[1], [0], [0], [1], [0, 0, 1, 1], [], []>} : vector<8x32xf32>, vector<32x128xf32>, vector<8x128xf32> -> vector<8x128xf32>
    %36 = arith.addf %34, %35 : vector<8x128xf32>
    %c0_i32_36 = arith.constant 0 : i32
    %c0_i32_37 = arith.constant 0 : i32
    %c0_i32_38 = arith.constant 0 : i32
    %37 = tpu.memref_slice %arg7[%c1_i32, %c0_i32_36, %c0_i32_37, %c0_i32_38] : memref<2x8x8x128xf32, #tpu.memory_space<vmem>> -> memref<1x8x8x128xf32, #tpu.memory_space<vmem>>
    %38 = tpu.memref_squeeze %37 : memref<1x8x8x128xf32, #tpu.memory_space<vmem>> -> memref<8x8x128xf32, #tpu.memory_space<vmem>>
    %39 = arith.index_cast %29 : i32 to index
    %c0_39 = arith.constant 0 : index
    %c0_40 = arith.constant 0 : index
    %40 = vector.load %38[%39, %c0_39, %c0_40] : memref<8x8x128xf32, #tpu.memory_space<vmem>>, vector<1x8x128xf32>
    %41 = vector.shape_cast %40 : vector<1x8x128xf32> to vector<8x128xf32>
    %cst_41 = arith.constant dense<0.000000e+00> : vector<8x128xf32>
    %42 = tpu.matmul %28, %27, %cst_41 {dimension_numbers = #tpu.dot_dimension_numbers<[1], [0], [0], [1], [0, 0, 1, 1], [], []>} : vector<8x32xf32>, vector<32x128xf32>, vector<8x128xf32> -> vector<8x128xf32>
    %43 = arith.addf %41, %42 : vector<8x128xf32>
    %44 = vector.extract_strided_slice %36 {offsets = [0, 0], sizes = [8, 96], strides = [1, 1]} : vector<8x128xf32> to vector<8x96xf32>
    %45 = arith.negf %44 : vector<8x96xf32>
    %46 = math.exp %45 : vector<8x96xf32>
    %cst_42 = arith.constant 1.000000e+00 : f32
    %47 = vector.broadcast %cst_42 : f32 to vector<8x96xf32>
    %48 = arith.addf %47, %46 : vector<8x96xf32>
    %49 = arith.divf %47, %48 : vector<8x96xf32>
    %50 = vector.extract_strided_slice %36 {offsets = [0, 96], sizes = [8, 32], strides = [1, 1]} : vector<8x128xf32> to vector<8x32xf32>
    %51 = math.tanh %50 : vector<8x32xf32>
    %52 = vector.extract_strided_slice %49 {offsets = [0, 0], sizes = [8, 32], strides = [1, 1]} : vector<8x96xf32> to vector<8x32xf32>
    %53 = vector.extract_strided_slice %49 {offsets = [0, 32], sizes = [8, 32], strides = [1, 1]} : vector<8x96xf32> to vector<8x32xf32>
    %54 = vector.extract_strided_slice %49 {offsets = [0, 64], sizes = [8, 32], strides = [1, 1]} : vector<8x96xf32> to vector<8x32xf32>
    %55 = arith.mulf %53, %28 : vector<8x32xf32>
    %56 = arith.mulf %52, %51 : vector<8x32xf32>
    %57 = arith.addf %55, %56 : vector<8x32xf32>
    %58 = math.tanh %57 : vector<8x32xf32>
    %59 = arith.mulf %54, %58 : vector<8x32xf32>
    %60 = vector.extract_strided_slice %43 {offsets = [0, 0], sizes = [8, 96], strides = [1, 1]} : vector<8x128xf32> to vector<8x96xf32>
    %61 = arith.negf %60 : vector<8x96xf32>
    %62 = math.exp %61 : vector<8x96xf32>
    %cst_43 = arith.constant 1.000000e+00 : f32
    %63 = vector.broadcast %cst_43 : f32 to vector<8x96xf32>
    %64 = arith.addf %63, %62 : vector<8x96xf32>
    %65 = arith.divf %63, %64 : vector<8x96xf32>
    %66 = vector.extract_strided_slice %43 {offsets = [0, 96], sizes = [8, 32], strides = [1, 1]} : vector<8x128xf32> to vector<8x32xf32>
    %67 = math.tanh %66 : vector<8x32xf32>
    %68 = vector.extract_strided_slice %65 {offsets = [0, 0], sizes = [8, 32], strides = [1, 1]} : vector<8x96xf32> to vector<8x32xf32>
    %69 = vector.extract_strided_slice %65 {offsets = [0, 32], sizes = [8, 32], strides = [1, 1]} : vector<8x96xf32> to vector<8x32xf32>
    %70 = vector.extract_strided_slice %65 {offsets = [0, 64], sizes = [8, 32], strides = [1, 1]} : vector<8x96xf32> to vector<8x32xf32>
    %71 = arith.mulf %69, %28 : vector<8x32xf32>
    %72 = arith.mulf %68, %67 : vector<8x32xf32>
    %73 = arith.addf %71, %72 : vector<8x32xf32>
    %74 = math.tanh %73 : vector<8x32xf32>
    %75 = arith.mulf %70, %74 : vector<8x32xf32>
    %76 = arith.index_cast %c0_i32_29 : i32 to index
    %c0_44 = arith.constant 0 : index
    %c0_45 = arith.constant 0 : index
    %77 = vector.load %arg4[%76, %c0_44, %c0_45] : memref<8x8x64xf32, #tpu.memory_space<vmem>>, vector<1x8x32xf32>
    %78 = vector.shape_cast %77 : vector<1x8x32xf32> to vector<8x32xf32>
    %79 = vector.shape_cast %59 : vector<8x32xf32> to vector<1x8x32xf32>
    tpu.vector_store %arg4[%76, %c0_44, %c0_45], %79 {strides = array<i32>} : memref<8x8x64xf32, #tpu.memory_space<vmem>>, vector<1x8x32xf32>,
    %80 = arith.index_cast %29 : i32 to index
    %c0_46 = arith.constant 0 : index
    %c32 = arith.constant 32 : index
    %81 = vector.load %arg4[%80, %c0_46, %c32] : memref<8x8x64xf32, #tpu.memory_space<vmem>>, vector<1x8x32xf32>
    %82 = vector.shape_cast %81 : vector<1x8x32xf32> to vector<8x32xf32>
    %83 = vector.shape_cast %75 : vector<8x32xf32> to vector<1x8x32xf32>
    tpu.vector_store %arg4[%80, %c0_46, %c32], %83 {strides = array<i32>} : memref<8x8x64xf32, #tpu.memory_space<vmem>>, vector<1x8x32xf32>,
    %c1_i32_47 = arith.constant 1 : i32
    %c7_i32_48 = arith.constant 7 : i32
    %84 = arith.subi %c7_i32_48, %c1_i32_47 : i32
    %c0_i32_49 = arith.constant 0 : i32
    %c0_i32_50 = arith.constant 0 : i32
    %c0_i32_51 = arith.constant 0 : i32
    %85 = tpu.memref_slice %arg7[%c0_i32, %c0_i32_49, %c0_i32_50, %c0_i32_51] : memref<2x8x8x128xf32, #tpu.memory_space<vmem>> -> memref<1x8x8x128xf32, #tpu.memory_space<vmem>>
    %86 = tpu.memref_squeeze %85 : memref<1x8x8x128xf32, #tpu.memory_space<vmem>> -> memref<8x8x128xf32, #tpu.memory_space<vmem>>
    %87 = arith.index_cast %c1_i32_47 : i32 to index
    %c0_52 = arith.constant 0 : index
    %c0_53 = arith.constant 0 : index
    %88 = vector.load %86[%87, %c0_52, %c0_53] : memref<8x8x128xf32, #tpu.memory_space<vmem>>, vector<1x8x128xf32>
    %89 = vector.shape_cast %88 : vector<1x8x128xf32> to vector<8x128xf32>
    %cst_54 = arith.constant dense<0.000000e+00> : vector<8x128xf32>
    %90 = tpu.matmul %59, %25, %cst_54 {dimension_numbers = #tpu.dot_dimension_numbers<[1], [0], [0], [1], [0, 0, 1, 1], [], []>} : vector<8x32xf32>, vector<32x128xf32>, vector<8x128xf32> -> vector<8x128xf32>
    %91 = arith.addf %89, %90 : vector<8x128xf32>
    %c0_i32_55 = arith.constant 0 : i32
    %c0_i32_56 = arith.constant 0 : i32
    %c0_i32_57 = arith.constant 0 : i32
    %92 = tpu.memref_slice %arg7[%c1_i32, %c0_i32_55, %c0_i32_56, %c0_i32_57] : memref<2x8x8x128xf32, #tpu.memory_space<vmem>> -> memref<1x8x8x128xf32, #tpu.memory_space<vmem>>
    %93 = tpu.memref_squeeze %92 : memref<1x8x8x128xf32, #tpu.memory_space<vmem>> -> memref<8x8x128xf32, #tpu.memory_space<vmem>>
    %94 = arith.index_cast %84 : i32 to index
    %c0_58 = arith.constant 0 : index
    %c0_59 = arith.constant 0 : index
    %95 = vector.load %93[%94, %c0_58, %c0_59] : memref<8x8x128xf32, #tpu.memory_space<vmem>>, vector<1x8x128xf32>
    %96 = vector.shape_cast %95 : vector<1x8x128xf32> to vector<8x128xf32>
    %cst_60 = arith.constant dense<0.000000e+00> : vector<8x128xf32>
    %97 = tpu.matmul %75, %27, %cst_60 {dimension_numbers = #tpu.dot_dimension_numbers<[1], [0], [0], [1], [0, 0, 1, 1], [], []>} : vector<8x32xf32>, vector<32x128xf32>, vector<8x128xf32> -> vector<8x128xf32>
    %98 = arith.addf %96, %97 : vector<8x128xf32>
    %99 = vector.extract_strided_slice %91 {offsets = [0, 0], sizes = [8, 96], strides = [1, 1]} : vector<8x128xf32> to vector<8x96xf32>
    %100 = arith.negf %99 : vector<8x96xf32>
    %101 = math.exp %100 : vector<8x96xf32>
    %cst_61 = arith.constant 1.000000e+00 : f32
    %102 = vector.broadcast %cst_61 : f32 to vector<8x96xf32>
    %103 = arith.addf %102, %101 : vector<8x96xf32>
    %104 = arith.divf %102, %103 : vector<8x96xf32>
    %105 = vector.extract_strided_slice %91 {offsets = [0, 96], sizes = [8, 32], strides = [1, 1]} : vector<8x128xf32> to vector<8x32xf32>
    %106 = math.tanh %105 : vector<8x32xf32>
    %107 = vector.extract_strided_slice %104 {offsets = [0, 0], sizes = [8, 32], strides = [1, 1]} : vector<8x96xf32> to vector<8x32xf32>
    %108 = vector.extract_strided_slice %104 {offsets = [0, 32], sizes = [8, 32], strides = [1, 1]} : vector<8x96xf32> to vector<8x32xf32>
    %109 = vector.extract_strided_slice %104 {offsets = [0, 64], sizes = [8, 32], strides = [1, 1]} : vector<8x96xf32> to vector<8x32xf32>
    %110 = arith.mulf %108, %57 : vector<8x32xf32>
    %111 = arith.mulf %107, %106 : vector<8x32xf32>
    %112 = arith.addf %110, %111 : vector<8x32xf32>
    %113 = math.tanh %112 : vector<8x32xf32>
    %114 = arith.mulf %109, %113 : vector<8x32xf32>
    %115 = vector.extract_strided_slice %98 {offsets = [0, 0], sizes = [8, 96], strides = [1, 1]} : vector<8x128xf32> to vector<8x96xf32>
    %116 = arith.negf %115 : vector<8x96xf32>
    %117 = math.exp %116 : vector<8x96xf32>
    %cst_62 = arith.constant 1.000000e+00 : f32
    %118 = vector.broadcast %cst_62 : f32 to vector<8x96xf32>
    %119 = arith.addf %118, %117 : vector<8x96xf32>
    %120 = arith.divf %118, %119 : vector<8x96xf32>
    %121 = vector.extract_strided_slice %98 {offsets = [0, 96], sizes = [8, 32], strides = [1, 1]} : vector<8x128xf32> to vector<8x32xf32>
    %122 = math.tanh %121 : vector<8x32xf32>
    %123 = vector.extract_strided_slice %120 {offsets = [0, 0], sizes = [8, 32], strides = [1, 1]} : vector<8x96xf32> to vector<8x32xf32>
    %124 = vector.extract_strided_slice %120 {offsets = [0, 32], sizes = [8, 32], strides = [1, 1]} : vector<8x96xf32> to vector<8x32xf32>
    %125 = vector.extract_strided_slice %120 {offsets = [0, 64], sizes = [8, 32], strides = [1, 1]} : vector<8x96xf32> to vector<8x32xf32>
    %126 = arith.mulf %124, %73 : vector<8x32xf32>
    %127 = arith.mulf %123, %122 : vector<8x32xf32>
    %128 = arith.addf %126, %127 : vector<8x32xf32>
    %129 = math.tanh %128 : vector<8x32xf32>
    %130 = arith.mulf %125, %129 : vector<8x32xf32>
    %131 = arith.index_cast %c1_i32_47 : i32 to index
    %c0_63 = arith.constant 0 : index
    %c0_64 = arith.constant 0 : index
    %132 = vector.load %arg4[%131, %c0_63, %c0_64] : memref<8x8x64xf32, #tpu.memory_space<vmem>>, vector<1x8x32xf32>
    %133 = vector.shape_cast %132 : vector<1x8x32xf32> to vector<8x32xf32>
    %134 = vector.shape_cast %114 : vector<8x32xf32> to vector<1x8x32xf32>
    tpu.vector_store %arg4[%131, %c0_63, %c0_64], %134 {strides = array<i32>} : memref<8x8x64xf32, #tpu.memory_space<vmem>>, vector<1x8x32xf32>,
    %135 = arith.index_cast %84 : i32 to index
    %c0_65 = arith.constant 0 : index
    %c32_66 = arith.constant 32 : index
    %136 = vector.load %arg4[%135, %c0_65, %c32_66] : memref<8x8x64xf32, #tpu.memory_space<vmem>>, vector<1x8x32xf32>
    %137 = vector.shape_cast %136 : vector<1x8x32xf32> to vector<8x32xf32>
    %138 = vector.shape_cast %130 : vector<8x32xf32> to vector<1x8x32xf32>
    tpu.vector_store %arg4[%135, %c0_65, %c32_66], %138 {strides = array<i32>} : memref<8x8x64xf32, #tpu.memory_space<vmem>>, vector<1x8x32xf32>,
    %c2_i32 = arith.constant 2 : i32
    %c7_i32_67 = arith.constant 7 : i32
    %139 = arith.subi %c7_i32_67, %c2_i32 : i32
    %c0_i32_68 = arith.constant 0 : i32
    %c0_i32_69 = arith.constant 0 : i32
    %c0_i32_70 = arith.constant 0 : i32
    %140 = tpu.memref_slice %arg7[%c0_i32, %c0_i32_68, %c0_i32_69, %c0_i32_70] : memref<2x8x8x128xf32, #tpu.memory_space<vmem>> -> memref<1x8x8x128xf32, #tpu.memory_space<vmem>>
    %141 = tpu.memref_squeeze %140 : memref<1x8x8x128xf32, #tpu.memory_space<vmem>> -> memref<8x8x128xf32, #tpu.memory_space<vmem>>
    %142 = arith.index_cast %c2_i32 : i32 to index
    %c0_71 = arith.constant 0 : index
    %c0_72 = arith.constant 0 : index
    %143 = vector.load %141[%142, %c0_71, %c0_72] : memref<8x8x128xf32, #tpu.memory_space<vmem>>, vector<1x8x128xf32>
    %144 = vector.shape_cast %143 : vector<1x8x128xf32> to vector<8x128xf32>
    %cst_73 = arith.constant dense<0.000000e+00> : vector<8x128xf32>
    %145 = tpu.matmul %114, %25, %cst_73 {dimension_numbers = #tpu.dot_dimension_numbers<[1], [0], [0], [1], [0, 0, 1, 1], [], []>} : vector<8x32xf32>, vector<32x128xf32>, vector<8x128xf32> -> vector<8x128xf32>
    %146 = arith.addf %144, %145 : vector<8x128xf32>
    %c0_i32_74 = arith.constant 0 : i32
    %c0_i32_75 = arith.constant 0 : i32
    %c0_i32_76 = arith.constant 0 : i32
    %147 = tpu.memref_slice %arg7[%c1_i32, %c0_i32_74, %c0_i32_75, %c0_i32_76] : memref<2x8x8x128xf32, #tpu.memory_space<vmem>> -> memref<1x8x8x128xf32, #tpu.memory_space<vmem>>
    %148 = tpu.memref_squeeze %147 : memref<1x8x8x128xf32, #tpu.memory_space<vmem>> -> memref<8x8x128xf32, #tpu.memory_space<vmem>>
    %149 = arith.index_cast %139 : i32 to index
    %c0_77 = arith.constant 0 : index
    %c0_78 = arith.constant 0 : index
    %150 = vector.load %148[%149, %c0_77, %c0_78] : memref<8x8x128xf32, #tpu.memory_space<vmem>>, vector<1x8x128xf32>
    %151 = vector.shape_cast %150 : vector<1x8x128xf32> to vector<8x128xf32>
    %cst_79 = arith.constant dense<0.000000e+00> : vector<8x128xf32>
    %152 = tpu.matmul %130, %27, %cst_79 {dimension_numbers = #tpu.dot_dimension_numbers<[1], [0], [0], [1], [0, 0, 1, 1], [], []>} : vector<8x32xf32>, vector<32x128xf32>, vector<8x128xf32> -> vector<8x128xf32>
    %153 = arith.addf %151, %152 : vector<8x128xf32>
    %154 = vector.extract_strided_slice %146 {offsets = [0, 0], sizes = [8, 96], strides = [1, 1]} : vector<8x128xf32> to vector<8x96xf32>
    %155 = arith.negf %154 : vector<8x96xf32>
    %156 = math.exp %155 : vector<8x96xf32>
    %cst_80 = arith.constant 1.000000e+00 : f32
    %157 = vector.broadcast %cst_80 : f32 to vector<8x96xf32>
    %158 = arith.addf %157, %156 : vector<8x96xf32>
    %159 = arith.divf %157, %158 : vector<8x96xf32>
    %160 = vector.extract_strided_slice %146 {offsets = [0, 96], sizes = [8, 32], strides = [1, 1]} : vector<8x128xf32> to vector<8x32xf32>
    %161 = math.tanh %160 : vector<8x32xf32>
    %162 = vector.extract_strided_slice %159 {offsets = [0, 0], sizes = [8, 32], strides = [1, 1]} : vector<8x96xf32> to vector<8x32xf32>
    %163 = vector.extract_strided_slice %159 {offsets = [0, 32], sizes = [8, 32], strides = [1, 1]} : vector<8x96xf32> to vector<8x32xf32>
    %164 = vector.extract_strided_slice %159 {offsets = [0, 64], sizes = [8, 32], strides = [1, 1]} : vector<8x96xf32> to vector<8x32xf32>
    %165 = arith.mulf %163, %112 : vector<8x32xf32>
    %166 = arith.mulf %162, %161 : vector<8x32xf32>
    %167 = arith.addf %165, %166 : vector<8x32xf32>
    %168 = math.tanh %167 : vector<8x32xf32>
    %169 = arith.mulf %164, %168 : vector<8x32xf32>
    %170 = vector.extract_strided_slice %153 {offsets = [0, 0], sizes = [8, 96], strides = [1, 1]} : vector<8x128xf32> to vector<8x96xf32>
    %171 = arith.negf %170 : vector<8x96xf32>
    %172 = math.exp %171 : vector<8x96xf32>
    %cst_81 = arith.constant 1.000000e+00 : f32
    %173 = vector.broadcast %cst_81 : f32 to vector<8x96xf32>
    %174 = arith.addf %173, %172 : vector<8x96xf32>
    %175 = arith.divf %173, %174 : vector<8x96xf32>
    %176 = vector.extract_strided_slice %153 {offsets = [0, 96], sizes = [8, 32], strides = [1, 1]} : vector<8x128xf32> to vector<8x32xf32>
    %177 = math.tanh %176 : vector<8x32xf32>
    %178 = vector.extract_strided_slice %175 {offsets = [0, 0], sizes = [8, 32], strides = [1, 1]} : vector<8x96xf32> to vector<8x32xf32>
    %179 = vector.extract_strided_slice %175 {offsets = [0, 32], sizes = [8, 32], strides = [1, 1]} : vector<8x96xf32> to vector<8x32xf32>
    %180 = vector.extract_strided_slice %175 {offsets = [0, 64], sizes = [8, 32], strides = [1, 1]} : vector<8x96xf32> to vector<8x32xf32>
    %181 = arith.mulf %179, %128 : vector<8x32xf32>
    %182 = arith.mulf %178, %177 : vector<8x32xf32>
    %183 = arith.addf %181, %182 : vector<8x32xf32>
    %184 = math.tanh %183 : vector<8x32xf32>
    %185 = arith.mulf %180, %184 : vector<8x32xf32>
    %186 = arith.index_cast %c2_i32 : i32 to index
    %c0_82 = arith.constant 0 : index
    %c0_83 = arith.constant 0 : index
    %187 = vector.load %arg4[%186, %c0_82, %c0_83] : memref<8x8x64xf32, #tpu.memory_space<vmem>>, vector<1x8x32xf32>
    %188 = vector.shape_cast %187 : vector<1x8x32xf32> to vector<8x32xf32>
    %189 = vector.shape_cast %169 : vector<8x32xf32> to vector<1x8x32xf32>
    tpu.vector_store %arg4[%186, %c0_82, %c0_83], %189 {strides = array<i32>} : memref<8x8x64xf32, #tpu.memory_space<vmem>>, vector<1x8x32xf32>,
    %190 = arith.index_cast %139 : i32 to index
    %c0_84 = arith.constant 0 : index
    %c32_85 = arith.constant 32 : index
    %191 = vector.load %arg4[%190, %c0_84, %c32_85] : memref<8x8x64xf32, #tpu.memory_space<vmem>>, vector<1x8x32xf32>
    %192 = vector.shape_cast %191 : vector<1x8x32xf32> to vector<8x32xf32>
    %193 = vector.shape_cast %185 : vector<8x32xf32> to vector<1x8x32xf32>
    tpu.vector_store %arg4[%190, %c0_84, %c32_85], %193 {strides = array<i32>} : memref<8x8x64xf32, #tpu.memory_space<vmem>>, vector<1x8x32xf32>,
    %c3_i32 = arith.constant 3 : i32
    %c7_i32_86 = arith.constant 7 : i32
    %194 = arith.subi %c7_i32_86, %c3_i32 : i32
    %c0_i32_87 = arith.constant 0 : i32
    %c0_i32_88 = arith.constant 0 : i32
    %c0_i32_89 = arith.constant 0 : i32
    %195 = tpu.memref_slice %arg7[%c0_i32, %c0_i32_87, %c0_i32_88, %c0_i32_89] : memref<2x8x8x128xf32, #tpu.memory_space<vmem>> -> memref<1x8x8x128xf32, #tpu.memory_space<vmem>>
    %196 = tpu.memref_squeeze %195 : memref<1x8x8x128xf32, #tpu.memory_space<vmem>> -> memref<8x8x128xf32, #tpu.memory_space<vmem>>
    %197 = arith.index_cast %c3_i32 : i32 to index
    %c0_90 = arith.constant 0 : index
    %c0_91 = arith.constant 0 : index
    %198 = vector.load %196[%197, %c0_90, %c0_91] : memref<8x8x128xf32, #tpu.memory_space<vmem>>, vector<1x8x128xf32>
    %199 = vector.shape_cast %198 : vector<1x8x128xf32> to vector<8x128xf32>
    %cst_92 = arith.constant dense<0.000000e+00> : vector<8x128xf32>
    %200 = tpu.matmul %169, %25, %cst_92 {dimension_numbers = #tpu.dot_dimension_numbers<[1], [0], [0], [1], [0, 0, 1, 1], [], []>} : vector<8x32xf32>, vector<32x128xf32>, vector<8x128xf32> -> vector<8x128xf32>
    %201 = arith.addf %199, %200 : vector<8x128xf32>
    %c0_i32_93 = arith.constant 0 : i32
    %c0_i32_94 = arith.constant 0 : i32
    %c0_i32_95 = arith.constant 0 : i32
    %202 = tpu.memref_slice %arg7[%c1_i32, %c0_i32_93, %c0_i32_94, %c0_i32_95] : memref<2x8x8x128xf32, #tpu.memory_space<vmem>> -> memref<1x8x8x128xf32, #tpu.memory_space<vmem>>
    %203 = tpu.memref_squeeze %202 : memref<1x8x8x128xf32, #tpu.memory_space<vmem>> -> memref<8x8x128xf32, #tpu.memory_space<vmem>>
    %204 = arith.index_cast %194 : i32 to index
    %c0_96 = arith.constant 0 : index
    %c0_97 = arith.constant 0 : index
    %205 = vector.load %203[%204, %c0_96, %c0_97] : memref<8x8x128xf32, #tpu.memory_space<vmem>>, vector<1x8x128xf32>
    %206 = vector.shape_cast %205 : vector<1x8x128xf32> to vector<8x128xf32>
    %cst_98 = arith.constant dense<0.000000e+00> : vector<8x128xf32>
    %207 = tpu.matmul %185, %27, %cst_98 {dimension_numbers = #tpu.dot_dimension_numbers<[1], [0], [0], [1], [0, 0, 1, 1], [], []>} : vector<8x32xf32>, vector<32x128xf32>, vector<8x128xf32> -> vector<8x128xf32>
    %208 = arith.addf %206, %207 : vector<8x128xf32>
    %209 = vector.extract_strided_slice %201 {offsets = [0, 0], sizes = [8, 96], strides = [1, 1]} : vector<8x128xf32> to vector<8x96xf32>
    %210 = arith.negf %209 : vector<8x96xf32>
    %211 = math.exp %210 : vector<8x96xf32>
    %cst_99 = arith.constant 1.000000e+00 : f32
    %212 = vector.broadcast %cst_99 : f32 to vector<8x96xf32>
    %213 = arith.addf %212, %211 : vector<8x96xf32>
    %214 = arith.divf %212, %213 : vector<8x96xf32>
    %215 = vector.extract_strided_slice %201 {offsets = [0, 96], sizes = [8, 32], strides = [1, 1]} : vector<8x128xf32> to vector<8x32xf32>
    %216 = math.tanh %215 : vector<8x32xf32>
    %217 = vector.extract_strided_slice %214 {offsets = [0, 0], sizes = [8, 32], strides = [1, 1]} : vector<8x96xf32> to vector<8x32xf32>
    %218 = vector.extract_strided_slice %214 {offsets = [0, 32], sizes = [8, 32], strides = [1, 1]} : vector<8x96xf32> to vector<8x32xf32>
    %219 = vector.extract_strided_slice %214 {offsets = [0, 64], sizes = [8, 32], strides = [1, 1]} : vector<8x96xf32> to vector<8x32xf32>
    %220 = arith.mulf %218, %167 : vector<8x32xf32>
    %221 = arith.mulf %217, %216 : vector<8x32xf32>
    %222 = arith.addf %220, %221 : vector<8x32xf32>
    %223 = math.tanh %222 : vector<8x32xf32>
    %224 = arith.mulf %219, %223 : vector<8x32xf32>
    %225 = vector.extract_strided_slice %208 {offsets = [0, 0], sizes = [8, 96], strides = [1, 1]} : vector<8x128xf32> to vector<8x96xf32>
    %226 = arith.negf %225 : vector<8x96xf32>
    %227 = math.exp %226 : vector<8x96xf32>
    %cst_100 = arith.constant 1.000000e+00 : f32
    %228 = vector.broadcast %cst_100 : f32 to vector<8x96xf32>
    %229 = arith.addf %228, %227 : vector<8x96xf32>
    %230 = arith.divf %228, %229 : vector<8x96xf32>
    %231 = vector.extract_strided_slice %208 {offsets = [0, 96], sizes = [8, 32], strides = [1, 1]} : vector<8x128xf32> to vector<8x32xf32>
    %232 = math.tanh %231 : vector<8x32xf32>
    %233 = vector.extract_strided_slice %230 {offsets = [0, 0], sizes = [8, 32], strides = [1, 1]} : vector<8x96xf32> to vector<8x32xf32>
    %234 = vector.extract_strided_slice %230 {offsets = [0, 32], sizes = [8, 32], strides = [1, 1]} : vector<8x96xf32> to vector<8x32xf32>
    %235 = vector.extract_strided_slice %230 {offsets = [0, 64], sizes = [8, 32], strides = [1, 1]} : vector<8x96xf32> to vector<8x32xf32>
    %236 = arith.mulf %234, %183 : vector<8x32xf32>
    %237 = arith.mulf %233, %232 : vector<8x32xf32>
    %238 = arith.addf %236, %237 : vector<8x32xf32>
    %239 = math.tanh %238 : vector<8x32xf32>
    %240 = arith.mulf %235, %239 : vector<8x32xf32>
    %241 = arith.index_cast %c3_i32 : i32 to index
    %c0_101 = arith.constant 0 : index
    %c0_102 = arith.constant 0 : index
    %242 = vector.load %arg4[%241, %c0_101, %c0_102] : memref<8x8x64xf32, #tpu.memory_space<vmem>>, vector<1x8x32xf32>
    %243 = vector.shape_cast %242 : vector<1x8x32xf32> to vector<8x32xf32>
    %244 = vector.shape_cast %224 : vector<8x32xf32> to vector<1x8x32xf32>
    tpu.vector_store %arg4[%241, %c0_101, %c0_102], %244 {strides = array<i32>} : memref<8x8x64xf32, #tpu.memory_space<vmem>>, vector<1x8x32xf32>,
    %245 = arith.index_cast %194 : i32 to index
    %c0_103 = arith.constant 0 : index
    %c32_104 = arith.constant 32 : index
    %246 = vector.load %arg4[%245, %c0_103, %c32_104] : memref<8x8x64xf32, #tpu.memory_space<vmem>>, vector<1x8x32xf32>
    %247 = vector.shape_cast %246 : vector<1x8x32xf32> to vector<8x32xf32>
    %248 = vector.shape_cast %240 : vector<8x32xf32> to vector<1x8x32xf32>
    tpu.vector_store %arg4[%245, %c0_103, %c32_104], %248 {strides = array<i32>} : memref<8x8x64xf32, #tpu.memory_space<vmem>>, vector<1x8x32xf32>,
    %c4_i32 = arith.constant 4 : i32
    %c7_i32_105 = arith.constant 7 : i32
    %249 = arith.subi %c7_i32_105, %c4_i32 : i32
    %c0_i32_106 = arith.constant 0 : i32
    %c0_i32_107 = arith.constant 0 : i32
    %c0_i32_108 = arith.constant 0 : i32
    %250 = tpu.memref_slice %arg7[%c0_i32, %c0_i32_106, %c0_i32_107, %c0_i32_108] : memref<2x8x8x128xf32, #tpu.memory_space<vmem>> -> memref<1x8x8x128xf32, #tpu.memory_space<vmem>>
    %251 = tpu.memref_squeeze %250 : memref<1x8x8x128xf32, #tpu.memory_space<vmem>> -> memref<8x8x128xf32, #tpu.memory_space<vmem>>
    %252 = arith.index_cast %c4_i32 : i32 to index
    %c0_109 = arith.constant 0 : index
    %c0_110 = arith.constant 0 : index
    %253 = vector.load %251[%252, %c0_109, %c0_110] : memref<8x8x128xf32, #tpu.memory_space<vmem>>, vector<1x8x128xf32>
    %254 = vector.shape_cast %253 : vector<1x8x128xf32> to vector<8x128xf32>
    %cst_111 = arith.constant dense<0.000000e+00> : vector<8x128xf32>
    %255 = tpu.matmul %224, %25, %cst_111 {dimension_numbers = #tpu.dot_dimension_numbers<[1], [0], [0], [1], [0, 0, 1, 1], [], []>} : vector<8x32xf32>, vector<32x128xf32>, vector<8x128xf32> -> vector<8x128xf32>
    %256 = arith.addf %254, %255 : vector<8x128xf32>
    %c0_i32_112 = arith.constant 0 : i32
    %c0_i32_113 = arith.constant 0 : i32
    %c0_i32_114 = arith.constant 0 : i32
    %257 = tpu.memref_slice %arg7[%c1_i32, %c0_i32_112, %c0_i32_113, %c0_i32_114] : memref<2x8x8x128xf32, #tpu.memory_space<vmem>> -> memref<1x8x8x128xf32, #tpu.memory_space<vmem>>
    %258 = tpu.memref_squeeze %257 : memref<1x8x8x128xf32, #tpu.memory_space<vmem>> -> memref<8x8x128xf32, #tpu.memory_space<vmem>>
    %259 = arith.index_cast %249 : i32 to index
    %c0_115 = arith.constant 0 : index
    %c0_116 = arith.constant 0 : index
    %260 = vector.load %258[%259, %c0_115, %c0_116] : memref<8x8x128xf32, #tpu.memory_space<vmem>>, vector<1x8x128xf32>
    %261 = vector.shape_cast %260 : vector<1x8x128xf32> to vector<8x128xf32>
    %cst_117 = arith.constant dense<0.000000e+00> : vector<8x128xf32>
    %262 = tpu.matmul %240, %27, %cst_117 {dimension_numbers = #tpu.dot_dimension_numbers<[1], [0], [0], [1], [0, 0, 1, 1], [], []>} : vector<8x32xf32>, vector<32x128xf32>, vector<8x128xf32> -> vector<8x128xf32>
    %263 = arith.addf %261, %262 : vector<8x128xf32>
    %264 = vector.extract_strided_slice %256 {offsets = [0, 0], sizes = [8, 96], strides = [1, 1]} : vector<8x128xf32> to vector<8x96xf32>
    %265 = arith.negf %264 : vector<8x96xf32>
    %266 = math.exp %265 : vector<8x96xf32>
    %cst_118 = arith.constant 1.000000e+00 : f32
    %267 = vector.broadcast %cst_118 : f32 to vector<8x96xf32>
    %268 = arith.addf %267, %266 : vector<8x96xf32>
    %269 = arith.divf %267, %268 : vector<8x96xf32>
    %270 = vector.extract_strided_slice %256 {offsets = [0, 96], sizes = [8, 32], strides = [1, 1]} : vector<8x128xf32> to vector<8x32xf32>
    %271 = math.tanh %270 : vector<8x32xf32>
    %272 = vector.extract_strided_slice %269 {offsets = [0, 0], sizes = [8, 32], strides = [1, 1]} : vector<8x96xf32> to vector<8x32xf32>
    %273 = vector.extract_strided_slice %269 {offsets = [0, 32], sizes = [8, 32], strides = [1, 1]} : vector<8x96xf32> to vector<8x32xf32>
    %274 = vector.extract_strided_slice %269 {offsets = [0, 64], sizes = [8, 32], strides = [1, 1]} : vector<8x96xf32> to vector<8x32xf32>
    %275 = arith.mulf %273, %222 : vector<8x32xf32>
    %276 = arith.mulf %272, %271 : vector<8x32xf32>
    %277 = arith.addf %275, %276 : vector<8x32xf32>
    %278 = math.tanh %277 : vector<8x32xf32>
    %279 = arith.mulf %274, %278 : vector<8x32xf32>
    %280 = vector.extract_strided_slice %263 {offsets = [0, 0], sizes = [8, 96], strides = [1, 1]} : vector<8x128xf32> to vector<8x96xf32>
    %281 = arith.negf %280 : vector<8x96xf32>
    %282 = math.exp %281 : vector<8x96xf32>
    %cst_119 = arith.constant 1.000000e+00 : f32
    %283 = vector.broadcast %cst_119 : f32 to vector<8x96xf32>
    %284 = arith.addf %283, %282 : vector<8x96xf32>
    %285 = arith.divf %283, %284 : vector<8x96xf32>
    %286 = vector.extract_strided_slice %263 {offsets = [0, 96], sizes = [8, 32], strides = [1, 1]} : vector<8x128xf32> to vector<8x32xf32>
    %287 = math.tanh %286 : vector<8x32xf32>
    %288 = vector.extract_strided_slice %285 {offsets = [0, 0], sizes = [8, 32], strides = [1, 1]} : vector<8x96xf32> to vector<8x32xf32>
    %289 = vector.extract_strided_slice %285 {offsets = [0, 32], sizes = [8, 32], strides = [1, 1]} : vector<8x96xf32> to vector<8x32xf32>
    %290 = vector.extract_strided_slice %285 {offsets = [0, 64], sizes = [8, 32], strides = [1, 1]} : vector<8x96xf32> to vector<8x32xf32>
    %291 = arith.mulf %289, %238 : vector<8x32xf32>
    %292 = arith.mulf %288, %287 : vector<8x32xf32>
    %293 = arith.addf %291, %292 : vector<8x32xf32>
    %294 = math.tanh %293 : vector<8x32xf32>
    %295 = arith.mulf %290, %294 : vector<8x32xf32>
    %296 = arith.index_cast %c4_i32 : i32 to index
    %c0_120 = arith.constant 0 : index
    %c0_121 = arith.constant 0 : index
    %297 = vector.load %arg4[%296, %c0_120, %c0_121] : memref<8x8x64xf32, #tpu.memory_space<vmem>>, vector<1x8x32xf32>
    %298 = vector.shape_cast %297 : vector<1x8x32xf32> to vector<8x32xf32>
    %299 = vector.shape_cast %279 : vector<8x32xf32> to vector<1x8x32xf32>
    tpu.vector_store %arg4[%296, %c0_120, %c0_121], %299 {strides = array<i32>} : memref<8x8x64xf32, #tpu.memory_space<vmem>>, vector<1x8x32xf32>,
    %300 = arith.index_cast %249 : i32 to index
    %c0_122 = arith.constant 0 : index
    %c32_123 = arith.constant 32 : index
    %301 = vector.load %arg4[%300, %c0_122, %c32_123] : memref<8x8x64xf32, #tpu.memory_space<vmem>>, vector<1x8x32xf32>
    %302 = vector.shape_cast %301 : vector<1x8x32xf32> to vector<8x32xf32>
    %303 = vector.shape_cast %295 : vector<8x32xf32> to vector<1x8x32xf32>
    tpu.vector_store %arg4[%300, %c0_122, %c32_123], %303 {strides = array<i32>} : memref<8x8x64xf32, #tpu.memory_space<vmem>>, vector<1x8x32xf32>,
    %c5_i32 = arith.constant 5 : i32
    %c7_i32_124 = arith.constant 7 : i32
    %304 = arith.subi %c7_i32_124, %c5_i32 : i32
    %c0_i32_125 = arith.constant 0 : i32
    %c0_i32_126 = arith.constant 0 : i32
    %c0_i32_127 = arith.constant 0 : i32
    %305 = tpu.memref_slice %arg7[%c0_i32, %c0_i32_125, %c0_i32_126, %c0_i32_127] : memref<2x8x8x128xf32, #tpu.memory_space<vmem>> -> memref<1x8x8x128xf32, #tpu.memory_space<vmem>>
    %306 = tpu.memref_squeeze %305 : memref<1x8x8x128xf32, #tpu.memory_space<vmem>> -> memref<8x8x128xf32, #tpu.memory_space<vmem>>
    %307 = arith.index_cast %c5_i32 : i32 to index
    %c0_128 = arith.constant 0 : index
    %c0_129 = arith.constant 0 : index
    %308 = vector.load %306[%307, %c0_128, %c0_129] : memref<8x8x128xf32, #tpu.memory_space<vmem>>, vector<1x8x128xf32>
    %309 = vector.shape_cast %308 : vector<1x8x128xf32> to vector<8x128xf32>
    %cst_130 = arith.constant dense<0.000000e+00> : vector<8x128xf32>
    %310 = tpu.matmul %279, %25, %cst_130 {dimension_numbers = #tpu.dot_dimension_numbers<[1], [0], [0], [1], [0, 0, 1, 1], [], []>} : vector<8x32xf32>, vector<32x128xf32>, vector<8x128xf32> -> vector<8x128xf32>
    %311 = arith.addf %309, %310 : vector<8x128xf32>
    %c0_i32_131 = arith.constant 0 : i32
    %c0_i32_132 = arith.constant 0 : i32
    %c0_i32_133 = arith.constant 0 : i32
    %312 = tpu.memref_slice %arg7[%c1_i32, %c0_i32_131, %c0_i32_132, %c0_i32_133] : memref<2x8x8x128xf32, #tpu.memory_space<vmem>> -> memref<1x8x8x128xf32, #tpu.memory_space<vmem>>
    %313 = tpu.memref_squeeze %312 : memref<1x8x8x128xf32, #tpu.memory_space<vmem>> -> memref<8x8x128xf32, #tpu.memory_space<vmem>>
    %314 = arith.index_cast %304 : i32 to index
    %c0_134 = arith.constant 0 : index
    %c0_135 = arith.constant 0 : index
    %315 = vector.load %313[%314, %c0_134, %c0_135] : memref<8x8x128xf32, #tpu.memory_space<vmem>>, vector<1x8x128xf32>
    %316 = vector.shape_cast %315 : vector<1x8x128xf32> to vector<8x128xf32>
    %cst_136 = arith.constant dense<0.000000e+00> : vector<8x128xf32>
    %317 = tpu.matmul %295, %27, %cst_136 {dimension_numbers = #tpu.dot_dimension_numbers<[1], [0], [0], [1], [0, 0, 1, 1], [], []>} : vector<8x32xf32>, vector<32x128xf32>, vector<8x128xf32> -> vector<8x128xf32>
    %318 = arith.addf %316, %317 : vector<8x128xf32>
    %319 = vector.extract_strided_slice %311 {offsets = [0, 0], sizes = [8, 96], strides = [1, 1]} : vector<8x128xf32> to vector<8x96xf32>
    %320 = arith.negf %319 : vector<8x96xf32>
    %321 = math.exp %320 : vector<8x96xf32>
    %cst_137 = arith.constant 1.000000e+00 : f32
    %322 = vector.broadcast %cst_137 : f32 to vector<8x96xf32>
    %323 = arith.addf %322, %321 : vector<8x96xf32>
    %324 = arith.divf %322, %323 : vector<8x96xf32>
    %325 = vector.extract_strided_slice %311 {offsets = [0, 96], sizes = [8, 32], strides = [1, 1]} : vector<8x128xf32> to vector<8x32xf32>
    %326 = math.tanh %325 : vector<8x32xf32>
    %327 = vector.extract_strided_slice %324 {offsets = [0, 0], sizes = [8, 32], strides = [1, 1]} : vector<8x96xf32> to vector<8x32xf32>
    %328 = vector.extract_strided_slice %324 {offsets = [0, 32], sizes = [8, 32], strides = [1, 1]} : vector<8x96xf32> to vector<8x32xf32>
    %329 = vector.extract_strided_slice %324 {offsets = [0, 64], sizes = [8, 32], strides = [1, 1]} : vector<8x96xf32> to vector<8x32xf32>
    %330 = arith.mulf %328, %277 : vector<8x32xf32>
    %331 = arith.mulf %327, %326 : vector<8x32xf32>
    %332 = arith.addf %330, %331 : vector<8x32xf32>
    %333 = math.tanh %332 : vector<8x32xf32>
    %334 = arith.mulf %329, %333 : vector<8x32xf32>
    %335 = vector.extract_strided_slice %318 {offsets = [0, 0], sizes = [8, 96], strides = [1, 1]} : vector<8x128xf32> to vector<8x96xf32>
    %336 = arith.negf %335 : vector<8x96xf32>
    %337 = math.exp %336 : vector<8x96xf32>
    %cst_138 = arith.constant 1.000000e+00 : f32
    %338 = vector.broadcast %cst_138 : f32 to vector<8x96xf32>
    %339 = arith.addf %338, %337 : vector<8x96xf32>
    %340 = arith.divf %338, %339 : vector<8x96xf32>
    %341 = vector.extract_strided_slice %318 {offsets = [0, 96], sizes = [8, 32], strides = [1, 1]} : vector<8x128xf32> to vector<8x32xf32>
    %342 = math.tanh %341 : vector<8x32xf32>
    %343 = vector.extract_strided_slice %340 {offsets = [0, 0], sizes = [8, 32], strides = [1, 1]} : vector<8x96xf32> to vector<8x32xf32>
    %344 = vector.extract_strided_slice %340 {offsets = [0, 32], sizes = [8, 32], strides = [1, 1]} : vector<8x96xf32> to vector<8x32xf32>
    %345 = vector.extract_strided_slice %340 {offsets = [0, 64], sizes = [8, 32], strides = [1, 1]} : vector<8x96xf32> to vector<8x32xf32>
    %346 = arith.mulf %344, %293 : vector<8x32xf32>
    %347 = arith.mulf %343, %342 : vector<8x32xf32>
    %348 = arith.addf %346, %347 : vector<8x32xf32>
    %349 = math.tanh %348 : vector<8x32xf32>
    %350 = arith.mulf %345, %349 : vector<8x32xf32>
    %351 = arith.index_cast %c5_i32 : i32 to index
    %c0_139 = arith.constant 0 : index
    %c0_140 = arith.constant 0 : index
    %352 = vector.load %arg4[%351, %c0_139, %c0_140] : memref<8x8x64xf32, #tpu.memory_space<vmem>>, vector<1x8x32xf32>
    %353 = vector.shape_cast %352 : vector<1x8x32xf32> to vector<8x32xf32>
    %354 = vector.shape_cast %334 : vector<8x32xf32> to vector<1x8x32xf32>
    tpu.vector_store %arg4[%351, %c0_139, %c0_140], %354 {strides = array<i32>} : memref<8x8x64xf32, #tpu.memory_space<vmem>>, vector<1x8x32xf32>,
    %355 = arith.index_cast %304 : i32 to index
    %c0_141 = arith.constant 0 : index
    %c32_142 = arith.constant 32 : index
    %356 = vector.load %arg4[%355, %c0_141, %c32_142] : memref<8x8x64xf32, #tpu.memory_space<vmem>>, vector<1x8x32xf32>
    %357 = vector.shape_cast %356 : vector<1x8x32xf32> to vector<8x32xf32>
    %358 = vector.shape_cast %350 : vector<8x32xf32> to vector<1x8x32xf32>
    tpu.vector_store %arg4[%355, %c0_141, %c32_142], %358 {strides = array<i32>} : memref<8x8x64xf32, #tpu.memory_space<vmem>>, vector<1x8x32xf32>,
    %c6_i32 = arith.constant 6 : i32
    %c7_i32_143 = arith.constant 7 : i32
    %359 = arith.subi %c7_i32_143, %c6_i32 : i32
    %c0_i32_144 = arith.constant 0 : i32
    %c0_i32_145 = arith.constant 0 : i32
    %c0_i32_146 = arith.constant 0 : i32
    %360 = tpu.memref_slice %arg7[%c0_i32, %c0_i32_144, %c0_i32_145, %c0_i32_146] : memref<2x8x8x128xf32, #tpu.memory_space<vmem>> -> memref<1x8x8x128xf32, #tpu.memory_space<vmem>>
    %361 = tpu.memref_squeeze %360 : memref<1x8x8x128xf32, #tpu.memory_space<vmem>> -> memref<8x8x128xf32, #tpu.memory_space<vmem>>
    %362 = arith.index_cast %c6_i32 : i32 to index
    %c0_147 = arith.constant 0 : index
    %c0_148 = arith.constant 0 : index
    %363 = vector.load %361[%362, %c0_147, %c0_148] : memref<8x8x128xf32, #tpu.memory_space<vmem>>, vector<1x8x128xf32>
    %364 = vector.shape_cast %363 : vector<1x8x128xf32> to vector<8x128xf32>
    %cst_149 = arith.constant dense<0.000000e+00> : vector<8x128xf32>
    %365 = tpu.matmul %334, %25, %cst_149 {dimension_numbers = #tpu.dot_dimension_numbers<[1], [0], [0], [1], [0, 0, 1, 1], [], []>} : vector<8x32xf32>, vector<32x128xf32>, vector<8x128xf32> -> vector<8x128xf32>
    %366 = arith.addf %364, %365 : vector<8x128xf32>
    %c0_i32_150 = arith.constant 0 : i32
    %c0_i32_151 = arith.constant 0 : i32
    %c0_i32_152 = arith.constant 0 : i32
    %367 = tpu.memref_slice %arg7[%c1_i32, %c0_i32_150, %c0_i32_151, %c0_i32_152] : memref<2x8x8x128xf32, #tpu.memory_space<vmem>> -> memref<1x8x8x128xf32, #tpu.memory_space<vmem>>
    %368 = tpu.memref_squeeze %367 : memref<1x8x8x128xf32, #tpu.memory_space<vmem>> -> memref<8x8x128xf32, #tpu.memory_space<vmem>>
    %369 = arith.index_cast %359 : i32 to index
    %c0_153 = arith.constant 0 : index
    %c0_154 = arith.constant 0 : index
    %370 = vector.load %368[%369, %c0_153, %c0_154] : memref<8x8x128xf32, #tpu.memory_space<vmem>>, vector<1x8x128xf32>
    %371 = vector.shape_cast %370 : vector<1x8x128xf32> to vector<8x128xf32>
    %cst_155 = arith.constant dense<0.000000e+00> : vector<8x128xf32>
    %372 = tpu.matmul %350, %27, %cst_155 {dimension_numbers = #tpu.dot_dimension_numbers<[1], [0], [0], [1], [0, 0, 1, 1], [], []>} : vector<8x32xf32>, vector<32x128xf32>, vector<8x128xf32> -> vector<8x128xf32>
    %373 = arith.addf %371, %372 : vector<8x128xf32>
    %374 = vector.extract_strided_slice %366 {offsets = [0, 0], sizes = [8, 96], strides = [1, 1]} : vector<8x128xf32> to vector<8x96xf32>
    %375 = arith.negf %374 : vector<8x96xf32>
    %376 = math.exp %375 : vector<8x96xf32>
    %cst_156 = arith.constant 1.000000e+00 : f32
    %377 = vector.broadcast %cst_156 : f32 to vector<8x96xf32>
    %378 = arith.addf %377, %376 : vector<8x96xf32>
    %379 = arith.divf %377, %378 : vector<8x96xf32>
    %380 = vector.extract_strided_slice %366 {offsets = [0, 96], sizes = [8, 32], strides = [1, 1]} : vector<8x128xf32> to vector<8x32xf32>
    %381 = math.tanh %380 : vector<8x32xf32>
    %382 = vector.extract_strided_slice %379 {offsets = [0, 0], sizes = [8, 32], strides = [1, 1]} : vector<8x96xf32> to vector<8x32xf32>
    %383 = vector.extract_strided_slice %379 {offsets = [0, 32], sizes = [8, 32], strides = [1, 1]} : vector<8x96xf32> to vector<8x32xf32>
    %384 = vector.extract_strided_slice %379 {offsets = [0, 64], sizes = [8, 32], strides = [1, 1]} : vector<8x96xf32> to vector<8x32xf32>
    %385 = arith.mulf %383, %332 : vector<8x32xf32>
    %386 = arith.mulf %382, %381 : vector<8x32xf32>
    %387 = arith.addf %385, %386 : vector<8x32xf32>
    %388 = math.tanh %387 : vector<8x32xf32>
    %389 = arith.mulf %384, %388 : vector<8x32xf32>
    %390 = vector.extract_strided_slice %373 {offsets = [0, 0], sizes = [8, 96], strides = [1, 1]} : vector<8x128xf32> to vector<8x96xf32>
    %391 = arith.negf %390 : vector<8x96xf32>
    %392 = math.exp %391 : vector<8x96xf32>
    %cst_157 = arith.constant 1.000000e+00 : f32
    %393 = vector.broadcast %cst_157 : f32 to vector<8x96xf32>
    %394 = arith.addf %393, %392 : vector<8x96xf32>
    %395 = arith.divf %393, %394 : vector<8x96xf32>
    %396 = vector.extract_strided_slice %373 {offsets = [0, 96], sizes = [8, 32], strides = [1, 1]} : vector<8x128xf32> to vector<8x32xf32>
    %397 = math.tanh %396 : vector<8x32xf32>
    %398 = vector.extract_strided_slice %395 {offsets = [0, 0], sizes = [8, 32], strides = [1, 1]} : vector<8x96xf32> to vector<8x32xf32>
    %399 = vector.extract_strided_slice %395 {offsets = [0, 32], sizes = [8, 32], strides = [1, 1]} : vector<8x96xf32> to vector<8x32xf32>
    %400 = vector.extract_strided_slice %395 {offsets = [0, 64], sizes = [8, 32], strides = [1, 1]} : vector<8x96xf32> to vector<8x32xf32>
    %401 = arith.mulf %399, %348 : vector<8x32xf32>
    %402 = arith.mulf %398, %397 : vector<8x32xf32>
    %403 = arith.addf %401, %402 : vector<8x32xf32>
    %404 = math.tanh %403 : vector<8x32xf32>
    %405 = arith.mulf %400, %404 : vector<8x32xf32>
    %406 = arith.index_cast %c6_i32 : i32 to index
    %c0_158 = arith.constant 0 : index
    %c0_159 = arith.constant 0 : index
    %407 = vector.load %arg4[%406, %c0_158, %c0_159] : memref<8x8x64xf32, #tpu.memory_space<vmem>>, vector<1x8x32xf32>
    %408 = vector.shape_cast %407 : vector<1x8x32xf32> to vector<8x32xf32>
    %409 = vector.shape_cast %389 : vector<8x32xf32> to vector<1x8x32xf32>
    tpu.vector_store %arg4[%406, %c0_158, %c0_159], %409 {strides = array<i32>} : memref<8x8x64xf32, #tpu.memory_space<vmem>>, vector<1x8x32xf32>,
    %410 = arith.index_cast %359 : i32 to index
    %c0_160 = arith.constant 0 : index
    %c32_161 = arith.constant 32 : index
    %411 = vector.load %arg4[%410, %c0_160, %c32_161] : memref<8x8x64xf32, #tpu.memory_space<vmem>>, vector<1x8x32xf32>
    %412 = vector.shape_cast %411 : vector<1x8x32xf32> to vector<8x32xf32>
    %413 = vector.shape_cast %405 : vector<8x32xf32> to vector<1x8x32xf32>
    tpu.vector_store %arg4[%410, %c0_160, %c32_161], %413 {strides = array<i32>} : memref<8x8x64xf32, #tpu.memory_space<vmem>>, vector<1x8x32xf32>,
    %c7_i32_162 = arith.constant 7 : i32
    %c7_i32_163 = arith.constant 7 : i32
    %414 = arith.subi %c7_i32_163, %c7_i32_162 : i32
    %c0_i32_164 = arith.constant 0 : i32
    %c0_i32_165 = arith.constant 0 : i32
    %c0_i32_166 = arith.constant 0 : i32
    %415 = tpu.memref_slice %arg7[%c0_i32, %c0_i32_164, %c0_i32_165, %c0_i32_166] : memref<2x8x8x128xf32, #tpu.memory_space<vmem>> -> memref<1x8x8x128xf32, #tpu.memory_space<vmem>>
    %416 = tpu.memref_squeeze %415 : memref<1x8x8x128xf32, #tpu.memory_space<vmem>> -> memref<8x8x128xf32, #tpu.memory_space<vmem>>
    %417 = arith.index_cast %c7_i32_162 : i32 to index
    %c0_167 = arith.constant 0 : index
    %c0_168 = arith.constant 0 : index
    %418 = vector.load %416[%417, %c0_167, %c0_168] : memref<8x8x128xf32, #tpu.memory_space<vmem>>, vector<1x8x128xf32>
    %419 = vector.shape_cast %418 : vector<1x8x128xf32> to vector<8x128xf32>
    %cst_169 = arith.constant dense<0.000000e+00> : vector<8x128xf32>
    %420 = tpu.matmul %389, %25, %cst_169 {dimension_numbers = #tpu.dot_dimension_numbers<[1], [0], [0], [1], [0, 0, 1, 1], [], []>} : vector<8x32xf32>, vector<32x128xf32>, vector<8x128xf32> -> vector<8x128xf32>
    %421 = arith.addf %419, %420 : vector<8x128xf32>
    %c0_i32_170 = arith.constant 0 : i32
    %c0_i32_171 = arith.constant 0 : i32
    %c0_i32_172 = arith.constant 0 : i32
    %422 = tpu.memref_slice %arg7[%c1_i32, %c0_i32_170, %c0_i32_171, %c0_i32_172] : memref<2x8x8x128xf32, #tpu.memory_space<vmem>> -> memref<1x8x8x128xf32, #tpu.memory_space<vmem>>
    %423 = tpu.memref_squeeze %422 : memref<1x8x8x128xf32, #tpu.memory_space<vmem>> -> memref<8x8x128xf32, #tpu.memory_space<vmem>>
    %424 = arith.index_cast %414 : i32 to index
    %c0_173 = arith.constant 0 : index
    %c0_174 = arith.constant 0 : index
    %425 = vector.load %423[%424, %c0_173, %c0_174] : memref<8x8x128xf32, #tpu.memory_space<vmem>>, vector<1x8x128xf32>
    %426 = vector.shape_cast %425 : vector<1x8x128xf32> to vector<8x128xf32>
    %cst_175 = arith.constant dense<0.000000e+00> : vector<8x128xf32>
    %427 = tpu.matmul %405, %27, %cst_175 {dimension_numbers = #tpu.dot_dimension_numbers<[1], [0], [0], [1], [0, 0, 1, 1], [], []>} : vector<8x32xf32>, vector<32x128xf32>, vector<8x128xf32> -> vector<8x128xf32>
    %428 = arith.addf %426, %427 : vector<8x128xf32>
    %429 = vector.extract_strided_slice %421 {offsets = [0, 0], sizes = [8, 96], strides = [1, 1]} : vector<8x128xf32> to vector<8x96xf32>
    %430 = arith.negf %429 : vector<8x96xf32>
    %431 = math.exp %430 : vector<8x96xf32>
    %cst_176 = arith.constant 1.000000e+00 : f32
    %432 = vector.broadcast %cst_176 : f32 to vector<8x96xf32>
    %433 = arith.addf %432, %431 : vector<8x96xf32>
    %434 = arith.divf %432, %433 : vector<8x96xf32>
    %435 = vector.extract_strided_slice %421 {offsets = [0, 96], sizes = [8, 32], strides = [1, 1]} : vector<8x128xf32> to vector<8x32xf32>
    %436 = math.tanh %435 : vector<8x32xf32>
    %437 = vector.extract_strided_slice %434 {offsets = [0, 0], sizes = [8, 32], strides = [1, 1]} : vector<8x96xf32> to vector<8x32xf32>
    %438 = vector.extract_strided_slice %434 {offsets = [0, 32], sizes = [8, 32], strides = [1, 1]} : vector<8x96xf32> to vector<8x32xf32>
    %439 = vector.extract_strided_slice %434 {offsets = [0, 64], sizes = [8, 32], strides = [1, 1]} : vector<8x96xf32> to vector<8x32xf32>
    %440 = arith.mulf %438, %387 : vector<8x32xf32>
    %441 = arith.mulf %437, %436 : vector<8x32xf32>
    %442 = arith.addf %440, %441 : vector<8x32xf32>
    %443 = math.tanh %442 : vector<8x32xf32>
    %444 = arith.mulf %439, %443 : vector<8x32xf32>
    %445 = vector.extract_strided_slice %428 {offsets = [0, 0], sizes = [8, 96], strides = [1, 1]} : vector<8x128xf32> to vector<8x96xf32>
    %446 = arith.negf %445 : vector<8x96xf32>
    %447 = math.exp %446 : vector<8x96xf32>
    %cst_177 = arith.constant 1.000000e+00 : f32
    %448 = vector.broadcast %cst_177 : f32 to vector<8x96xf32>
    %449 = arith.addf %448, %447 : vector<8x96xf32>
    %450 = arith.divf %448, %449 : vector<8x96xf32>
    %451 = vector.extract_strided_slice %428 {offsets = [0, 96], sizes = [8, 32], strides = [1, 1]} : vector<8x128xf32> to vector<8x32xf32>
    %452 = math.tanh %451 : vector<8x32xf32>
    %453 = vector.extract_strided_slice %450 {offsets = [0, 0], sizes = [8, 32], strides = [1, 1]} : vector<8x96xf32> to vector<8x32xf32>
    %454 = vector.extract_strided_slice %450 {offsets = [0, 32], sizes = [8, 32], strides = [1, 1]} : vector<8x96xf32> to vector<8x32xf32>
    %455 = vector.extract_strided_slice %450 {offsets = [0, 64], sizes = [8, 32], strides = [1, 1]} : vector<8x96xf32> to vector<8x32xf32>
    %456 = arith.mulf %454, %403 : vector<8x32xf32>
    %457 = arith.mulf %453, %452 : vector<8x32xf32>
    %458 = arith.addf %456, %457 : vector<8x32xf32>
    %459 = math.tanh %458 : vector<8x32xf32>
    %460 = arith.mulf %455, %459 : vector<8x32xf32>
    %461 = arith.index_cast %c7_i32_162 : i32 to index
    %c0_178 = arith.constant 0 : index
    %c0_179 = arith.constant 0 : index
    %462 = vector.load %arg4[%461, %c0_178, %c0_179] : memref<8x8x64xf32, #tpu.memory_space<vmem>>, vector<1x8x32xf32>
    %463 = vector.shape_cast %462 : vector<1x8x32xf32> to vector<8x32xf32>
    %464 = vector.shape_cast %444 : vector<8x32xf32> to vector<1x8x32xf32>
    tpu.vector_store %arg4[%461, %c0_178, %c0_179], %464 {strides = array<i32>} : memref<8x8x64xf32, #tpu.memory_space<vmem>>, vector<1x8x32xf32>,
    %465 = arith.index_cast %414 : i32 to index
    %c0_180 = arith.constant 0 : index
    %c32_181 = arith.constant 32 : index
    %466 = vector.load %arg4[%465, %c0_180, %c32_181] : memref<8x8x64xf32, #tpu.memory_space<vmem>>, vector<1x8x32xf32>
    %467 = vector.shape_cast %466 : vector<1x8x32xf32> to vector<8x32xf32>
    %468 = vector.shape_cast %460 : vector<8x32xf32> to vector<1x8x32xf32>
    tpu.vector_store %arg4[%465, %c0_180, %c32_181], %468 {strides = array<i32>} : memref<8x8x64xf32, #tpu.memory_space<vmem>>, vector<1x8x32xf32>,
    %c8_i32 = arith.constant 8 : i32
    %c0_182 = arith.constant 0 : index
    %c0_183 = arith.constant 0 : index
    %c0_184 = arith.constant 0 : index
    %469 = vector.load %arg5[%c0_182, %c0_183, %c0_184] : memref<2x8x32xf32, #tpu.memory_space<vmem>>, vector<1x8x32xf32>
    %470 = vector.shape_cast %469 : vector<1x8x32xf32> to vector<8x32xf32>
    %471 = vector.shape_cast %444 : vector<8x32xf32> to vector<1x8x32xf32>
    tpu.vector_store %arg5[%c0_182, %c0_183, %c0_184], %471 {strides = array<i32>} : memref<2x8x32xf32, #tpu.memory_space<vmem>>, vector<1x8x32xf32>,
    %c0_185 = arith.constant 0 : index
    %c0_186 = arith.constant 0 : index
    %c0_187 = arith.constant 0 : index
    %472 = vector.load %arg6[%c0_185, %c0_186, %c0_187] : memref<2x8x32xf32, #tpu.memory_space<vmem>>, vector<1x8x32xf32>
    %473 = vector.shape_cast %472 : vector<1x8x32xf32> to vector<8x32xf32>
    %474 = vector.shape_cast %442 : vector<8x32xf32> to vector<1x8x32xf32>
    tpu.vector_store %arg6[%c0_185, %c0_186, %c0_187], %474 {strides = array<i32>} : memref<2x8x32xf32, #tpu.memory_space<vmem>>, vector<1x8x32xf32>,
    %c1_188 = arith.constant 1 : index
    %c0_189 = arith.constant 0 : index
    %c0_190 = arith.constant 0 : index
    %475 = vector.load %arg5[%c1_188, %c0_189, %c0_190] : memref<2x8x32xf32, #tpu.memory_space<vmem>>, vector<1x8x32xf32>
    %476 = vector.shape_cast %475 : vector<1x8x32xf32> to vector<8x32xf32>
    %477 = vector.shape_cast %460 : vector<8x32xf32> to vector<1x8x32xf32>
    tpu.vector_store %arg5[%c1_188, %c0_189, %c0_190], %477 {strides = array<i32>} : memref<2x8x32xf32, #tpu.memory_space<vmem>>, vector<1x8x32xf32>,
    %c1_191 = arith.constant 1 : index
    %c0_192 = arith.constant 0 : index
    %c0_193 = arith.constant 0 : index
    %478 = vector.load %arg6[%c1_191, %c0_192, %c0_193] : memref<2x8x32xf32, #tpu.memory_space<vmem>>, vector<1x8x32xf32>
    %479 = vector.shape_cast %478 : vector<1x8x32xf32> to vector<8x32xf32>
    %480 = vector.shape_cast %458 : vector<8x32xf32> to vector<1x8x32xf32>
    tpu.vector_store %arg6[%c1_191, %c0_192, %c0_193], %480 {strides = array<i32>} : memref<2x8x32xf32, #tpu.memory_space<vmem>>, vector<1x8x32xf32>,
    return
  }
}

module attributes {stable_mosaic.version = 11 : i64} {
  func.func @bilstm_kernel(%arg0: memref<8x8x64xf32, #tpu.memory_space<vmem>>, %arg1: memref<2x64x128xf32, #tpu.memory_space<vmem>>, %arg2: memref<2x32x128xf32, #tpu.memory_space<vmem>>, %arg3: memref<2x1x128xf32, #tpu.memory_space<vmem>>, %arg4: memref<8x8x64xf32, #tpu.memory_space<vmem>>, %arg5: memref<2x8x32xf32, #tpu.memory_space<vmem>>, %arg6: memref<2x8x32xf32, #tpu.memory_space<vmem>>, %arg7: memref<2x8x8x128xf32, #tpu.memory_space<vmem>>) attributes {dimension_semantics = [], scalar_prefetch = 0 : i64, scratch_operands = 1 : i64, tpu.core_type = #tpu.core_type<tc>} {
    %c0 = arith.constant 0 : index
    %c0_0 = arith.constant 0 : index
    %c0_1 = arith.constant 0 : index
    %0 = vector.load %arg0[%c0, %c0_0, %c0_1] : memref<8x8x64xf32, #tpu.memory_space<vmem>>, vector<8x8x64xf32>
    %1 = vector.shape_cast %0 : vector<8x8x64xf32> to vector<64x64xf32>
    %c0_2 = arith.constant 0 : index
    %c0_3 = arith.constant 0 : index
    %c0_4 = arith.constant 0 : index
    %2 = vector.load %arg1[%c0_2, %c0_3, %c0_4] : memref<2x64x128xf32, #tpu.memory_space<vmem>>, vector<1x64x128xf32>
    %3 = vector.shape_cast %2 : vector<1x64x128xf32> to vector<64x128xf32>
    %cst = arith.constant dense<0.000000e+00> : vector<64x128xf32>
    %4 = tpu.matmul %1, %3, %cst {dimension_numbers = #tpu.dot_dimension_numbers<[1], [0], [0], [1], [0, 0, 1, 1], [], []>} : vector<64x64xf32>, vector<64x128xf32>, vector<64x128xf32> -> vector<64x128xf32>
    %c0_5 = arith.constant 0 : index
    %c0_6 = arith.constant 0 : index
    %c0_7 = arith.constant 0 : index
    %5 = vector.load %arg3[%c0_5, %c0_6, %c0_7] : memref<2x1x128xf32, #tpu.memory_space<vmem>>, vector<1x1x128xf32>
    %6 = vector.shape_cast %5 : vector<1x1x128xf32> to vector<1x128xf32>
    %7 = vector.broadcast %6 : vector<1x128xf32> to vector<64x128xf32>
    %8 = arith.addf %4, %7 : vector<64x128xf32>
    %9 = vector.shape_cast %8 : vector<64x128xf32> to vector<8x8x128xf32>
    %c0_8 = arith.constant 0 : index
    %c0_9 = arith.constant 0 : index
    %c0_10 = arith.constant 0 : index
    %c0_11 = arith.constant 0 : index
    %10 = vector.load %arg7[%c0_8, %c0_9, %c0_10, %c0_11] : memref<2x8x8x128xf32, #tpu.memory_space<vmem>>, vector<1x8x8x128xf32>
    %11 = vector.shape_cast %10 : vector<1x8x8x128xf32> to vector<8x8x128xf32>
    %12 = vector.shape_cast %9 : vector<8x8x128xf32> to vector<1x8x8x128xf32>
    tpu.vector_store %arg7[%c0_8, %c0_9, %c0_10, %c0_11], %12 {strides = array<i32>} : memref<2x8x8x128xf32, #tpu.memory_space<vmem>>, vector<1x8x8x128xf32>,
    %c1 = arith.constant 1 : index
    %c0_12 = arith.constant 0 : index
    %c0_13 = arith.constant 0 : index
    %13 = vector.load %arg1[%c1, %c0_12, %c0_13] : memref<2x64x128xf32, #tpu.memory_space<vmem>>, vector<1x64x128xf32>
    %14 = vector.shape_cast %13 : vector<1x64x128xf32> to vector<64x128xf32>
    %cst_14 = arith.constant dense<0.000000e+00> : vector<64x128xf32>
    %15 = tpu.matmul %1, %14, %cst_14 {dimension_numbers = #tpu.dot_dimension_numbers<[1], [0], [0], [1], [0, 0, 1, 1], [], []>} : vector<64x64xf32>, vector<64x128xf32>, vector<64x128xf32> -> vector<64x128xf32>
    %c1_15 = arith.constant 1 : index
    %c0_16 = arith.constant 0 : index
    %c0_17 = arith.constant 0 : index
    %16 = vector.load %arg3[%c1_15, %c0_16, %c0_17] : memref<2x1x128xf32, #tpu.memory_space<vmem>>, vector<1x1x128xf32>
    %17 = vector.shape_cast %16 : vector<1x1x128xf32> to vector<1x128xf32>
    %18 = vector.broadcast %17 : vector<1x128xf32> to vector<64x128xf32>
    %19 = arith.addf %15, %18 : vector<64x128xf32>
    %20 = vector.shape_cast %19 : vector<64x128xf32> to vector<8x8x128xf32>
    %c1_18 = arith.constant 1 : index
    %c0_19 = arith.constant 0 : index
    %c0_20 = arith.constant 0 : index
    %c0_21 = arith.constant 0 : index
    %21 = vector.load %arg7[%c1_18, %c0_19, %c0_20, %c0_21] : memref<2x8x8x128xf32, #tpu.memory_space<vmem>>, vector<1x8x8x128xf32>
    %22 = vector.shape_cast %21 : vector<1x8x8x128xf32> to vector<8x8x128xf32>
    %23 = vector.shape_cast %20 : vector<8x8x128xf32> to vector<1x8x8x128xf32>
    tpu.vector_store %arg7[%c1_18, %c0_19, %c0_20, %c0_21], %23 {strides = array<i32>} : memref<2x8x8x128xf32, #tpu.memory_space<vmem>>, vector<1x8x8x128xf32>,
    %c0_22 = arith.constant 0 : index
    %c0_23 = arith.constant 0 : index
    %c0_24 = arith.constant 0 : index
    %24 = vector.load %arg2[%c0_22, %c0_23, %c0_24] : memref<2x32x128xf32, #tpu.memory_space<vmem>>, vector<1x32x128xf32>
    %25 = vector.shape_cast %24 : vector<1x32x128xf32> to vector<32x128xf32>
    %c1_25 = arith.constant 1 : index
    %c0_26 = arith.constant 0 : index
    %c0_27 = arith.constant 0 : index
    %26 = vector.load %arg2[%c1_25, %c0_26, %c0_27] : memref<2x32x128xf32, #tpu.memory_space<vmem>>, vector<1x32x128xf32>
    %27 = vector.shape_cast %26 : vector<1x32x128xf32> to vector<32x128xf32>
    %cst_28 = arith.constant 0.000000e+00 : f32
    %28 = vector.broadcast %cst_28 : f32 to vector<8x32xf32>
    %c0_i32 = arith.constant 0 : i32
    %c1_i32 = arith.constant 1 : i32
    %c0_i32_29 = arith.constant 0 : i32
    %c7_i32 = arith.constant 7 : i32
    %29 = arith.subi %c7_i32, %c0_i32_29 : i32
    %c0_i32_30 = arith.constant 0 : i32
    %c0_i32_31 = arith.constant 0 : i32
    %c0_i32_32 = arith.constant 0 : i32
    %30 = tpu.memref_slice %arg7[%c0_i32, %c0_i32_30, %c0_i32_31, %c0_i32_32] : memref<2x8x8x128xf32, #tpu.memory_space<vmem>> -> memref<1x8x8x128xf32, #tpu.memory_space<vmem>>
    %31 = tpu.memref_squeeze %30 : memref<1x8x8x128xf32, #tpu.memory_space<vmem>> -> memref<8x8x128xf32, #tpu.memory_space<vmem>>
    %32 = arith.index_cast %c0_i32_29 : i32 to index
    %c0_33 = arith.constant 0 : index
    %c0_34 = arith.constant 0 : index
    %33 = vector.load %31[%32, %c0_33, %c0_34] : memref<8x8x128xf32, #tpu.memory_space<vmem>>, vector<1x8x128xf32>
    %34 = vector.shape_cast %33 : vector<1x8x128xf32> to vector<8x128xf32>
    %cst_35 = arith.constant dense<0.000000e+00> : vector<8x128xf32>
    %35 = tpu.matmul %28, %25, %cst_35 {dimension_numbers = #tpu.dot_dimension_numbers<[1], [0], [0], [1], [0, 0, 1, 1], [], []>} : vector<8x32xf32>, vector<32x128xf32>, vector<8x128xf32> -> vector<8x128xf32>
    %36 = arith.addf %34, %35 : vector<8x128xf32>
    %c0_i32_36 = arith.constant 0 : i32
    %c0_i32_37 = arith.constant 0 : i32
    %c0_i32_38 = arith.constant 0 : i32
    %37 = tpu.memref_slice %arg7[%c1_i32, %c0_i32_36, %c0_i32_37, %c0_i32_38] : memref<2x8x8x128xf32, #tpu.memory_space<vmem>> -> memref<1x8x8x128xf32, #tpu.memory_space<vmem>>
    %38 = tpu.memref_squeeze %37 : memref<1x8x8x128xf32, #tpu.memory_space<vmem>> -> memref<8x8x128xf32, #tpu.memory_space<vmem>>
    %39 = arith.index_cast %29 : i32 to index
    %c0_39 = arith.constant 0 : index
    %c0_40 = arith.constant 0 : index
    %40 = vector.load %38[%39, %c0_39, %c0_40] : memref<8x8x128xf32, #tpu.memory_space<vmem>>, vector<1x8x128xf32>
    %41 = vector.shape_cast %40 : vector<1x8x128xf32> to vector<8x128xf32>
    %cst_41 = arith.constant dense<0.000000e+00> : vector<8x128xf32>
    %42 = tpu.matmul %28, %27, %cst_41 {dimension_numbers = #tpu.dot_dimension_numbers<[1], [0], [0], [1], [0, 0, 1, 1], [], []>} : vector<8x32xf32>, vector<32x128xf32>, vector<8x128xf32> -> vector<8x128xf32>
    %43 = arith.addf %41, %42 : vector<8x128xf32>
    %44 = vector.extract_strided_slice %36 {offsets = [0, 0], sizes = [8, 96], strides = [1, 1]} : vector<8x128xf32> to vector<8x96xf32>
    %45 = arith.negf %44 : vector<8x96xf32>
    %46 = math.exp %45 : vector<8x96xf32>
    %cst_42 = arith.constant 1.000000e+00 : f32
    %47 = vector.broadcast %cst_42 : f32 to vector<8x96xf32>
    %48 = arith.addf %47, %46 : vector<8x96xf32>
    %49 = arith.divf %47, %48 : vector<8x96xf32>
    %50 = vector.extract_strided_slice %36 {offsets = [0, 96], sizes = [8, 32], strides = [1, 1]} : vector<8x128xf32> to vector<8x32xf32>
    %51 = math.tanh %50 : vector<8x32xf32>
    %52 = vector.extract_strided_slice %49 {offsets = [0, 0], sizes = [8, 32], strides = [1, 1]} : vector<8x96xf32> to vector<8x32xf32>
    %53 = vector.extract_strided_slice %49 {offsets = [0, 32], sizes = [8, 32], strides = [1, 1]} : vector<8x96xf32> to vector<8x32xf32>
    %54 = vector.extract_strided_slice %49 {offsets = [0, 64], sizes = [8, 32], strides = [1, 1]} : vector<8x96xf32> to vector<8x32xf32>
    %55 = arith.mulf %53, %28 : vector<8x32xf32>
    %56 = arith.mulf %52, %51 : vector<8x32xf32>
    %57 = arith.addf %55, %56 : vector<8x32xf32>
    %58 = math.tanh %57 : vector<8x32xf32>
    %59 = arith.mulf %54, %58 : vector<8x32xf32>
    %60 = vector.extract_strided_slice %43 {offsets = [0, 0], sizes = [8, 96], strides = [1, 1]} : vector<8x128xf32> to vector<8x96xf32>
    %61 = arith.negf %60 : vector<8x96xf32>
    %62 = math.exp %61 : vector<8x96xf32>
    %cst_43 = arith.constant 1.000000e+00 : f32
    %63 = vector.broadcast %cst_43 : f32 to vector<8x96xf32>
    %64 = arith.addf %63, %62 : vector<8x96xf32>
    %65 = arith.divf %63, %64 : vector<8x96xf32>
    %66 = vector.extract_strided_slice %43 {offsets = [0, 96], sizes = [8, 32], strides = [1, 1]} : vector<8x128xf32> to vector<8x32xf32>
    %67 = math.tanh %66 : vector<8x32xf32>
    %68 = vector.extract_strided_slice %65 {offsets = [0, 0], sizes = [8, 32], strides = [1, 1]} : vector<8x96xf32> to vector<8x32xf32>
    %69 = vector.extract_strided_slice %65 {offsets = [0, 32], sizes = [8, 32], strides = [1, 1]} : vector<8x96xf32> to vector<8x32xf32>
    %70 = vector.extract_strided_slice %65 {offsets = [0, 64], sizes = [8, 32], strides = [1, 1]} : vector<8x96xf32> to vector<8x32xf32>
    %71 = arith.mulf %69, %28 : vector<8x32xf32>
    %72 = arith.mulf %68, %67 : vector<8x32xf32>
    %73 = arith.addf %71, %72 : vector<8x32xf32>
    %74 = math.tanh %73 : vector<8x32xf32>
    %75 = arith.mulf %70, %74 : vector<8x32xf32>
    %76 = arith.index_cast %c0_i32_29 : i32 to index
    %c0_44 = arith.constant 0 : index
    %c0_45 = arith.constant 0 : index
    %77 = vector.load %arg4[%76, %c0_44, %c0_45] : memref<8x8x64xf32, #tpu.memory_space<vmem>>, vector<1x8x32xf32>
    %78 = vector.shape_cast %77 : vector<1x8x32xf32> to vector<8x32xf32>
    %79 = vector.shape_cast %59 : vector<8x32xf32> to vector<1x8x32xf32>
    tpu.vector_store %arg4[%76, %c0_44, %c0_45], %79 {strides = array<i32>} : memref<8x8x64xf32, #tpu.memory_space<vmem>>, vector<1x8x32xf32>,
    %80 = arith.index_cast %29 : i32 to index
    %c0_46 = arith.constant 0 : index
    %c32 = arith.constant 32 : index
    %81 = vector.load %arg4[%80, %c0_46, %c32] : memref<8x8x64xf32, #tpu.memory_space<vmem>>, vector<1x8x32xf32>
    %82 = vector.shape_cast %81 : vector<1x8x32xf32> to vector<8x32xf32>
    %83 = vector.shape_cast %75 : vector<8x32xf32> to vector<1x8x32xf32>
    tpu.vector_store %arg4[%80, %c0_46, %c32], %83 {strides = array<i32>} : memref<8x8x64xf32, #tpu.memory_space<vmem>>, vector<1x8x32xf32>,
    %c1_i32_47 = arith.constant 1 : i32
    %c7_i32_48 = arith.constant 7 : i32
    %84 = arith.subi %c7_i32_48, %c1_i32_47 : i32
    %c0_i32_49 = arith.constant 0 : i32
    %c0_i32_50 = arith.constant 0 : i32
    %c0_i32_51 = arith.constant 0 : i32
    %85 = tpu.memref_slice %arg7[%c0_i32, %c0_i32_49, %c0_i32_50, %c0_i32_51] : memref<2x8x8x128xf32, #tpu.memory_space<vmem>> -> memref<1x8x8x128xf32, #tpu.memory_space<vmem>>
    %86 = tpu.memref_squeeze %85 : memref<1x8x8x128xf32, #tpu.memory_space<vmem>> -> memref<8x8x128xf32, #tpu.memory_space<vmem>>
    %87 = arith.index_cast %c1_i32_47 : i32 to index
    %c0_52 = arith.constant 0 : index
    %c0_53 = arith.constant 0 : index
    %88 = vector.load %86[%87, %c0_52, %c0_53] : memref<8x8x128xf32, #tpu.memory_space<vmem>>, vector<1x8x128xf32>
    %89 = vector.shape_cast %88 : vector<1x8x128xf32> to vector<8x128xf32>
    %cst_54 = arith.constant dense<0.000000e+00> : vector<8x128xf32>
    %90 = tpu.matmul %59, %25, %cst_54 {dimension_numbers = #tpu.dot_dimension_numbers<[1], [0], [0], [1], [0, 0, 1, 1], [], []>} : vector<8x32xf32>, vector<32x128xf32>, vector<8x128xf32> -> vector<8x128xf32>
    %91 = arith.addf %89, %90 : vector<8x128xf32>
    %c0_i32_55 = arith.constant 0 : i32
    %c0_i32_56 = arith.constant 0 : i32
    %c0_i32_57 = arith.constant 0 : i32
    %92 = tpu.memref_slice %arg7[%c1_i32, %c0_i32_55, %c0_i32_56, %c0_i32_57] : memref<2x8x8x128xf32, #tpu.memory_space<vmem>> -> memref<1x8x8x128xf32, #tpu.memory_space<vmem>>
    %93 = tpu.memref_squeeze %92 : memref<1x8x8x128xf32, #tpu.memory_space<vmem>> -> memref<8x8x128xf32, #tpu.memory_space<vmem>>
    %94 = arith.index_cast %84 : i32 to index
    %c0_58 = arith.constant 0 : index
    %c0_59 = arith.constant 0 : index
    %95 = vector.load %93[%94, %c0_58, %c0_59] : memref<8x8x128xf32, #tpu.memory_space<vmem>>, vector<1x8x128xf32>
    %96 = vector.shape_cast %95 : vector<1x8x128xf32> to vector<8x128xf32>
    %cst_60 = arith.constant dense<0.000000e+00> : vector<8x128xf32>
    %97 = tpu.matmul %75, %27, %cst_60 {dimension_numbers = #tpu.dot_dimension_numbers<[1], [0], [0], [1], [0, 0, 1, 1], [], []>} : vector<8x32xf32>, vector<32x128xf32>, vector<8x128xf32> -> vector<8x128xf32>
    %98 = arith.addf %96, %97 : vector<8x128xf32>
    %99 = vector.extract_strided_slice %91 {offsets = [0, 0], sizes = [8, 96], strides = [1, 1]} : vector<8x128xf32> to vector<8x96xf32>
    %100 = arith.negf %99 : vector<8x96xf32>
    %101 = math.exp %100 : vector<8x96xf32>
    %cst_61 = arith.constant 1.000000e+00 : f32
    %102 = vector.broadcast %cst_61 : f32 to vector<8x96xf32>
    %103 = arith.addf %102, %101 : vector<8x96xf32>
    %104 = arith.divf %102, %103 : vector<8x96xf32>
    %105 = vector.extract_strided_slice %91 {offsets = [0, 96], sizes = [8, 32], strides = [1, 1]} : vector<8x128xf32> to vector<8x32xf32>
    %106 = math.tanh %105 : vector<8x32xf32>
    %107 = vector.extract_strided_slice %104 {offsets = [0, 0], sizes = [8, 32], strides = [1, 1]} : vector<8x96xf32> to vector<8x32xf32>
    %108 = vector.extract_strided_slice %104 {offsets = [0, 32], sizes = [8, 32], strides = [1, 1]} : vector<8x96xf32> to vector<8x32xf32>
    %109 = vector.extract_strided_slice %104 {offsets = [0, 64], sizes = [8, 32], strides = [1, 1]} : vector<8x96xf32> to vector<8x32xf32>
    %110 = arith.mulf %108, %57 : vector<8x32xf32>
    %111 = arith.mulf %107, %106 : vector<8x32xf32>
    %112 = arith.addf %110, %111 : vector<8x32xf32>
    %113 = math.tanh %112 : vector<8x32xf32>
    %114 = arith.mulf %109, %113 : vector<8x32xf32>
    %115 = vector.extract_strided_slice %98 {offsets = [0, 0], sizes = [8, 96], strides = [1, 1]} : vector<8x128xf32> to vector<8x96xf32>
    %116 = arith.negf %115 : vector<8x96xf32>
    %117 = math.exp %116 : vector<8x96xf32>
    %cst_62 = arith.constant 1.000000e+00 : f32
    %118 = vector.broadcast %cst_62 : f32 to vector<8x96xf32>
    %119 = arith.addf %118, %117 : vector<8x96xf32>
    %120 = arith.divf %118, %119 : vector<8x96xf32>
    %121 = vector.extract_strided_slice %98 {offsets = [0, 96], sizes = [8, 32], strides = [1, 1]} : vector<8x128xf32> to vector<8x32xf32>
    %122 = math.tanh %121 : vector<8x32xf32>
    %123 = vector.extract_strided_slice %120 {offsets = [0, 0], sizes = [8, 32], strides = [1, 1]} : vector<8x96xf32> to vector<8x32xf32>
    %124 = vector.extract_strided_slice %120 {offsets = [0, 32], sizes = [8, 32], strides = [1, 1]} : vector<8x96xf32> to vector<8x32xf32>
    %125 = vector.extract_strided_slice %120 {offsets = [0, 64], sizes = [8, 32], strides = [1, 1]} : vector<8x96xf32> to vector<8x32xf32>
    %126 = arith.mulf %124, %73 : vector<8x32xf32>
    %127 = arith.mulf %123, %122 : vector<8x32xf32>
    %128 = arith.addf %126, %127 : vector<8x32xf32>
    %129 = math.tanh %128 : vector<8x32xf32>
    %130 = arith.mulf %125, %129 : vector<8x32xf32>
    %131 = arith.index_cast %c1_i32_47 : i32 to index
    %c0_63 = arith.constant 0 : index
    %c0_64 = arith.constant 0 : index
    %132 = vector.load %arg4[%131, %c0_63, %c0_64] : memref<8x8x64xf32, #tpu.memory_space<vmem>>, vector<1x8x32xf32>
    %133 = vector.shape_cast %132 : vector<1x8x32xf32> to vector<8x32xf32>
    %134 = vector.shape_cast %114 : vector<8x32xf32> to vector<1x8x32xf32>
    tpu.vector_store %arg4[%131, %c0_63, %c0_64], %134 {strides = array<i32>} : memref<8x8x64xf32, #tpu.memory_space<vmem>>, vector<1x8x32xf32>,
    %135 = arith.index_cast %84 : i32 to index
    %c0_65 = arith.constant 0 : index
    %c32_66 = arith.constant 32 : index
    %136 = vector.load %arg4[%135, %c0_65, %c32_66] : memref<8x8x64xf32, #tpu.memory_space<vmem>>, vector<1x8x32xf32>
    %137 = vector.shape_cast %136 : vector<1x8x32xf32> to vector<8x32xf32>
    %138 = vector.shape_cast %130 : vector<8x32xf32> to vector<1x8x32xf32>
    tpu.vector_store %arg4[%135, %c0_65, %c32_66], %138 {strides = array<i32>} : memref<8x8x64xf32, #tpu.memory_space<vmem>>, vector<1x8x32xf32>,
    %c2_i32 = arith.constant 2 : i32
    %c7_i32_67 = arith.constant 7 : i32
    %139 = arith.subi %c7_i32_67, %c2_i32 : i32
    %c0_i32_68 = arith.constant 0 : i32
    %c0_i32_69 = arith.constant 0 : i32
    %c0_i32_70 = arith.constant 0 : i32
    %140 = tpu.memref_slice %arg7[%c0_i32, %c0_i32_68, %c0_i32_69, %c0_i32_70] : memref<2x8x8x128xf32, #tpu.memory_space<vmem>> -> memref<1x8x8x128xf32, #tpu.memory_space<vmem>>
    %141 = tpu.memref_squeeze %140 : memref<1x8x8x128xf32, #tpu.memory_space<vmem>> -> memref<8x8x128xf32, #tpu.memory_space<vmem>>
    %142 = arith.index_cast %c2_i32 : i32 to index
    %c0_71 = arith.constant 0 : index
    %c0_72 = arith.constant 0 : index
    %143 = vector.load %141[%142, %c0_71, %c0_72] : memref<8x8x128xf32, #tpu.memory_space<vmem>>, vector<1x8x128xf32>
    %144 = vector.shape_cast %143 : vector<1x8x128xf32> to vector<8x128xf32>
    %cst_73 = arith.constant dense<0.000000e+00> : vector<8x128xf32>
    %145 = tpu.matmul %114, %25, %cst_73 {dimension_numbers = #tpu.dot_dimension_numbers<[1], [0], [0], [1], [0, 0, 1, 1], [], []>} : vector<8x32xf32>, vector<32x128xf32>, vector<8x128xf32> -> vector<8x128xf32>
    %146 = arith.addf %144, %145 : vector<8x128xf32>
    %c0_i32_74 = arith.constant 0 : i32
    %c0_i32_75 = arith.constant 0 : i32
    %c0_i32_76 = arith.constant 0 : i32
    %147 = tpu.memref_slice %arg7[%c1_i32, %c0_i32_74, %c0_i32_75, %c0_i32_76] : memref<2x8x8x128xf32, #tpu.memory_space<vmem>> -> memref<1x8x8x128xf32, #tpu.memory_space<vmem>>
    %148 = tpu.memref_squeeze %147 : memref<1x8x8x128xf32, #tpu.memory_space<vmem>> -> memref<8x8x128xf32, #tpu.memory_space<vmem>>
    %149 = arith.index_cast %139 : i32 to index
    %c0_77 = arith.constant 0 : index
    %c0_78 = arith.constant 0 : index
    %150 = vector.load %148[%149, %c0_77, %c0_78] : memref<8x8x128xf32, #tpu.memory_space<vmem>>, vector<1x8x128xf32>
    %151 = vector.shape_cast %150 : vector<1x8x128xf32> to vector<8x128xf32>
    %cst_79 = arith.constant dense<0.000000e+00> : vector<8x128xf32>
    %152 = tpu.matmul %130, %27, %cst_79 {dimension_numbers = #tpu.dot_dimension_numbers<[1], [0], [0], [1], [0, 0, 1, 1], [], []>} : vector<8x32xf32>, vector<32x128xf32>, vector<8x128xf32> -> vector<8x128xf32>
    %153 = arith.addf %151, %152 : vector<8x128xf32>
    %154 = vector.extract_strided_slice %146 {offsets = [0, 0], sizes = [8, 96], strides = [1, 1]} : vector<8x128xf32> to vector<8x96xf32>
    %155 = arith.negf %154 : vector<8x96xf32>
    %156 = math.exp %155 : vector<8x96xf32>
    %cst_80 = arith.constant 1.000000e+00 : f32
    %157 = vector.broadcast %cst_80 : f32 to vector<8x96xf32>
    %158 = arith.addf %157, %156 : vector<8x96xf32>
    %159 = arith.divf %157, %158 : vector<8x96xf32>
    %160 = vector.extract_strided_slice %146 {offsets = [0, 96], sizes = [8, 32], strides = [1, 1]} : vector<8x128xf32> to vector<8x32xf32>
    %161 = math.tanh %160 : vector<8x32xf32>
    %162 = vector.extract_strided_slice %159 {offsets = [0, 0], sizes = [8, 32], strides = [1, 1]} : vector<8x96xf32> to vector<8x32xf32>
    %163 = vector.extract_strided_slice %159 {offsets = [0, 32], sizes = [8, 32], strides = [1, 1]} : vector<8x96xf32> to vector<8x32xf32>
    %164 = vector.extract_strided_slice %159 {offsets = [0, 64], sizes = [8, 32], strides = [1, 1]} : vector<8x96xf32> to vector<8x32xf32>
    %165 = arith.mulf %163, %112 : vector<8x32xf32>
    %166 = arith.mulf %162, %161 : vector<8x32xf32>
    %167 = arith.addf %165, %166 : vector<8x32xf32>
    %168 = math.tanh %167 : vector<8x32xf32>
    %169 = arith.mulf %164, %168 : vector<8x32xf32>
    %170 = vector.extract_strided_slice %153 {offsets = [0, 0], sizes = [8, 96], strides = [1, 1]} : vector<8x128xf32> to vector<8x96xf32>
    %171 = arith.negf %170 : vector<8x96xf32>
    %172 = math.exp %171 : vector<8x96xf32>
    %cst_81 = arith.constant 1.000000e+00 : f32
    %173 = vector.broadcast %cst_81 : f32 to vector<8x96xf32>
    %174 = arith.addf %173, %172 : vector<8x96xf32>
    %175 = arith.divf %173, %174 : vector<8x96xf32>
    %176 = vector.extract_strided_slice %153 {offsets = [0, 96], sizes = [8, 32], strides = [1, 1]} : vector<8x128xf32> to vector<8x32xf32>
    %177 = math.tanh %176 : vector<8x32xf32>
    %178 = vector.extract_strided_slice %175 {offsets = [0, 0], sizes = [8, 32], strides = [1, 1]} : vector<8x96xf32> to vector<8x32xf32>
    %179 = vector.extract_strided_slice %175 {offsets = [0, 32], sizes = [8, 32], strides = [1, 1]} : vector<8x96xf32> to vector<8x32xf32>
    %180 = vector.extract_strided_slice %175 {offsets = [0, 64], sizes = [8, 32], strides = [1, 1]} : vector<8x96xf32> to vector<8x32xf32>
    %181 = arith.mulf %179, %128 : vector<8x32xf32>
    %182 = arith.mulf %178, %177 : vector<8x32xf32>
    %183 = arith.addf %181, %182 : vector<8x32xf32>
    %184 = math.tanh %183 : vector<8x32xf32>
    %185 = arith.mulf %180, %184 : vector<8x32xf32>
    %186 = arith.index_cast %c2_i32 : i32 to index
    %c0_82 = arith.constant 0 : index
    %c0_83 = arith.constant 0 : index
    %187 = vector.load %arg4[%186, %c0_82, %c0_83] : memref<8x8x64xf32, #tpu.memory_space<vmem>>, vector<1x8x32xf32>
    %188 = vector.shape_cast %187 : vector<1x8x32xf32> to vector<8x32xf32>
    %189 = vector.shape_cast %169 : vector<8x32xf32> to vector<1x8x32xf32>
    tpu.vector_store %arg4[%186, %c0_82, %c0_83], %189 {strides = array<i32>} : memref<8x8x64xf32, #tpu.memory_space<vmem>>, vector<1x8x32xf32>,
    %190 = arith.index_cast %139 : i32 to index
    %c0_84 = arith.constant 0 : index
    %c32_85 = arith.constant 32 : index
    %191 = vector.load %arg4[%190, %c0_84, %c32_85] : memref<8x8x64xf32, #tpu.memory_space<vmem>>, vector<1x8x32xf32>
    %192 = vector.shape_cast %191 : vector<1x8x32xf32> to vector<8x32xf32>
    %193 = vector.shape_cast %185 : vector<8x32xf32> to vector<1x8x32xf32>
    tpu.vector_store %arg4[%190, %c0_84, %c32_85], %193 {strides = array<i32>} : memref<8x8x64xf32, #tpu.memory_space<vmem>>, vector<1x8x32xf32>,
    %c3_i32 = arith.constant 3 : i32
    %c7_i32_86 = arith.constant 7 : i32
    %194 = arith.subi %c7_i32_86, %c3_i32 : i32
    %c0_i32_87 = arith.constant 0 : i32
    %c0_i32_88 = arith.constant 0 : i32
    %c0_i32_89 = arith.constant 0 : i32
    %195 = tpu.memref_slice %arg7[%c0_i32, %c0_i32_87, %c0_i32_88, %c0_i32_89] : memref<2x8x8x128xf32, #tpu.memory_space<vmem>> -> memref<1x8x8x128xf32, #tpu.memory_space<vmem>>
    %196 = tpu.memref_squeeze %195 : memref<1x8x8x128xf32, #tpu.memory_space<vmem>> -> memref<8x8x128xf32, #tpu.memory_space<vmem>>
    %197 = arith.index_cast %c3_i32 : i32 to index
    %c0_90 = arith.constant 0 : index
    %c0_91 = arith.constant 0 : index
    %198 = vector.load %196[%197, %c0_90, %c0_91] : memref<8x8x128xf32, #tpu.memory_space<vmem>>, vector<1x8x128xf32>
    %199 = vector.shape_cast %198 : vector<1x8x128xf32> to vector<8x128xf32>
    %cst_92 = arith.constant dense<0.000000e+00> : vector<8x128xf32>
    %200 = tpu.matmul %169, %25, %cst_92 {dimension_numbers = #tpu.dot_dimension_numbers<[1], [0], [0], [1], [0, 0, 1, 1], [], []>} : vector<8x32xf32>, vector<32x128xf32>, vector<8x128xf32> -> vector<8x128xf32>
    %201 = arith.addf %199, %200 : vector<8x128xf32>
    %c0_i32_93 = arith.constant 0 : i32
    %c0_i32_94 = arith.constant 0 : i32
    %c0_i32_95 = arith.constant 0 : i32
    %202 = tpu.memref_slice %arg7[%c1_i32, %c0_i32_93, %c0_i32_94, %c0_i32_95] : memref<2x8x8x128xf32, #tpu.memory_space<vmem>> -> memref<1x8x8x128xf32, #tpu.memory_space<vmem>>
    %203 = tpu.memref_squeeze %202 : memref<1x8x8x128xf32, #tpu.memory_space<vmem>> -> memref<8x8x128xf32, #tpu.memory_space<vmem>>
    %204 = arith.index_cast %194 : i32 to index
    %c0_96 = arith.constant 0 : index
    %c0_97 = arith.constant 0 : index
    %205 = vector.load %203[%204, %c0_96, %c0_97] : memref<8x8x128xf32, #tpu.memory_space<vmem>>, vector<1x8x128xf32>
    %206 = vector.shape_cast %205 : vector<1x8x128xf32> to vector<8x128xf32>
    %cst_98 = arith.constant dense<0.000000e+00> : vector<8x128xf32>
    %207 = tpu.matmul %185, %27, %cst_98 {dimension_numbers = #tpu.dot_dimension_numbers<[1], [0], [0], [1], [0, 0, 1, 1], [], []>} : vector<8x32xf32>, vector<32x128xf32>, vector<8x128xf32> -> vector<8x128xf32>
    %208 = arith.addf %206, %207 : vector<8x128xf32>
    %209 = vector.extract_strided_slice %201 {offsets = [0, 0], sizes = [8, 96], strides = [1, 1]} : vector<8x128xf32> to vector<8x96xf32>
    %210 = arith.negf %209 : vector<8x96xf32>
    %211 = math.exp %210 : vector<8x96xf32>
    %cst_99 = arith.constant 1.000000e+00 : f32
    %212 = vector.broadcast %cst_99 : f32 to vector<8x96xf32>
    %213 = arith.addf %212, %211 : vector<8x96xf32>
    %214 = arith.divf %212, %213 : vector<8x96xf32>
    %215 = vector.extract_strided_slice %201 {offsets = [0, 96], sizes = [8, 32], strides = [1, 1]} : vector<8x128xf32> to vector<8x32xf32>
    %216 = math.tanh %215 : vector<8x32xf32>
    %217 = vector.extract_strided_slice %214 {offsets = [0, 0], sizes = [8, 32], strides = [1, 1]} : vector<8x96xf32> to vector<8x32xf32>
    %218 = vector.extract_strided_slice %214 {offsets = [0, 32], sizes = [8, 32], strides = [1, 1]} : vector<8x96xf32> to vector<8x32xf32>
    %219 = vector.extract_strided_slice %214 {offsets = [0, 64], sizes = [8, 32], strides = [1, 1]} : vector<8x96xf32> to vector<8x32xf32>
    %220 = arith.mulf %218, %167 : vector<8x32xf32>
    %221 = arith.mulf %217, %216 : vector<8x32xf32>
    %222 = arith.addf %220, %221 : vector<8x32xf32>
    %223 = math.tanh %222 : vector<8x32xf32>
    %224 = arith.mulf %219, %223 : vector<8x32xf32>
    %225 = vector.extract_strided_slice %208 {offsets = [0, 0], sizes = [8, 96], strides = [1, 1]} : vector<8x128xf32> to vector<8x96xf32>
    %226 = arith.negf %225 : vector<8x96xf32>
    %227 = math.exp %226 : vector<8x96xf32>
    %cst_100 = arith.constant 1.000000e+00 : f32
    %228 = vector.broadcast %cst_100 : f32 to vector<8x96xf32>
    %229 = arith.addf %228, %227 : vector<8x96xf32>
    %230 = arith.divf %228, %229 : vector<8x96xf32>
    %231 = vector.extract_strided_slice %208 {offsets = [0, 96], sizes = [8, 32], strides = [1, 1]} : vector<8x128xf32> to vector<8x32xf32>
    %232 = math.tanh %231 : vector<8x32xf32>
    %233 = vector.extract_strided_slice %230 {offsets = [0, 0], sizes = [8, 32], strides = [1, 1]} : vector<8x96xf32> to vector<8x32xf32>
    %234 = vector.extract_strided_slice %230 {offsets = [0, 32], sizes = [8, 32], strides = [1, 1]} : vector<8x96xf32> to vector<8x32xf32>
    %235 = vector.extract_strided_slice %230 {offsets = [0, 64], sizes = [8, 32], strides = [1, 1]} : vector<8x96xf32> to vector<8x32xf32>
    %236 = arith.mulf %234, %183 : vector<8x32xf32>
    %237 = arith.mulf %233, %232 : vector<8x32xf32>
    %238 = arith.addf %236, %237 : vector<8x32xf32>
    %239 = math.tanh %238 : vector<8x32xf32>
    %240 = arith.mulf %235, %239 : vector<8x32xf32>
    %241 = arith.index_cast %c3_i32 : i32 to index
    %c0_101 = arith.constant 0 : index
    %c0_102 = arith.constant 0 : index
    %242 = vector.load %arg4[%241, %c0_101, %c0_102] : memref<8x8x64xf32, #tpu.memory_space<vmem>>, vector<1x8x32xf32>
    %243 = vector.shape_cast %242 : vector<1x8x32xf32> to vector<8x32xf32>
    %244 = vector.shape_cast %224 : vector<8x32xf32> to vector<1x8x32xf32>
    tpu.vector_store %arg4[%241, %c0_101, %c0_102], %244 {strides = array<i32>} : memref<8x8x64xf32, #tpu.memory_space<vmem>>, vector<1x8x32xf32>,
    %245 = arith.index_cast %194 : i32 to index
    %c0_103 = arith.constant 0 : index
    %c32_104 = arith.constant 32 : index
    %246 = vector.load %arg4[%245, %c0_103, %c32_104] : memref<8x8x64xf32, #tpu.memory_space<vmem>>, vector<1x8x32xf32>
    %247 = vector.shape_cast %246 : vector<1x8x32xf32> to vector<8x32xf32>
    %248 = vector.shape_cast %240 : vector<8x32xf32> to vector<1x8x32xf32>
    tpu.vector_store %arg4[%245, %c0_103, %c32_104], %248 {strides = array<i32>} : memref<8x8x64xf32, #tpu.memory_space<vmem>>, vector<1x8x32xf32>,
    %c4_i32 = arith.constant 4 : i32
    %c7_i32_105 = arith.constant 7 : i32
    %249 = arith.subi %c7_i32_105, %c4_i32 : i32
    %c0_i32_106 = arith.constant 0 : i32
    %c0_i32_107 = arith.constant 0 : i32
    %c0_i32_108 = arith.constant 0 : i32
    %250 = tpu.memref_slice %arg7[%c0_i32, %c0_i32_106, %c0_i32_107, %c0_i32_108] : memref<2x8x8x128xf32, #tpu.memory_space<vmem>> -> memref<1x8x8x128xf32, #tpu.memory_space<vmem>>
    %251 = tpu.memref_squeeze %250 : memref<1x8x8x128xf32, #tpu.memory_space<vmem>> -> memref<8x8x128xf32, #tpu.memory_space<vmem>>
    %252 = arith.index_cast %c4_i32 : i32 to index
    %c0_109 = arith.constant 0 : index
    %c0_110 = arith.constant 0 : index
    %253 = vector.load %251[%252, %c0_109, %c0_110] : memref<8x8x128xf32, #tpu.memory_space<vmem>>, vector<1x8x128xf32>
    %254 = vector.shape_cast %253 : vector<1x8x128xf32> to vector<8x128xf32>
    %cst_111 = arith.constant dense<0.000000e+00> : vector<8x128xf32>
    %255 = tpu.matmul %224, %25, %cst_111 {dimension_numbers = #tpu.dot_dimension_numbers<[1], [0], [0], [1], [0, 0, 1, 1], [], []>} : vector<8x32xf32>, vector<32x128xf32>, vector<8x128xf32> -> vector<8x128xf32>
    %256 = arith.addf %254, %255 : vector<8x128xf32>
    %c0_i32_112 = arith.constant 0 : i32
    %c0_i32_113 = arith.constant 0 : i32
    %c0_i32_114 = arith.constant 0 : i32
    %257 = tpu.memref_slice %arg7[%c1_i32, %c0_i32_112, %c0_i32_113, %c0_i32_114] : memref<2x8x8x128xf32, #tpu.memory_space<vmem>> -> memref<1x8x8x128xf32, #tpu.memory_space<vmem>>
    %258 = tpu.memref_squeeze %257 : memref<1x8x8x128xf32, #tpu.memory_space<vmem>> -> memref<8x8x128xf32, #tpu.memory_space<vmem>>
    %259 = arith.index_cast %249 : i32 to index
    %c0_115 = arith.constant 0 : index
    %c0_116 = arith.constant 0 : index
    %260 = vector.load %258[%259, %c0_115, %c0_116] : memref<8x8x128xf32, #tpu.memory_space<vmem>>, vector<1x8x128xf32>
    %261 = vector.shape_cast %260 : vector<1x8x128xf32> to vector<8x128xf32>
    %cst_117 = arith.constant dense<0.000000e+00> : vector<8x128xf32>
    %262 = tpu.matmul %240, %27, %cst_117 {dimension_numbers = #tpu.dot_dimension_numbers<[1], [0], [0], [1], [0, 0, 1, 1], [], []>} : vector<8x32xf32>, vector<32x128xf32>, vector<8x128xf32> -> vector<8x128xf32>
    %263 = arith.addf %261, %262 : vector<8x128xf32>
    %264 = vector.extract_strided_slice %256 {offsets = [0, 0], sizes = [8, 96], strides = [1, 1]} : vector<8x128xf32> to vector<8x96xf32>
    %265 = arith.negf %264 : vector<8x96xf32>
    %266 = math.exp %265 : vector<8x96xf32>
    %cst_118 = arith.constant 1.000000e+00 : f32
    %267 = vector.broadcast %cst_118 : f32 to vector<8x96xf32>
    %268 = arith.addf %267, %266 : vector<8x96xf32>
    %269 = arith.divf %267, %268 : vector<8x96xf32>
    %270 = vector.extract_strided_slice %256 {offsets = [0, 96], sizes = [8, 32], strides = [1, 1]} : vector<8x128xf32> to vector<8x32xf32>
    %271 = math.tanh %270 : vector<8x32xf32>
    %272 = vector.extract_strided_slice %269 {offsets = [0, 0], sizes = [8, 32], strides = [1, 1]} : vector<8x96xf32> to vector<8x32xf32>
    %273 = vector.extract_strided_slice %269 {offsets = [0, 32], sizes = [8, 32], strides = [1, 1]} : vector<8x96xf32> to vector<8x32xf32>
    %274 = vector.extract_strided_slice %269 {offsets = [0, 64], sizes = [8, 32], strides = [1, 1]} : vector<8x96xf32> to vector<8x32xf32>
    %275 = arith.mulf %273, %222 : vector<8x32xf32>
    %276 = arith.mulf %272, %271 : vector<8x32xf32>
    %277 = arith.addf %275, %276 : vector<8x32xf32>
    %278 = math.tanh %277 : vector<8x32xf32>
    %279 = arith.mulf %274, %278 : vector<8x32xf32>
    %280 = vector.extract_strided_slice %263 {offsets = [0, 0], sizes = [8, 96], strides = [1, 1]} : vector<8x128xf32> to vector<8x96xf32>
    %281 = arith.negf %280 : vector<8x96xf32>
    %282 = math.exp %281 : vector<8x96xf32>
    %cst_119 = arith.constant 1.000000e+00 : f32
    %283 = vector.broadcast %cst_119 : f32 to vector<8x96xf32>
    %284 = arith.addf %283, %282 : vector<8x96xf32>
    %285 = arith.divf %283, %284 : vector<8x96xf32>
    %286 = vector.extract_strided_slice %263 {offsets = [0, 96], sizes = [8, 32], strides = [1, 1]} : vector<8x128xf32> to vector<8x32xf32>
    %287 = math.tanh %286 : vector<8x32xf32>
    %288 = vector.extract_strided_slice %285 {offsets = [0, 0], sizes = [8, 32], strides = [1, 1]} : vector<8x96xf32> to vector<8x32xf32>
    %289 = vector.extract_strided_slice %285 {offsets = [0, 32], sizes = [8, 32], strides = [1, 1]} : vector<8x96xf32> to vector<8x32xf32>
    %290 = vector.extract_strided_slice %285 {offsets = [0, 64], sizes = [8, 32], strides = [1, 1]} : vector<8x96xf32> to vector<8x32xf32>
    %291 = arith.mulf %289, %238 : vector<8x32xf32>
    %292 = arith.mulf %288, %287 : vector<8x32xf32>
    %293 = arith.addf %291, %292 : vector<8x32xf32>
    %294 = math.tanh %293 : vector<8x32xf32>
    %295 = arith.mulf %290, %294 : vector<8x32xf32>
    %296 = arith.index_cast %c4_i32 : i32 to index
    %c0_120 = arith.constant 0 : index
    %c0_121 = arith.constant 0 : index
    %297 = vector.load %arg4[%296, %c0_120, %c0_121] : memref<8x8x64xf32, #tpu.memory_space<vmem>>, vector<1x8x32xf32>
    %298 = vector.shape_cast %297 : vector<1x8x32xf32> to vector<8x32xf32>
    %299 = vector.shape_cast %279 : vector<8x32xf32> to vector<1x8x32xf32>
    tpu.vector_store %arg4[%296, %c0_120, %c0_121], %299 {strides = array<i32>} : memref<8x8x64xf32, #tpu.memory_space<vmem>>, vector<1x8x32xf32>,
    %300 = arith.index_cast %249 : i32 to index
    %c0_122 = arith.constant 0 : index
    %c32_123 = arith.constant 32 : index
    %301 = vector.load %arg4[%300, %c0_122, %c32_123] : memref<8x8x64xf32, #tpu.memory_space<vmem>>, vector<1x8x32xf32>
    %302 = vector.shape_cast %301 : vector<1x8x32xf32> to vector<8x32xf32>
    %303 = vector.shape_cast %295 : vector<8x32xf32> to vector<1x8x32xf32>
    tpu.vector_store %arg4[%300, %c0_122, %c32_123], %303 {strides = array<i32>} : memref<8x8x64xf32, #tpu.memory_space<vmem>>, vector<1x8x32xf32>,
    %c5_i32 = arith.constant 5 : i32
    %c7_i32_124 = arith.constant 7 : i32
    %304 = arith.subi %c7_i32_124, %c5_i32 : i32
    %c0_i32_125 = arith.constant 0 : i32
    %c0_i32_126 = arith.constant 0 : i32
    %c0_i32_127 = arith.constant 0 : i32
    %305 = tpu.memref_slice %arg7[%c0_i32, %c0_i32_125, %c0_i32_126, %c0_i32_127] : memref<2x8x8x128xf32, #tpu.memory_space<vmem>> -> memref<1x8x8x128xf32, #tpu.memory_space<vmem>>
    %306 = tpu.memref_squeeze %305 : memref<1x8x8x128xf32, #tpu.memory_space<vmem>> -> memref<8x8x128xf32, #tpu.memory_space<vmem>>
    %307 = arith.index_cast %c5_i32 : i32 to index
    %c0_128 = arith.constant 0 : index
    %c0_129 = arith.constant 0 : index
    %308 = vector.load %306[%307, %c0_128, %c0_129] : memref<8x8x128xf32, #tpu.memory_space<vmem>>, vector<1x8x128xf32>
    %309 = vector.shape_cast %308 : vector<1x8x128xf32> to vector<8x128xf32>
    %cst_130 = arith.constant dense<0.000000e+00> : vector<8x128xf32>
    %310 = tpu.matmul %279, %25, %cst_130 {dimension_numbers = #tpu.dot_dimension_numbers<[1], [0], [0], [1], [0, 0, 1, 1], [], []>} : vector<8x32xf32>, vector<32x128xf32>, vector<8x128xf32> -> vector<8x128xf32>
    %311 = arith.addf %309, %310 : vector<8x128xf32>
    %c0_i32_131 = arith.constant 0 : i32
    %c0_i32_132 = arith.constant 0 : i32
    %c0_i32_133 = arith.constant 0 : i32
    %312 = tpu.memref_slice %arg7[%c1_i32, %c0_i32_131, %c0_i32_132, %c0_i32_133] : memref<2x8x8x128xf32, #tpu.memory_space<vmem>> -> memref<1x8x8x128xf32, #tpu.memory_space<vmem>>
    %313 = tpu.memref_squeeze %312 : memref<1x8x8x128xf32, #tpu.memory_space<vmem>> -> memref<8x8x128xf32, #tpu.memory_space<vmem>>
    %314 = arith.index_cast %304 : i32 to index
    %c0_134 = arith.constant 0 : index
    %c0_135 = arith.constant 0 : index
    %315 = vector.load %313[%314, %c0_134, %c0_135] : memref<8x8x128xf32, #tpu.memory_space<vmem>>, vector<1x8x128xf32>
    %316 = vector.shape_cast %315 : vector<1x8x128xf32> to vector<8x128xf32>
    %cst_136 = arith.constant dense<0.000000e+00> : vector<8x128xf32>
    %317 = tpu.matmul %295, %27, %cst_136 {dimension_numbers = #tpu.dot_dimension_numbers<[1], [0], [0], [1], [0, 0, 1, 1], [], []>} : vector<8x32xf32>, vector<32x128xf32>, vector<8x128xf32> -> vector<8x128xf32>
    %318 = arith.addf %316, %317 : vector<8x128xf32>
    %319 = vector.extract_strided_slice %311 {offsets = [0, 0], sizes = [8, 96], strides = [1, 1]} : vector<8x128xf32> to vector<8x96xf32>
    %320 = arith.negf %319 : vector<8x96xf32>
    %321 = math.exp %320 : vector<8x96xf32>
    %cst_137 = arith.constant 1.000000e+00 : f32
    %322 = vector.broadcast %cst_137 : f32 to vector<8x96xf32>
    %323 = arith.addf %322, %321 : vector<8x96xf32>
    %324 = arith.divf %322, %323 : vector<8x96xf32>
    %325 = vector.extract_strided_slice %311 {offsets = [0, 96], sizes = [8, 32], strides = [1, 1]} : vector<8x128xf32> to vector<8x32xf32>
    %326 = math.tanh %325 : vector<8x32xf32>
    %327 = vector.extract_strided_slice %324 {offsets = [0, 0], sizes = [8, 32], strides = [1, 1]} : vector<8x96xf32> to vector<8x32xf32>
    %328 = vector.extract_strided_slice %324 {offsets = [0, 32], sizes = [8, 32], strides = [1, 1]} : vector<8x96xf32> to vector<8x32xf32>
    %329 = vector.extract_strided_slice %324 {offsets = [0, 64], sizes = [8, 32], strides = [1, 1]} : vector<8x96xf32> to vector<8x32xf32>
    %330 = arith.mulf %328, %277 : vector<8x32xf32>
    %331 = arith.mulf %327, %326 : vector<8x32xf32>
    %332 = arith.addf %330, %331 : vector<8x32xf32>
    %333 = math.tanh %332 : vector<8x32xf32>
    %334 = arith.mulf %329, %333 : vector<8x32xf32>
    %335 = vector.extract_strided_slice %318 {offsets = [0, 0], sizes = [8, 96], strides = [1, 1]} : vector<8x128xf32> to vector<8x96xf32>
    %336 = arith.negf %335 : vector<8x96xf32>
    %337 = math.exp %336 : vector<8x96xf32>
    %cst_138 = arith.constant 1.000000e+00 : f32
    %338 = vector.broadcast %cst_138 : f32 to vector<8x96xf32>
    %339 = arith.addf %338, %337 : vector<8x96xf32>
    %340 = arith.divf %338, %339 : vector<8x96xf32>
    %341 = vector.extract_strided_slice %318 {offsets = [0, 96], sizes = [8, 32], strides = [1, 1]} : vector<8x128xf32> to vector<8x32xf32>
    %342 = math.tanh %341 : vector<8x32xf32>
    %343 = vector.extract_strided_slice %340 {offsets = [0, 0], sizes = [8, 32], strides = [1, 1]} : vector<8x96xf32> to vector<8x32xf32>
    %344 = vector.extract_strided_slice %340 {offsets = [0, 32], sizes = [8, 32], strides = [1, 1]} : vector<8x96xf32> to vector<8x32xf32>
    %345 = vector.extract_strided_slice %340 {offsets = [0, 64], sizes = [8, 32], strides = [1, 1]} : vector<8x96xf32> to vector<8x32xf32>
    %346 = arith.mulf %344, %293 : vector<8x32xf32>
    %347 = arith.mulf %343, %342 : vector<8x32xf32>
    %348 = arith.addf %346, %347 : vector<8x32xf32>
    %349 = math.tanh %348 : vector<8x32xf32>
    %350 = arith.mulf %345, %349 : vector<8x32xf32>
    %351 = arith.index_cast %c5_i32 : i32 to index
    %c0_139 = arith.constant 0 : index
    %c0_140 = arith.constant 0 : index
    %352 = vector.load %arg4[%351, %c0_139, %c0_140] : memref<8x8x64xf32, #tpu.memory_space<vmem>>, vector<1x8x32xf32>
    %353 = vector.shape_cast %352 : vector<1x8x32xf32> to vector<8x32xf32>
    %354 = vector.shape_cast %334 : vector<8x32xf32> to vector<1x8x32xf32>
    tpu.vector_store %arg4[%351, %c0_139, %c0_140], %354 {strides = array<i32>} : memref<8x8x64xf32, #tpu.memory_space<vmem>>, vector<1x8x32xf32>,
    %355 = arith.index_cast %304 : i32 to index
    %c0_141 = arith.constant 0 : index
    %c32_142 = arith.constant 32 : index
    %356 = vector.load %arg4[%355, %c0_141, %c32_142] : memref<8x8x64xf32, #tpu.memory_space<vmem>>, vector<1x8x32xf32>
    %357 = vector.shape_cast %356 : vector<1x8x32xf32> to vector<8x32xf32>
    %358 = vector.shape_cast %350 : vector<8x32xf32> to vector<1x8x32xf32>
    tpu.vector_store %arg4[%355, %c0_141, %c32_142], %358 {strides = array<i32>} : memref<8x8x64xf32, #tpu.memory_space<vmem>>, vector<1x8x32xf32>,
    %c6_i32 = arith.constant 6 : i32
    %c7_i32_143 = arith.constant 7 : i32
    %359 = arith.subi %c7_i32_143, %c6_i32 : i32
    %c0_i32_144 = arith.constant 0 : i32
    %c0_i32_145 = arith.constant 0 : i32
    %c0_i32_146 = arith.constant 0 : i32
    %360 = tpu.memref_slice %arg7[%c0_i32, %c0_i32_144, %c0_i32_145, %c0_i32_146] : memref<2x8x8x128xf32, #tpu.memory_space<vmem>> -> memref<1x8x8x128xf32, #tpu.memory_space<vmem>>
    %361 = tpu.memref_squeeze %360 : memref<1x8x8x128xf32, #tpu.memory_space<vmem>> -> memref<8x8x128xf32, #tpu.memory_space<vmem>>
    %362 = arith.index_cast %c6_i32 : i32 to index
    %c0_147 = arith.constant 0 : index
    %c0_148 = arith.constant 0 : index
    %363 = vector.load %361[%362, %c0_147, %c0_148] : memref<8x8x128xf32, #tpu.memory_space<vmem>>, vector<1x8x128xf32>
    %364 = vector.shape_cast %363 : vector<1x8x128xf32> to vector<8x128xf32>
    %cst_149 = arith.constant dense<0.000000e+00> : vector<8x128xf32>
    %365 = tpu.matmul %334, %25, %cst_149 {dimension_numbers = #tpu.dot_dimension_numbers<[1], [0], [0], [1], [0, 0, 1, 1], [], []>} : vector<8x32xf32>, vector<32x128xf32>, vector<8x128xf32> -> vector<8x128xf32>
    %366 = arith.addf %364, %365 : vector<8x128xf32>
    %c0_i32_150 = arith.constant 0 : i32
    %c0_i32_151 = arith.constant 0 : i32
    %c0_i32_152 = arith.constant 0 : i32
    %367 = tpu.memref_slice %arg7[%c1_i32, %c0_i32_150, %c0_i32_151, %c0_i32_152] : memref<2x8x8x128xf32, #tpu.memory_space<vmem>> -> memref<1x8x8x128xf32, #tpu.memory_space<vmem>>
    %368 = tpu.memref_squeeze %367 : memref<1x8x8x128xf32, #tpu.memory_space<vmem>> -> memref<8x8x128xf32, #tpu.memory_space<vmem>>
    %369 = arith.index_cast %359 : i32 to index
    %c0_153 = arith.constant 0 : index
    %c0_154 = arith.constant 0 : index
    %370 = vector.load %368[%369, %c0_153, %c0_154] : memref<8x8x128xf32, #tpu.memory_space<vmem>>, vector<1x8x128xf32>
    %371 = vector.shape_cast %370 : vector<1x8x128xf32> to vector<8x128xf32>
    %cst_155 = arith.constant dense<0.000000e+00> : vector<8x128xf32>
    %372 = tpu.matmul %350, %27, %cst_155 {dimension_numbers = #tpu.dot_dimension_numbers<[1], [0], [0], [1], [0, 0, 1, 1], [], []>} : vector<8x32xf32>, vector<32x128xf32>, vector<8x128xf32> -> vector<8x128xf32>
    %373 = arith.addf %371, %372 : vector<8x128xf32>
    %374 = vector.extract_strided_slice %366 {offsets = [0, 0], sizes = [8, 96], strides = [1, 1]} : vector<8x128xf32> to vector<8x96xf32>
    %375 = arith.negf %374 : vector<8x96xf32>
    %376 = math.exp %375 : vector<8x96xf32>
    %cst_156 = arith.constant 1.000000e+00 : f32
    %377 = vector.broadcast %cst_156 : f32 to vector<8x96xf32>
    %378 = arith.addf %377, %376 : vector<8x96xf32>
    %379 = arith.divf %377, %378 : vector<8x96xf32>
    %380 = vector.extract_strided_slice %366 {offsets = [0, 96], sizes = [8, 32], strides = [1, 1]} : vector<8x128xf32> to vector<8x32xf32>
    %381 = math.tanh %380 : vector<8x32xf32>
    %382 = vector.extract_strided_slice %379 {offsets = [0, 0], sizes = [8, 32], strides = [1, 1]} : vector<8x96xf32> to vector<8x32xf32>
    %383 = vector.extract_strided_slice %379 {offsets = [0, 32], sizes = [8, 32], strides = [1, 1]} : vector<8x96xf32> to vector<8x32xf32>
    %384 = vector.extract_strided_slice %379 {offsets = [0, 64], sizes = [8, 32], strides = [1, 1]} : vector<8x96xf32> to vector<8x32xf32>
    %385 = arith.mulf %383, %332 : vector<8x32xf32>
    %386 = arith.mulf %382, %381 : vector<8x32xf32>
    %387 = arith.addf %385, %386 : vector<8x32xf32>
    %388 = math.tanh %387 : vector<8x32xf32>
    %389 = arith.mulf %384, %388 : vector<8x32xf32>
    %390 = vector.extract_strided_slice %373 {offsets = [0, 0], sizes = [8, 96], strides = [1, 1]} : vector<8x128xf32> to vector<8x96xf32>
    %391 = arith.negf %390 : vector<8x96xf32>
    %392 = math.exp %391 : vector<8x96xf32>
    %cst_157 = arith.constant 1.000000e+00 : f32
    %393 = vector.broadcast %cst_157 : f32 to vector<8x96xf32>
    %394 = arith.addf %393, %392 : vector<8x96xf32>
    %395 = arith.divf %393, %394 : vector<8x96xf32>
    %396 = vector.extract_strided_slice %373 {offsets = [0, 96], sizes = [8, 32], strides = [1, 1]} : vector<8x128xf32> to vector<8x32xf32>
    %397 = math.tanh %396 : vector<8x32xf32>
    %398 = vector.extract_strided_slice %395 {offsets = [0, 0], sizes = [8, 32], strides = [1, 1]} : vector<8x96xf32> to vector<8x32xf32>
    %399 = vector.extract_strided_slice %395 {offsets = [0, 32], sizes = [8, 32], strides = [1, 1]} : vector<8x96xf32> to vector<8x32xf32>
    %400 = vector.extract_strided_slice %395 {offsets = [0, 64], sizes = [8, 32], strides = [1, 1]} : vector<8x96xf32> to vector<8x32xf32>
    %401 = arith.mulf %399, %348 : vector<8x32xf32>
    %402 = arith.mulf %398, %397 : vector<8x32xf32>
    %403 = arith.addf %401, %402 : vector<8x32xf32>
    %404 = math.tanh %403 : vector<8x32xf32>
    %405 = arith.mulf %400, %404 : vector<8x32xf32>
    %406 = arith.index_cast %c6_i32 : i32 to index
    %c0_158 = arith.constant 0 : index
    %c0_159 = arith.constant 0 : index
    %407 = vector.load %arg4[%406, %c0_158, %c0_159] : memref<8x8x64xf32, #tpu.memory_space<vmem>>, vector<1x8x32xf32>
    %408 = vector.shape_cast %407 : vector<1x8x32xf32> to vector<8x32xf32>
    %409 = vector.shape_cast %389 : vector<8x32xf32> to vector<1x8x32xf32>
    tpu.vector_store %arg4[%406, %c0_158, %c0_159], %409 {strides = array<i32>} : memref<8x8x64xf32, #tpu.memory_space<vmem>>, vector<1x8x32xf32>,
    %410 = arith.index_cast %359 : i32 to index
    %c0_160 = arith.constant 0 : index
    %c32_161 = arith.constant 32 : index
    %411 = vector.load %arg4[%410, %c0_160, %c32_161] : memref<8x8x64xf32, #tpu.memory_space<vmem>>, vector<1x8x32xf32>
    %412 = vector.shape_cast %411 : vector<1x8x32xf32> to vector<8x32xf32>
    %413 = vector.shape_cast %405 : vector<8x32xf32> to vector<1x8x32xf32>
    tpu.vector_store %arg4[%410, %c0_160, %c32_161], %413 {strides = array<i32>} : memref<8x8x64xf32, #tpu.memory_space<vmem>>, vector<1x8x32xf32>,
    %c7_i32_162 = arith.constant 7 : i32
    %c7_i32_163 = arith.constant 7 : i32
    %414 = arith.subi %c7_i32_163, %c7_i32_162 : i32
    %c0_i32_164 = arith.constant 0 : i32
    %c0_i32_165 = arith.constant 0 : i32
    %c0_i32_166 = arith.constant 0 : i32
    %415 = tpu.memref_slice %arg7[%c0_i32, %c0_i32_164, %c0_i32_165, %c0_i32_166] : memref<2x8x8x128xf32, #tpu.memory_space<vmem>> -> memref<1x8x8x128xf32, #tpu.memory_space<vmem>>
    %416 = tpu.memref_squeeze %415 : memref<1x8x8x128xf32, #tpu.memory_space<vmem>> -> memref<8x8x128xf32, #tpu.memory_space<vmem>>
    %417 = arith.index_cast %c7_i32_162 : i32 to index
    %c0_167 = arith.constant 0 : index
    %c0_168 = arith.constant 0 : index
    %418 = vector.load %416[%417, %c0_167, %c0_168] : memref<8x8x128xf32, #tpu.memory_space<vmem>>, vector<1x8x128xf32>
    %419 = vector.shape_cast %418 : vector<1x8x128xf32> to vector<8x128xf32>
    %cst_169 = arith.constant dense<0.000000e+00> : vector<8x128xf32>
    %420 = tpu.matmul %389, %25, %cst_169 {dimension_numbers = #tpu.dot_dimension_numbers<[1], [0], [0], [1], [0, 0, 1, 1], [], []>} : vector<8x32xf32>, vector<32x128xf32>, vector<8x128xf32> -> vector<8x128xf32>
    %421 = arith.addf %419, %420 : vector<8x128xf32>
    %c0_i32_170 = arith.constant 0 : i32
    %c0_i32_171 = arith.constant 0 : i32
    %c0_i32_172 = arith.constant 0 : i32
    %422 = tpu.memref_slice %arg7[%c1_i32, %c0_i32_170, %c0_i32_171, %c0_i32_172] : memref<2x8x8x128xf32, #tpu.memory_space<vmem>> -> memref<1x8x8x128xf32, #tpu.memory_space<vmem>>
    %423 = tpu.memref_squeeze %422 : memref<1x8x8x128xf32, #tpu.memory_space<vmem>> -> memref<8x8x128xf32, #tpu.memory_space<vmem>>
    %424 = arith.index_cast %414 : i32 to index
    %c0_173 = arith.constant 0 : index
    %c0_174 = arith.constant 0 : index
    %425 = vector.load %423[%424, %c0_173, %c0_174] : memref<8x8x128xf32, #tpu.memory_space<vmem>>, vector<1x8x128xf32>
    %426 = vector.shape_cast %425 : vector<1x8x128xf32> to vector<8x128xf32>
    %cst_175 = arith.constant dense<0.000000e+00> : vector<8x128xf32>
    %427 = tpu.matmul %405, %27, %cst_175 {dimension_numbers = #tpu.dot_dimension_numbers<[1], [0], [0], [1], [0, 0, 1, 1], [], []>} : vector<8x32xf32>, vector<32x128xf32>, vector<8x128xf32> -> vector<8x128xf32>
    %428 = arith.addf %426, %427 : vector<8x128xf32>
    %429 = vector.extract_strided_slice %421 {offsets = [0, 0], sizes = [8, 96], strides = [1, 1]} : vector<8x128xf32> to vector<8x96xf32>
    %430 = arith.negf %429 : vector<8x96xf32>
    %431 = math.exp %430 : vector<8x96xf32>
    %cst_176 = arith.constant 1.000000e+00 : f32
    %432 = vector.broadcast %cst_176 : f32 to vector<8x96xf32>
    %433 = arith.addf %432, %431 : vector<8x96xf32>
    %434 = arith.divf %432, %433 : vector<8x96xf32>
    %435 = vector.extract_strided_slice %421 {offsets = [0, 96], sizes = [8, 32], strides = [1, 1]} : vector<8x128xf32> to vector<8x32xf32>
    %436 = math.tanh %435 : vector<8x32xf32>
    %437 = vector.extract_strided_slice %434 {offsets = [0, 0], sizes = [8, 32], strides = [1, 1]} : vector<8x96xf32> to vector<8x32xf32>
    %438 = vector.extract_strided_slice %434 {offsets = [0, 32], sizes = [8, 32], strides = [1, 1]} : vector<8x96xf32> to vector<8x32xf32>
    %439 = vector.extract_strided_slice %434 {offsets = [0, 64], sizes = [8, 32], strides = [1, 1]} : vector<8x96xf32> to vector<8x32xf32>
    %440 = arith.mulf %438, %387 : vector<8x32xf32>
    %441 = arith.mulf %437, %436 : vector<8x32xf32>
    %442 = arith.addf %440, %441 : vector<8x32xf32>
    %443 = math.tanh %442 : vector<8x32xf32>
    %444 = arith.mulf %439, %443 : vector<8x32xf32>
    %445 = vector.extract_strided_slice %428 {offsets = [0, 0], sizes = [8, 96], strides = [1, 1]} : vector<8x128xf32> to vector<8x96xf32>
    %446 = arith.negf %445 : vector<8x96xf32>
    %447 = math.exp %446 : vector<8x96xf32>
    %cst_177 = arith.constant 1.000000e+00 : f32
    %448 = vector.broadcast %cst_177 : f32 to vector<8x96xf32>
    %449 = arith.addf %448, %447 : vector<8x96xf32>
    %450 = arith.divf %448, %449 : vector<8x96xf32>
    %451 = vector.extract_strided_slice %428 {offsets = [0, 96], sizes = [8, 32], strides = [1, 1]} : vector<8x128xf32> to vector<8x32xf32>
    %452 = math.tanh %451 : vector<8x32xf32>
    %453 = vector.extract_strided_slice %450 {offsets = [0, 0], sizes = [8, 32], strides = [1, 1]} : vector<8x96xf32> to vector<8x32xf32>
    %454 = vector.extract_strided_slice %450 {offsets = [0, 32], sizes = [8, 32], strides = [1, 1]} : vector<8x96xf32> to vector<8x32xf32>
    %455 = vector.extract_strided_slice %450 {offsets = [0, 64], sizes = [8, 32], strides = [1, 1]} : vector<8x96xf32> to vector<8x32xf32>
    %456 = arith.mulf %454, %403 : vector<8x32xf32>
    %457 = arith.mulf %453, %452 : vector<8x32xf32>
    %458 = arith.addf %456, %457 : vector<8x32xf32>
    %459 = math.tanh %458 : vector<8x32xf32>
    %460 = arith.mulf %455, %459 : vector<8x32xf32>
    %461 = arith.index_cast %c7_i32_162 : i32 to index
    %c0_178 = arith.constant 0 : index
    %c0_179 = arith.constant 0 : index
    %462 = vector.load %arg4[%461, %c0_178, %c0_179] : memref<8x8x64xf32, #tpu.memory_space<vmem>>, vector<1x8x32xf32>
    %463 = vector.shape_cast %462 : vector<1x8x32xf32> to vector<8x32xf32>
    %464 = vector.shape_cast %444 : vector<8x32xf32> to vector<1x8x32xf32>
    tpu.vector_store %arg4[%461, %c0_178, %c0_179], %464 {strides = array<i32>} : memref<8x8x64xf32, #tpu.memory_space<vmem>>, vector<1x8x32xf32>,
    %465 = arith.index_cast %414 : i32 to index
    %c0_180 = arith.constant 0 : index
    %c32_181 = arith.constant 32 : index
    %466 = vector.load %arg4[%465, %c0_180, %c32_181] : memref<8x8x64xf32, #tpu.memory_space<vmem>>, vector<1x8x32xf32>
    %467 = vector.shape_cast %466 : vector<1x8x32xf32> to vector<8x32xf32>
    %468 = vector.shape_cast %460 : vector<8x32xf32> to vector<1x8x32xf32>
    tpu.vector_store %arg4[%465, %c0_180, %c32_181], %468 {strides = array<i32>} : memref<8x8x64xf32, #tpu.memory_space<vmem>>, vector<1x8x32xf32>,
    %c8_i32 = arith.constant 8 : i32
    %c0_182 = arith.constant 0 : index
    %c0_183 = arith.constant 0 : index
    %c0_184 = arith.constant 0 : index
    %469 = vector.load %arg5[%c0_182, %c0_183, %c0_184] : memref<2x8x32xf32, #tpu.memory_space<vmem>>, vector<1x8x32xf32>
    %470 = vector.shape_cast %469 : vector<1x8x32xf32> to vector<8x32xf32>
    %471 = vector.shape_cast %444 : vector<8x32xf32> to vector<1x8x32xf32>
    tpu.vector_store %arg5[%c0_182, %c0_183, %c0_184], %471 {strides = array<i32>} : memref<2x8x32xf32, #tpu.memory_space<vmem>>, vector<1x8x32xf32>,
    %c0_185 = arith.constant 0 : index
    %c0_186 = arith.constant 0 : index
    %c0_187 = arith.constant 0 : index
    %472 = vector.load %arg6[%c0_185, %c0_186, %c0_187] : memref<2x8x32xf32, #tpu.memory_space<vmem>>, vector<1x8x32xf32>
    %473 = vector.shape_cast %472 : vector<1x8x32xf32> to vector<8x32xf32>
    %474 = vector.shape_cast %442 : vector<8x32xf32> to vector<1x8x32xf32>
    tpu.vector_store %arg6[%c0_185, %c0_186, %c0_187], %474 {strides = array<i32>} : memref<2x8x32xf32, #tpu.memory_space<vmem>>, vector<1x8x32xf32>,
    %c1_188 = arith.constant 1 : index
    %c0_189 = arith.constant 0 : index
    %c0_190 = arith.constant 0 : index
    %475 = vector.load %arg5[%c1_188, %c0_189, %c0_190] : memref<2x8x32xf32, #tpu.memory_space<vmem>>, vector<1x8x32xf32>
    %476 = vector.shape_cast %475 : vector<1x8x32xf32> to vector<8x32xf32>
    %477 = vector.shape_cast %460 : vector<8x32xf32> to vector<1x8x32xf32>
    tpu.vector_store %arg5[%c1_188, %c0_189, %c0_190], %477 {strides = array<i32>} : memref<2x8x32xf32, #tpu.memory_space<vmem>>, vector<1x8x32xf32>,
    %c1_191 = arith.constant 1 : index
    %c0_192 = arith.constant 0 : index
    %c0_193 = arith.constant 0 : index
    %478 = vector.load %arg6[%c1_191, %c0_192, %c0_193] : memref<2x8x32xf32, #tpu.memory_space<vmem>>, vector<1x8x32xf32>
    %479 = vector.shape_cast %478 : vector<1x8x32xf32> to vector<8x32xf32>
    %480 = vector.shape_cast %458 : vector<8x32xf32> to vector<1x8x32xf32>
    tpu.vector_store %arg6[%c1_191, %c0_192, %c0_193], %480 {strides = array<i32>} : memref<2x8x32xf32, #tpu.memory_space<vmem>>, vector<1x8x32xf32>,
    return
  }
}

module attributes {stable_mosaic.version = 11 : i64} {
  func.func @heads_kernel(%arg0: memref<2x8x32xf32, #tpu.memory_space<vmem>>, %arg1: memref<2x8x32xf32, #tpu.memory_space<vmem>>, %arg2: memref<2x32x32xf32, #tpu.memory_space<vmem>>, %arg3: memref<1x32xf32, #tpu.memory_space<vmem>>, %arg4: memref<2x32x32xf32, #tpu.memory_space<vmem>>, %arg5: memref<1x32xf32, #tpu.memory_space<vmem>>, %arg6: memref<8x32xf32, #tpu.memory_space<vmem>>, %arg7: memref<8x32xf32, #tpu.memory_space<vmem>>) attributes {dimension_semantics = [], scalar_prefetch = 0 : i64, scratch_operands = 0 : i64, tpu.core_type = #tpu.core_type<tc>} {
    %c0 = arith.constant 0 : index
    %c0_0 = arith.constant 0 : index
    %c0_1 = arith.constant 0 : index
    %0 = vector.load %arg0[%c0, %c0_0, %c0_1] : memref<2x8x32xf32, #tpu.memory_space<vmem>>, vector<1x8x32xf32>
    %1 = vector.shape_cast %0 : vector<1x8x32xf32> to vector<8x32xf32>
    %c0_2 = arith.constant 0 : index
    %c0_3 = arith.constant 0 : index
    %c0_4 = arith.constant 0 : index
    %2 = vector.load %arg2[%c0_2, %c0_3, %c0_4] : memref<2x32x32xf32, #tpu.memory_space<vmem>>, vector<1x32x32xf32>
    %3 = vector.shape_cast %2 : vector<1x32x32xf32> to vector<32x32xf32>
    %cst = arith.constant dense<0.000000e+00> : vector<8x32xf32>
    %4 = tpu.matmul %1, %3, %cst {dimension_numbers = #tpu.dot_dimension_numbers<[1], [0], [0], [1], [0, 0, 1, 1], [], []>} : vector<8x32xf32>, vector<32x32xf32>, vector<8x32xf32> -> vector<8x32xf32>
    %c1 = arith.constant 1 : index
    %c0_5 = arith.constant 0 : index
    %c0_6 = arith.constant 0 : index
    %5 = vector.load %arg0[%c1, %c0_5, %c0_6] : memref<2x8x32xf32, #tpu.memory_space<vmem>>, vector<1x8x32xf32>
    %6 = vector.shape_cast %5 : vector<1x8x32xf32> to vector<8x32xf32>
    %c1_7 = arith.constant 1 : index
    %c0_8 = arith.constant 0 : index
    %c0_9 = arith.constant 0 : index
    %7 = vector.load %arg2[%c1_7, %c0_8, %c0_9] : memref<2x32x32xf32, #tpu.memory_space<vmem>>, vector<1x32x32xf32>
    %8 = vector.shape_cast %7 : vector<1x32x32xf32> to vector<32x32xf32>
    %cst_10 = arith.constant dense<0.000000e+00> : vector<8x32xf32>
    %9 = tpu.matmul %6, %8, %cst_10 {dimension_numbers = #tpu.dot_dimension_numbers<[1], [0], [0], [1], [0, 0, 1, 1], [], []>} : vector<8x32xf32>, vector<32x32xf32>, vector<8x32xf32> -> vector<8x32xf32>
    %10 = arith.addf %4, %9 : vector<8x32xf32>
    %c0_11 = arith.constant 0 : index
    %c0_12 = arith.constant 0 : index
    %11 = vector.load %arg3[%c0_11, %c0_12] : memref<1x32xf32, #tpu.memory_space<vmem>>, vector<1x32xf32>
    %12 = vector.broadcast %11 : vector<1x32xf32> to vector<8x32xf32>
    %13 = arith.addf %10, %12 : vector<8x32xf32>
    %c0_13 = arith.constant 0 : index
    %c0_14 = arith.constant 0 : index
    %14 = vector.load %arg6[%c0_13, %c0_14] : memref<8x32xf32, #tpu.memory_space<vmem>>, vector<8x32xf32>
    tpu.vector_store %arg6[%c0_13, %c0_14], %13 {strides = array<i32>} : memref<8x32xf32, #tpu.memory_space<vmem>>, vector<8x32xf32>,
    %c0_15 = arith.constant 0 : index
    %c0_16 = arith.constant 0 : index
    %c0_17 = arith.constant 0 : index
    %15 = vector.load %arg1[%c0_15, %c0_16, %c0_17] : memref<2x8x32xf32, #tpu.memory_space<vmem>>, vector<1x8x32xf32>
    %16 = vector.shape_cast %15 : vector<1x8x32xf32> to vector<8x32xf32>
    %c0_18 = arith.constant 0 : index
    %c0_19 = arith.constant 0 : index
    %c0_20 = arith.constant 0 : index
    %17 = vector.load %arg4[%c0_18, %c0_19, %c0_20] : memref<2x32x32xf32, #tpu.memory_space<vmem>>, vector<1x32x32xf32>
    %18 = vector.shape_cast %17 : vector<1x32x32xf32> to vector<32x32xf32>
    %cst_21 = arith.constant dense<0.000000e+00> : vector<8x32xf32>
    %19 = tpu.matmul %16, %18, %cst_21 {dimension_numbers = #tpu.dot_dimension_numbers<[1], [0], [0], [1], [0, 0, 1, 1], [], []>} : vector<8x32xf32>, vector<32x32xf32>, vector<8x32xf32> -> vector<8x32xf32>
    %c1_22 = arith.constant 1 : index
    %c0_23 = arith.constant 0 : index
    %c0_24 = arith.constant 0 : index
    %20 = vector.load %arg1[%c1_22, %c0_23, %c0_24] : memref<2x8x32xf32, #tpu.memory_space<vmem>>, vector<1x8x32xf32>
    %21 = vector.shape_cast %20 : vector<1x8x32xf32> to vector<8x32xf32>
    %c1_25 = arith.constant 1 : index
    %c0_26 = arith.constant 0 : index
    %c0_27 = arith.constant 0 : index
    %22 = vector.load %arg4[%c1_25, %c0_26, %c0_27] : memref<2x32x32xf32, #tpu.memory_space<vmem>>, vector<1x32x32xf32>
    %23 = vector.shape_cast %22 : vector<1x32x32xf32> to vector<32x32xf32>
    %cst_28 = arith.constant dense<0.000000e+00> : vector<8x32xf32>
    %24 = tpu.matmul %21, %23, %cst_28 {dimension_numbers = #tpu.dot_dimension_numbers<[1], [0], [0], [1], [0, 0, 1, 1], [], []>} : vector<8x32xf32>, vector<32x32xf32>, vector<8x32xf32> -> vector<8x32xf32>
    %25 = arith.addf %19, %24 : vector<8x32xf32>
    %c0_29 = arith.constant 0 : index
    %c0_30 = arith.constant 0 : index
    %26 = vector.load %arg5[%c0_29, %c0_30] : memref<1x32xf32, #tpu.memory_space<vmem>>, vector<1x32xf32>
    %27 = vector.broadcast %26 : vector<1x32xf32> to vector<8x32xf32>
    %28 = arith.addf %25, %27 : vector<8x32xf32>
    %c0_31 = arith.constant 0 : index
    %c0_32 = arith.constant 0 : index
    %29 = vector.load %arg7[%c0_31, %c0_32] : memref<8x32xf32, #tpu.memory_space<vmem>>, vector<8x32xf32>
    tpu.vector_store %arg7[%c0_31, %c0_32], %28 {strides = array<i32>} : memref<8x32xf32, #tpu.memory_space<vmem>>, vector<8x32xf32>,
    return
  }
}

</mosaic_0001>

<bundles_post_ra>
// kernel: encoder_forward.5
= control target key start
LH: loop header
LB: loop body
LE: loop exit
PB: predicated region body
PF: predicated region fallthrough
CT: control target
= control target key end

     0   :  { %vm37_vm0 = vcmask 261120   ;;  %s296_s4 = inlined_call_operand.vmem [shape: f32[2,32,32], index: 4, kind: input, shape index: {}]   ;;  %s297_s2 = inlined_call_operand.vmem [shape: f32[2,32,32], index: 2, kind: input, shape index: {}]   ;;  %s298_s1 = inlined_call_operand.vmem [shape: f32[2,8,32], index: 1, kind: input, shape index: {}]   ;;  %s299_s0 = inlined_call_operand.vmem [shape: f32[2,8,32], index: 0, kind: input, shape index: {}]   ;;  %s300_s3 = inlined_call_operand.vmem [shape: f32[1,32], index: 3, kind: input, shape index: {}]   ;;  %s301_s5 = inlined_call_operand.vmem [shape: f32[1,32], index: 5, kind: input, shape index: {}]   ;;  %s302_s6 = inlined_call_operand.vmem [shape: f32[8,32], index: 6, kind: output, shape index: {0}]   ;;  %s303_s7 = inlined_call_operand.vmem [shape: f32[8,32], index: 7, kind: output, shape index: {1}]  }
   0x1   :  { %v173_v0 = vld [vmem:[%s296_s4 + $0x38] sm:$0xff]  ;;  %v172_v2 = vld [vmem:[%s296_s4 + $0x30] sm:$0xff]  ;;  %v171_v4 = vld [vmem:[%s296_s4 + $0x28] sm:$0xff] }
   0x2   :  { %v94_v1 = vld [vmem:[%s296_s4 + $0x18] sm:$0xff]  ;;  %117 = vmatpush.msra.mxu2 %v173_v0  ;;  %v93_v3 = vld [vmem:[%s296_s4 + $0x10] sm:$0xff]  ;;  %v92_v5 = vld [vmem:[%s296_s4 + $0x8] sm:$0xff] }
   0x3   :  { %140 = vmatpush.msra.mxu3 %v94_v1  ;;  %v166_v6 = vld [vmem:[%s297_s2 + $0x38] sm:$0xff]  ;;  %v170_v8 = vld [vmem:[%s296_s4 + $0x20] sm:$0xff]  ;;  %v165_v10 = vld [vmem:[%s297_s2 + $0x30] sm:$0xff] }
   0x4   :  { %v29_v7 = vld [vmem:[%s297_s2 + $0x18] sm:$0xff]  ;;  %118 = vmatpush.msra.mxu2 %v172_v2  ;;  %53 = vmatpush.msra.mxu0 %v166_v6  ;;  %v91_v9 = vld [vmem:[%s296_s4] sm:$0xff]  ;;  %v28_v11 = vld [vmem:[%s297_s2 + $0x10] sm:$0xff] }
   0x5   :  { %141 = vmatpush.msra.mxu3 %v93_v3  ;;  %76 = vmatpush.msra.mxu1 %v29_v7  ;;  %v169_v12 = vld [vmem:[%s298_s1 + $0x8] sm:$0xff]  ;;  %v90_v13 = vld [vmem:[%s298_s1] sm:$0xff] }
   0x6   :  { %119 = vmatpush.msra.mxu2 %v171_v4  ;;  %54 = vmatpush.msra.mxu0 %v165_v10  ;;  %v164_v14 = vld [vmem:[%s297_s2 + $0x28] sm:$0xff]  ;;  %v163_v16 = vld [vmem:[%s297_s2 + $0x20] sm:$0xff] }
   0x7   :  { %142 = vmatpush.msra.mxu3 %v92_v5  ;;  %77 = vmatpush.msra.mxu1 %v28_v11  ;;  %v27_v15 = vld [vmem:[%s297_s2 + $0x8] sm:$0xff]  ;;  %v26_v17 = vld [vmem:[%s297_s2] sm:$0xff] }
   0x8   :  { %120 = vmatpush.msra.mxu2 %v170_v8  ;;  %55 = vmatpush.msra.mxu0 %v164_v14  ;;  %v162_v18 = vld [vmem:[%s299_s0 + $0x8] sm:$0xff]  ;;  %v25_v19 = vld [vmem:[%s299_s0] sm:$0xff] }
   0x9   :  { %143 = vmatpush.msra.mxu3 %v91_v9  ;;  %174 = vmatmul.msk.f32.vlgmr.msra.gmra.mxu2 %vm37_vm0, %v169_v12  ;;  %v176_v20 = vld [vmem:[%s300_s3] ss:$0 sm:$0xff] }
   0xa   :  { %175 = vmatmul.msk.f32.vlgmr.msra.gmra.mxu3 %vm37_vm0, %v90_v13  ;;  %78 = vmatpush.msra.mxu1 %v27_v15  ;;  %v177_v24 = vld [vmem:[%s301_s5] ss:$0 sm:$0xff] }
   0xb   :  { %56 = vmatpush.msra.mxu0 %v163_v16 }
   0xc   :  { %79 = vmatpush.msra.mxu1 %v26_v17  ;;  %167 = vmatmul.msk.f32.vlgmr.msra.gmra.mxu0 %vm37_vm0, %v162_v18 }
   0xd   :  { %168 = vmatmul.msk.f32.vlgmr.msra.gmra.mxu1 %vm37_vm0, %v25_v19 }
  0x89   :  { %v58_v21 = vpop.f32.mrf.mxu0 }
  0x8a   :  { %v81_v22 = vpop.f32.mrf.mxu1 }
  0x8b   :  { %v82_v23 = vadd.f32 %v81_v22, %v58_v21 }
  0x8c   :  { %v122_v25 = vpop.f32.mrf.mxu2 }
  0x8d   :  { %v145_v26 = vpop.f32.mrf.mxu3  ;;  %v88_v27 = vadd.f32 %v176_v20, %v82_v23 }
  0x8e   :  { %v146_v28 = vadd.f32 %v145_v26, %v122_v25 }
  0x8f   :  { %89 = vst.msk [vmem:[%s302_s6] sm:$0xff] %vm37_vm0, %v88_v27 }
  0x90   :  { %v152_v29 = vadd.f32 %v177_v24, %v146_v28 }
  0x92   :  { %153 = vst.msk [vmem:[%s303_s7] sm:$0xff] %vm37_vm0, %v152_v29 }

// kernel: encoder_forward.4
= control target key start
LH: loop header
LB: loop body
LE: loop exit
PB: predicated region body
PF: predicated region fallthrough
CT: control target
= control target key end

     0   :  { %12 = vsyncpa [#allocation4], 0  ;;  %s2173_s0 = inlined_call_operand.vmem [shape: f32[8,8,64], index: 0, kind: input, shape index: {}]   ;;  %s2174_s1 = inlined_call_operand.vmem [shape: f32[2,64,128], index: 1, kind: input, shape index: {}]   ;;  %s2175_s2 = inlined_call_operand.hbm [shape: f32[2,32,128], index: 2, kind: input, shape index: {}]   ;;  %s2176_s3 = inlined_call_operand.vmem [shape: f32[2,1,128], index: 3, kind: input, shape index: {}]   ;;  %s2177_s4 = inlined_call_operand.vmem [shape: f32[8,8,64], index: 4, kind: output, shape index: {0}]   ;;  %s2178_s5 = inlined_call_operand.hbm [shape: f32[2,8,32], index: 5, kind: output, shape index: {1}]   ;;  %s2179_s6 = inlined_call_operand.hbm [shape: f32[2,8,32], index: 6, kind: output, shape index: {2}]  }
   0x1   :  { %13 = vsyncpa [#allocation5], 0 }
   0x2   :  { %14 = vsyncpa [#allocation8], 0  ;;  %s23_s23 = sshll.u32 %s2175_s2, 4  ;;  %s1653_s24 = smov [#allocation3]   ;;  %s24_s23 = int_to_ptr.hbm [resolvable:$true] %s23_s23 }
   0x3   :  { %s25_s25 = sshll.u32 %s1653_s24, 4  ;;  %s1654_s26 = smov 128   ;;  %s26_s25 = int_to_ptr.vmem [resolvable:$true] %s25_s25 }
   0x4   :  { %s1655_s27 = smov 8  }
   0x5   :  { %31 = dma.hbm_to_vmem [thread:$0]  %s24_s23, 1024, %s26_s25, [#allocation4], %s1654_s26, %s1654_s26, %s1655_s27  }
   0x6   :  { %1647 = dma.done.wait [#allocation4], 1024  }
   0x7   :  { %1648 = vsyncadd [#allocation4], 4294966272  ;;  %v53_v0 = vld [vmem:[%s2174_s1 + $0x38] sm:$0xff]  ;;  %v52_v2 = vld [vmem:[%s2174_s1 + $0x30] sm:$0xff]  ;;  %v1656_v18 = vmov 0.0   ;;  %vm58_vm0 = vcmask 523264  }
   0x8   :  { %v1377_v1 = vld [vmem:[%s2174_s1 + $0x78] sm:$0xff]  ;;  %91 = vmatpush.msra.mxu0 %v53_v0  ;;  %v1376_v3 = vld [vmem:[%s2174_s1 + $0x70] sm:$0xff]  ;;  %v51_v4 = vld [vmem:[%s2174_s1 + $0x28] sm:$0xff]  ;;  %s1658_s8 = smov 64   ;;  %vm206_vm9 = vcmask 261120   ;;  %s1660_s9 = smov [#allocation7]  }
   0x9   :  { %154 = vmatpush.msra.mxu1 %v1377_v1  ;;  %v1375_v5 = vld [vmem:[%s2174_s1 + $0x68] sm:$0xff]  ;;  %v1721_v6 = vld [vmem:[#allocation3 + $0x18] sm:$0xff]  ;;  %v1723_v7 = vld [vmem:[#allocation3 + $0x10] sm:$0xff]  ;;  %s1333_s10 = sshll.u32 %s1660_s9, 4  ;;  %s1661_s17 = smov [#allocation6]   ;;  %s1334_s10 = int_to_ptr.vmem [resolvable:$true] %s1333_s10 }
   0xa   :  { %92 = vmatpush.msra.mxu0 %v52_v2  ;;  %222 = vmatpush.msra.mxu2 %v1721_v6  ;;  %v50_v8 = vld [vmem:[%s2174_s1 + $0x20] sm:$0xff]  ;;  %v1732_v10 = vld [vmem:[#allocation3 + $0x8] sm:$0xff]  ;;  %v49_v11 = vld [vmem:[%s2174_s1 + $0x18] sm:$0xff]  ;;  %s1322_s20 = sshll.u32 %s2178_s5, 4  ;;  %s1323_s20 = int_to_ptr.hbm [resolvable:$true] %s1322_s20 }
   0xb   :  { %155 = vmatpush.msra.mxu1 %v1376_v3  ;;  %v1374_v9 = vld [vmem:[%s2174_s1 + $0x60] sm:$0xff]  ;;  %v1373_v12 = vld [vmem:[%s2174_s1 + $0x58] sm:$0xff]  ;;  %v48_v13 = vld [vmem:[%s2174_s1 + $0x10] sm:$0xff] }
   0xc   :  { %93 = vmatpush.msra.mxu0 %v51_v4  ;;  %223 = vmatpush.msra.mxu2 %v1723_v7  ;;  %v1744_v14 = vld [vmem:[#allocation3] sm:$0xff]  ;;  %v1372_v15 = vld [vmem:[%s2174_s1 + $0x50] sm:$0xff]  ;;  %v47_v16 = vld [vmem:[%s2174_s1 + $0x8] sm:$0xff] }
   0xd   :  { %156 = vmatpush.msra.mxu1 %v1375_v5  ;;  %v1371_v17 = vld [vmem:[%s2174_s1 + $0x48] sm:$0xff]  ;;  %v46_v19 = vld [vmem:[%s2174_s1] sm:$0xff]  ;;  %v1777_v23 = vld [vmem:[#allocation3 + $0x38] sm:$0xff] }
   0xe   :  { %94 = vmatpush.msra.mxu0 %v50_v8  ;;  %224 = vmatpush.msra.mxu2 %v1732_v10  ;;  %v1370_v20 = vld [vmem:[%s2174_s1 + $0x40] sm:$0xff]  ;;  %v39_v22 = vld [vmem:[%s2173_s0 + $0x8] sm:$0xff]  ;;  %v1779_v24 = vld [vmem:[#allocation3 + $0x30] sm:$0xff] }
   0xf   :  { %157 = vmatpush.msra.mxu1 %v1374_v9  ;;  %v38_v21 = vld [vmem:[%s2173_s0] sm:$0xff]  ;;  %245 = vmatpush.msra.mxu3 %v1777_v23  ;;  %v40_v25 = vld [vmem:[%s2173_s0 + $0x10] sm:$0xff]  ;;  %v1791_v26 = vld [vmem:[#allocation3 + $0x28] sm:$0xff] }
  0x10   :  { %95 = vmatpush.msra.mxu0 %v49_v11  ;;  %225 = vmatpush.msra.mxu2 %v1744_v14  ;;  %v1793_v27 = vld [vmem:[#allocation3 + $0x20] sm:$0xff]  ;;  %v41_v28 = vld [vmem:[%s2173_s0 + $0x18] sm:$0xff]  ;;  %v43_v30 = vld [vmem:[%s2173_s0 + $0x28] sm:$0xff] }
  0x11   :  { %158 = vmatpush.msra.mxu1 %v1373_v12  ;;  %226 = vmatmul.f32.vlgmr.msra.gmra.mxu2 %v1656_v18  ;;  %v42_v29 = vld [vmem:[%s2173_s0 + $0x20] sm:$0xff]  ;;  %v44_v31 = vld [vmem:[%s2173_s0 + $0x30] sm:$0xff]  ;;  %v45_v32 = vld [vmem:[%s2173_s0 + $0x38] sm:$0xff]  ;;  %s1657_s0 = smov 32  }
  0x12   :  { %96 = vmatpush.msra.mxu0 %v48_v13  ;;  %356 = vmatpush.msrb.mxu2 %v1721_v6  ;;  %v1834_v33 = vld [vmem:[%s2176_s3] ss:$0 sm:$0xff]  ;;  %v1441_v34 = vld [vmem:[%s2176_s3 + $0x1] ss:$0 sm:$0xff] }
  0x13   :  { %159 = vmatpush.msra.mxu1 %v1372_v15  ;;  %246 = vmatpush.msra.mxu3 %v1779_v24 }
  0x14   :  { %97 = vmatpush.msra.mxu0 %v47_v16  ;;  %357 = vmatpush.msrb.mxu2 %v1723_v7 }
  0x15   :  { %160 = vmatpush.msra.mxu1 %v1371_v17  ;;  %247 = vmatpush.msra.mxu3 %v1791_v26 }
  0x16   :  { %98 = vmatpush.msra.mxu0 %v46_v19  ;;  %358 = vmatpush.msrb.mxu2 %v1732_v10 }
  0x17   :  { %161 = vmatpush.msra.mxu1 %v1370_v20  ;;  %1362 = vmatmul.msk.f32.vlgmr.msra.gmra.mxu0 %vm58_vm0, %v38_v21 }
  0x18   :  { %1379 = vmatmul.msk.f32.vlgmr.msra.gmra.mxu1 %vm58_vm0, %v38_v21  ;;  %359 = vmatpush.msrb.mxu2 %v1744_v14 }
  0x19   :  { %248 = vmatpush.msra.mxu3 %v1793_v27 }
  0x1a   :  { %494 = vmatpush.msra.mxu2 %v1721_v6  ;;  %249 = vmatmul.f32.vlgmr.msra.gmra.mxu3 %v1656_v18 }
  0x1b   :  { %383 = vmatpush.msrb.mxu3 %v1777_v23 }
  0x1c   :  { %495 = vmatpush.msra.mxu2 %v1723_v7 }
  0x1d   :  { %384 = vmatpush.msrb.mxu3 %v1779_v24 }
  0x1e   :  { %496 = vmatpush.msra.mxu2 %v1732_v10 }
  0x1f   :  { %1363 = vmatmul.msk.f32.gmra.mxu0 %vm58_vm0, %v39_v22  ;;  %385 = vmatpush.msrb.mxu3 %v1791_v26 }
  0x20   :  { %1380 = vmatmul.msk.f32.gmra.mxu1 %vm58_vm0, %v39_v22  ;;  %497 = vmatpush.msra.mxu2 %v1744_v14 }
  0x21   :  { %386 = vmatpush.msrb.mxu3 %v1793_v27 }
  0x23   :  { %521 = vmatpush.msra.mxu3 %v1777_v23 }
  0x25   :  { %522 = vmatpush.msra.mxu3 %v1779_v24 }
  0x27   :  { %1364 = vmatmul.msk.f32.gmra.mxu0 %vm58_vm0, %v40_v25  ;;  %523 = vmatpush.msra.mxu3 %v1791_v26 }
  0x28   :  { %1381 = vmatmul.msk.f32.gmra.mxu1 %vm58_vm0, %v40_v25 }
  0x29   :  { %524 = vmatpush.msra.mxu3 %v1793_v27 }
  0x2f   :  { %1365 = vmatmul.msk.f32.gmra.mxu0 %vm58_vm0, %v41_v28 }
  0x30   :  { %1382 = vmatmul.msk.f32.gmra.mxu1 %vm58_vm0, %v41_v28 }
  0x37   :  { %1366 = vmatmul.msk.f32.gmra.mxu0 %vm58_vm0, %v42_v29 }
  0x38   :  { %1383 = vmatmul.msk.f32.gmra.mxu1 %vm58_vm0, %v42_v29 }
  0x3f   :  { %1367 = vmatmul.msk.f32.gmra.mxu0 %vm58_vm0, %v43_v30 }
  0x40   :  { %1384 = vmatmul.msk.f32.gmra.mxu1 %vm58_vm0, %v43_v30 }
  0x47   :  { %1368 = vmatmul.msk.f32.gmra.mxu0 %vm58_vm0, %v44_v31 }
  0x48   :  { %1385 = vmatmul.msk.f32.gmra.mxu1 %vm58_vm0, %v44_v31 }
  0x4f   :  { %1369 = vmatmul.msk.f32.gmra.mxu0 %vm58_vm0, %v45_v32 }
  0x50   :  { %1386 = vmatmul.msk.f32.gmra.mxu1 %vm58_vm0, %v45_v32 }
  0x94   :  { %v100_v35 = vpop.f32.mrf.mxu0  ;;  %v227_v39 = vpop.f32.mrf.mxu2 }
  0x95   :  { %v163_v36 = vpop.f32.mrf.mxu1  ;;  %v101_v37 = vadd.f32 %v1834_v33, %v100_v35 }
  0x96   :  { %v1840_v38 = vadd.f32 %v1441_v34, %v163_v36 }
  0x97   :  { %v230_v40 = vadd.f32 %v227_v39, %v101_v37 }
  0x99   :  { %1442 = vtanh.f32 %v230_v40  ;;  %v1387_v59 = vmul.f32 -1.442695, %v230_v40 }
  0x9d   :  { %v166_v41 = vpop.f32.mrf.mxu1  ;;  %v250_v55 = vpop.f32.mrf.mxu3 }
  0x9e   :  { %v1842_v42 = vadd.f32 %v1441_v34, %v166_v41 }
  0x9f   :  { %v1443_v43 = vpop.eup %1442 }
  0xa0   :  { %276 = vrot.lane.b32.xlu0 %v1443_v43, %s1657_s0 }
  0xa5   :  { %v169_v44 = vpop.f32.mrf.mxu1 }
  0xa6   :  { %v1845_v45 = vadd.f32 %v1441_v34, %v169_v44 }
  0xad   :  { %v172_v46 = vpop.f32.mrf.mxu1 }
  0xae   :  { %v1847_v47 = vadd.f32 %v1441_v34, %v172_v46 }
  0xb5   :  { %v175_v48 = vpop.f32.mrf.mxu1 }
  0xb6   :  { %v1849_v49 = vadd.f32 %v1441_v34, %v175_v48 }
  0xbd   :  { %v178_v50 = vpop.f32.mrf.mxu1 }
  0xbe   :  { %v1851_v51 = vadd.f32 %v1441_v34, %v178_v50 }
  0xc5   :  { %v181_v52 = vpop.f32.mrf.mxu1 }
  0xc6   :  { %v1853_v53 = vadd.f32 %v1441_v34, %v181_v52 }
  0xcd   :  { %v184_v54 = vpop.f32.mrf.mxu1 }
  0xce   :  { %v185_v56 = vadd.f32 %v1441_v34, %v184_v54 }
  0xd0   :  { %v253_v57 = vadd.f32 %v250_v55, %v185_v56  ;;  %v103_v55 = vpop.f32.mrf.mxu0 }
  0xd1   :  { %v104_v56 = vadd.f32 %v1834_v33, %v103_v55 }
  0xd2   :  { %1444 = vtanh.f32 %v253_v57  ;;  %v1388_v13 = vmul.f32 -1.442695, %v253_v57 }
  0xd3   :  { %1446 = vpow2.f32 %v1387_v59 }
  0xd8   :  { %v1445_v58 = vpop.eup %1444 }
  0xd9   :  { %313 = vrot.lane.b32.xlu0 %v1445_v58, %s1657_s0  ;;  %v1447_v60 = vpop.eup %1446 }
  0xda   :  { %v257_v61 = vadd.f32 1.0, %v1447_v60 }
  0xdc   :  { %1448 = vrcp.f32 %v257_v61  ;;  %vm263_vm1 = vweird.f32 %v257_v61  ;;  %v269_v2 = vand.u32 2147483648, %v257_v61  ;;  %v267_v4 = vand.u32 2147483647, %v257_v61 }
  0xdd   :  { %1450 = vpow2.f32 %v1388_v13 }
  0xde   :  { %v270_v5 = vor.u32 1.1754944e-38, %v269_v2  ;;  %vm268_vm4 = vcmp.eq.f32.partialorder %v267_v4, 8.507059e+37 }
  0xe2   :  { %v1449_v62 = vpop.eup %1448 }
  0xe3   :  { %v259_v63 = vmul.f32 %v1449_v62, %v257_v61  ;;  %vm264_vm2 = vweird.f32 %v1449_v62  ;;  %v1451_v15 = vpop.eup %1450 }
  0xe4   :  { %vm265_vm3 = vmor %vm263_vm1, %vm264_vm2  ;;  %v294_v16 = vadd.f32 1.0, %v1451_v15 }
  0xe5   :  { %v260_v0 = vsub.f32 1.0, %v259_v63 }
  0xe6   :  { %1452 = vrcp.f32 %v294_v16  ;;  %v306_v22 = vand.u32 2147483648, %v294_v16  ;;  %vm300_vm6 = vweird.f32 %v294_v16  ;;  %v304_v25 = vand.u32 2147483647, %v294_v16 }
  0xe7   :  { %v261_v1 = vmul.f32 %v1449_v62, %v260_v0 }
  0xe8   :  { %v307_v29 = vor.u32 1.1754944e-38, %v306_v22  ;;  %vm305_vm8 = vcmp.eq.f32.partialorder %v304_v25, 8.507059e+37 }
  0xe9   :  { %v262_v3 = vadd.f32 %v1449_v62, %v261_v1 }
  0xeb   :  { %v266_v8 = vsel %vm265_vm3, %v1449_v62, %v262_v3 }
  0xec   :  { %v271_v11 = vsel %vm268_vm4, %v270_v5, %v266_v8  ;;  %v1453_v17 = vpop.eup %1452 }
  0xed   :  { %v296_v18 = vmul.f32 %v1453_v17, %v294_v16  ;;  %vm301_vm5 = vweird.f32 %v1453_v17  ;;  %v274_v34 = vmul.f32 0.0, %v271_v11 }
  0xee   :  { %vm302_vm7 = vmor %vm300_vm6, %vm301_vm5 }
  0xef   :  { %v297_v19 = vsub.f32 1.0, %v296_v18 }
  0xf1   :  { %v298_v20 = vmul.f32 %v1453_v17, %v297_v19 }
  0xf3   :  { %v299_v21 = vadd.f32 %v1453_v17, %v298_v20 }
  0xf5   :  { %v303_v28 = vsel %vm302_vm7, %v1453_v17, %v299_v21 }
  0xf6   :  { %v308_v30 = vsel %vm305_vm8, %v307_v29, %v303_v28 }
  0xf7   :  { %v311_v39 = vmul.f32 0.0, %v308_v30 }
 0x112   :  { %v277_v9 = vpop.permute.xlu0 %276 }
 0x113   :  { %v279_v12 = vmul.f32 %v277_v9, %v271_v11 }
 0x115   :  { %281 = vrot.lane.b32.xlu1 %v279_v12, %s1657_s0 }
 0x14b   :  { %v314_v31 = vpop.permute.xlu0 %313 }
 0x14c   :  { %v316_v32 = vmul.f32 %v314_v31, %v308_v30 }
 0x14e   :  { %318 = vrot.lane.b32.xlu1 %v316_v32, %s1657_s0 }
 0x187   :  { %v282_v35 = vpop.permute.xlu1 %281 }
 0x188   :  { %v1858_v36 = vadd.f32 %v282_v35, %v274_v34 }
 0x18a   :  { %1454 = vtanh.f32 %v1858_v36 }
 0x190   :  { %v1455_v37 = vpop.eup %1454 }
 0x191   :  { %287 = vrot.lane.b32.xlu2 %v1455_v37, %s1657_s0 }
 0x1c0   :  { %v319_v40 = vpop.permute.xlu1 %318 }
 0x1c1   :  { %v1862_v41 = vadd.f32 %v319_v40, %v311_v39 }
 0x1c3   :  { %1456 = vtanh.f32 %v1862_v41 }
 0x1c9   :  { %v1457_v43 = vpop.eup %1456 }
 0x1ca   :  { %324 = vrot.lane.b32.xlu2 %v1457_v43, %s1657_s0 }
 0x1eb   :  { %v288_v44 = vpop.permute.xlu2 %287 }
 0x1ec   :  { %v290_v46 = vmul.f32 %v288_v44, %v271_v11 }
 0x1ee   :  { %329 = vrot.lane.b32.xlu0 %v290_v46, %s1658_s8 }
 0x224   :  { %v325_v48 = vpop.permute.xlu2 %324 }
 0x225   :  { %v1867_v50 = vmul.f32 %v325_v48, %v308_v30 }
 0x227   :  { %367 = vrot.lane.b32.xlu1 %v1867_v50, %s1658_s8 }
 0x260   :  { %v330_v52 = vpop.permute.xlu0 %329 }
 0x261   :  { %332 = vst.msk [vmem:[%s2177_s4] sm:$0xff] %vm206_vm9, %v330_v52  ;;  %1390 = vmatmul.msk.f32.vlgmr.msrb.gmra.mxu2 %vm206_vm9, %v330_v52 }
 0x262   :  { %632 = vmatpush.msrb.mxu2 %v1721_v6 }
 0x264   :  { %633 = vmatpush.msrb.mxu2 %v1723_v7 }
 0x266   :  { %634 = vmatpush.msrb.mxu2 %v1732_v10 }
 0x268   :  { %635 = vmatpush.msrb.mxu2 %v1744_v14 }
 0x299   :  { %v368_v54 = vpop.permute.xlu1 %367 }
 0x29a   :  { %1391 = vmatmul.msk.f32.vlgmr.msrb.gmra.mxu3 %vm206_vm9, %v368_v54 }
 0x29b   :  { %659 = vmatpush.msrb.mxu3 %v1777_v23 }
 0x29d   :  { %660 = vmatpush.msrb.mxu3 %v1779_v24 }
 0x29f   :  { %661 = vmatpush.msrb.mxu3 %v1791_v26 }
 0x2a1   :  { %662 = vmatpush.msrb.mxu3 %v1793_v27 }
 0x2e4   :  { %v361_v57 = vpop.f32.mrf.mxu2 }
 0x2e5   :  { %v364_v58 = vadd.f32 %v361_v57, %v104_v56 }
 0x2e7   :  { %1458 = vtanh.f32 %v364_v58  ;;  %v1392_v60 = vmul.f32 -1.442695, %v364_v58 }
 0x2e9   :  { %1460 = vpow2.f32 %v1392_v60 }
 0x2ed   :  { %v1459_v59 = vpop.eup %1458 }
 0x2ee   :  { %414 = vrot.lane.b32.xlu2 %v1459_v59, %s1657_s0  ;;  %v106_v59 = vpop.f32.mrf.mxu0 }
 0x2ef   :  { %v1461_v63 = vpop.eup %1460  ;;  %v107_v60 = vadd.f32 %v1834_v33, %v106_v59 }
 0x2f0   :  { %v395_v1 = vadd.f32 1.0, %v1461_v63 }
 0x2f2   :  { %v407_v9 = vand.u32 2147483648, %v395_v1  ;;  %vm401_vm11 = vweird.f32 %v395_v1  ;;  %v405_v11 = vand.u32 2147483647, %v395_v1 }
 0x2f4   :  { %vm406_vm13 = vcmp.eq.f32.partialorder %v405_v11, 8.507059e+37 }
 0x31d   :  { %v388_v61 = vpop.f32.mrf.mxu3 }
 0x31e   :  { %v391_v62 = vadd.f32 %v388_v61, %v1853_v53  ;;  %v408_v53 = vor.u32 1.1754944e-38, %v407_v9 }
 0x320   :  { %1462 = vtanh.f32 %v391_v62  ;;  %v1393_v17 = vmul.f32 -1.442695, %v391_v62 }
 0x321   :  { %1464 = vrcp.f32 %v395_v1 }
 0x322   :  { %1466 = vpow2.f32 %v1393_v17 }
 0x326   :  { %v1463_v0 = vpop.eup %1462 }
 0x327   :  { %451 = vrot.lane.b32.xlu0 %v1463_v0, %s1657_s0  ;;  %v1465_v2 = vpop.eup %1464 }
 0x328   :  { %v397_v3 = vmul.f32 %v1465_v2, %v395_v1  ;;  %vm402_vm10 = vweird.f32 %v1465_v2  ;;  %v1467_v18 = vpop.eup %1466 }
 0x329   :  { %vm403_vm12 = vmor %vm401_vm11, %vm402_vm10  ;;  %v432_v19 = vadd.f32 1.0, %v1467_v18 }
 0x32a   :  { %v398_v4 = vsub.f32 1.0, %v397_v3 }
 0x32b   :  { %1468 = vrcp.f32 %v432_v19  ;;  %v444_v29 = vand.u32 2147483648, %v432_v19  ;;  %vm438_vm15 = vweird.f32 %v432_v19  ;;  %v442_v30 = vand.u32 2147483647, %v432_v19 }
 0x32c   :  { %v399_v5 = vmul.f32 %v1465_v2, %v398_v4 }
 0x32d   :  { %v445_v32 = vor.u32 1.1754944e-38, %v444_v29  ;;  %vm443_vm1 = vcmp.eq.f32.partialorder %v442_v30, 8.507059e+37 }
 0x32e   :  { %v400_v8 = vadd.f32 %v1465_v2, %v399_v5 }
 0x330   :  { %v404_v12 = vsel %vm403_vm12, %v1465_v2, %v400_v8 }
 0x331   :  { %v409_v13 = vsel %vm406_vm13, %v408_v53, %v404_v12  ;;  %v1469_v20 = vpop.eup %1468 }
 0x332   :  { %v434_v21 = vmul.f32 %v1469_v20, %v432_v19  ;;  %vm439_vm14 = vweird.f32 %v1469_v20  ;;  %v412_v39 = vmul.f32 %v409_v13, %v1858_v36 }
 0x333   :  { %vm440_vm0 = vmor %vm438_vm15, %vm439_vm14 }
 0x334   :  { %v435_v22 = vsub.f32 1.0, %v434_v21 }
 0x336   :  { %v436_v25 = vmul.f32 %v1469_v20, %v435_v22 }
 0x338   :  { %v437_v28 = vadd.f32 %v1469_v20, %v436_v25 }
 0x33a   :  { %v441_v31 = vsel %vm440_vm0, %v1469_v20, %v437_v28 }
 0x33b   :  { %v446_v35 = vsel %vm443_vm1, %v445_v32, %v441_v31 }
 0x33c   :  { %v449_v46 = vmul.f32 %v446_v35, %v1862_v41 }
 0x348   :  { %v415_v15 = vpop.permute.xlu2 %414 }
 0x349   :  { %v417_v16 = vmul.f32 %v415_v15, %v409_v13 }
 0x34b   :  { %419 = vrot.lane.b32.xlu1 %v417_v16, %s1657_s0 }
 0x399   :  { %v452_v34 = vpop.permute.xlu0 %451 }
 0x39a   :  { %v454_v37 = vmul.f32 %v452_v34, %v446_v35 }
 0x39c   :  { %456 = vrot.lane.b32.xlu2 %v454_v37, %s1657_s0 }
 0x3bd   :  { %v420_v40 = vpop.permute.xlu1 %419 }
 0x3be   :  { %v1892_v43 = vadd.f32 %v420_v40, %v412_v39 }
 0x3c0   :  { %1470 = vtanh.f32 %v1892_v43 }
 0x3c6   :  { %v1471_v44 = vpop.eup %1470 }
 0x3c7   :  { %425 = vrot.lane.b32.xlu0 %v1471_v44, %s1657_s0 }
 0x3f6   :  { %v457_v48 = vpop.permute.xlu2 %456 }
 0x3f7   :  { %v1897_v52 = vadd.f32 %v457_v48, %v449_v46 }
 0x3f9   :  { %1472 = vtanh.f32 %v1897_v52 }
 0x3ff   :  { %v1473_v54 = vpop.eup %1472 }
 0x400   :  { %462 = vrot.lane.b32.xlu1 %v1473_v54, %s1657_s0 }
 0x439   :  { %v426_v55 = vpop.permute.xlu0 %425 }
 0x43a   :  { %v428_v36 = vmul.f32 %v426_v55, %v409_v13 }
 0x43c   :  { %467 = vrot.lane.b32.xlu2 %v428_v36, %s1658_s8 }
 0x472   :  { %v463_v56 = vpop.permute.xlu1 %462 }
 0x473   :  { %v1902_v57 = vmul.f32 %v463_v56, %v446_v35 }
 0x475   :  { %505 = vrot.lane.b32.xlu0 %v1902_v57, %s1658_s8 }
 0x496   :  { %v468_v58 = vpop.permute.xlu2 %467 }
 0x497   :  { %1394 = vst.msk [vmem:[%s2177_s4 + $0x8] sm:$0xff] %vm206_vm9, %v468_v58  ;;  %1396 = vmatmul.msk.f32.vlgmr.msra.gmra.mxu2 %vm206_vm9, %v468_v58 }
 0x498   :  { %770 = vmatpush.msra.mxu2 %v1721_v6 }
 0x49a   :  { %771 = vmatpush.msra.mxu2 %v1723_v7 }
 0x49c   :  { %772 = vmatpush.msra.mxu2 %v1732_v10 }
 0x49e   :  { %773 = vmatpush.msra.mxu2 %v1744_v14 }
 0x4e7   :  { %v506_v41 = vpop.permute.xlu0 %505 }
 0x4e8   :  { %1397 = vmatmul.msk.f32.vlgmr.msra.gmra.mxu3 %vm206_vm9, %v506_v41 }
 0x4e9   :  { %797 = vmatpush.msra.mxu3 %v1777_v23 }
 0x4eb   :  { %798 = vmatpush.msra.mxu3 %v1779_v24 }
 0x4ed   :  { %799 = vmatpush.msra.mxu3 %v1791_v26 }
 0x4ef   :  { %800 = vmatpush.msra.mxu3 %v1793_v27 }
 0x51a   :  { %v499_v61 = vpop.f32.mrf.mxu2 }
 0x51b   :  { %v502_v62 = vadd.f32 %v499_v61, %v107_v60 }
 0x51d   :  { %1474 = vtanh.f32 %v502_v62  ;;  %v1398_v0 = vmul.f32 -1.442695, %v502_v62 }
 0x51f   :  { %1476 = vpow2.f32 %v1398_v0 }
 0x523   :  { %v1475_v63 = vpop.eup %1474 }
 0x524   :  { %552 = vrot.lane.b32.xlu1 %v1475_v63, %s1657_s0  ;;  %v109_v63 = vpop.f32.mrf.mxu0 }
 0x525   :  { %v1477_v3 = vpop.eup %1476  ;;  %v110_v0 = vadd.f32 %v1834_v33, %v109_v63 }
 0x526   :  { %v533_v5 = vadd.f32 1.0, %v1477_v3 }
 0x528   :  { %v545_v13 = vand.u32 2147483648, %v533_v5  ;;  %vm539_vm3 = vweird.f32 %v533_v5  ;;  %v543_v15 = vand.u32 2147483647, %v533_v5 }
 0x52a   :  { %vm544_vm5 = vcmp.eq.f32.partialorder %v543_v15, 8.507059e+37 }
 0x56b   :  { %v526_v1 = vpop.f32.mrf.mxu3 }
 0x56c   :  { %v529_v2 = vadd.f32 %v526_v1, %v1851_v51  ;;  %v546_v51 = vor.u32 1.1754944e-38, %v545_v13 }
 0x56e   :  { %1478 = vtanh.f32 %v529_v2  ;;  %v1399_v20 = vmul.f32 -1.442695, %v529_v2 }
 0x56f   :  { %1480 = vrcp.f32 %v533_v5 }
 0x570   :  { %1482 = vpow2.f32 %v1399_v20 }
 0x574   :  { %v1479_v4 = vpop.eup %1478 }
 0x575   :  { %589 = vrot.lane.b32.xlu2 %v1479_v4, %s1657_s0  ;;  %v1481_v8 = vpop.eup %1480 }
 0x576   :  { %v535_v9 = vmul.f32 %v1481_v8, %v533_v5  ;;  %vm540_vm2 = vweird.f32 %v1481_v8  ;;  %v1483_v21 = vpop.eup %1482 }
 0x577   :  { %vm541_vm4 = vmor %vm539_vm3, %vm540_vm2  ;;  %v570_v22 = vadd.f32 1.0, %v1483_v21 }
 0x578   :  { %v536_v11 = vsub.f32 1.0, %v535_v9 }
 0x579   :  { %1484 = vrcp.f32 %v570_v22  ;;  %v582_v32 = vand.u32 2147483648, %v570_v22  ;;  %vm576_vm7 = vweird.f32 %v570_v22  ;;  %v580_v34 = vand.u32 2147483647, %v570_v22 }
 0x57a   :  { %v537_v12 = vmul.f32 %v1481_v8, %v536_v11 }
 0x57b   :  { %v583_v37 = vor.u32 1.1754944e-38, %v582_v32  ;;  %vm581_vm10 = vcmp.eq.f32.partialorder %v580_v34, 8.507059e+37 }
 0x57c   :  { %v538_v53 = vadd.f32 %v1481_v8, %v537_v12 }
 0x57e   :  { %v542_v16 = vsel %vm541_vm4, %v1481_v8, %v538_v53 }
 0x57f   :  { %v547_v18 = vsel %vm544_vm5, %v546_v51, %v542_v16  ;;  %v1485_v25 = vpop.eup %1484 }
 0x580   :  { %v572_v28 = vmul.f32 %v1485_v25, %v570_v22  ;;  %vm577_vm6 = vweird.f32 %v1485_v25  ;;  %v550_v46 = vmul.f32 %v547_v18, %v1892_v43 }
 0x581   :  { %vm578_vm8 = vmor %vm576_vm7, %vm577_vm6 }
 0x582   :  { %v573_v29 = vsub.f32 1.0, %v572_v28 }
 0x584   :  { %v574_v30 = vmul.f32 %v1485_v25, %v573_v29 }
 0x586   :  { %v575_v31 = vadd.f32 %v1485_v25, %v574_v30 }
 0x588   :  { %v579_v35 = vsel %vm578_vm8, %v1485_v25, %v575_v31 }
 0x589   :  { %v584_v39 = vsel %vm581_vm10, %v583_v37, %v579_v35 }
 0x58a   :  { %v587_v36 = vmul.f32 %v584_v39, %v1897_v52 }
 0x596   :  { %v553_v17 = vpop.permute.xlu1 %552 }
 0x597   :  { %v555_v19 = vmul.f32 %v553_v17, %v547_v18 }
 0x599   :  { %557 = vrot.lane.b32.xlu0 %v555_v19, %s1657_s0 }
 0x5cf   :  { %v590_v40 = vpop.permute.xlu2 %589 }
 0x5d0   :  { %v592_v44 = vmul.f32 %v590_v40, %v584_v39 }
 0x5d2   :  { %594 = vrot.lane.b32.xlu1 %v592_v44, %s1657_s0 }
 0x60b   :  { %v558_v48 = vpop.permute.xlu0 %557 }
 0x60c   :  { %v1927_v54 = vadd.f32 %v558_v48, %v550_v46 }
 0x60e   :  { %1486 = vtanh.f32 %v1927_v54 }
 0x614   :  { %v1487_v55 = vpop.eup %1486 }
 0x615   :  { %563 = vrot.lane.b32.xlu2 %v1487_v55, %s1657_s0 }
 0x644   :  { %v595_v56 = vpop.permute.xlu1 %594 }
 0x645   :  { %v1932_v58 = vadd.f32 %v595_v56, %v587_v36 }
 0x647   :  { %1488 = vtanh.f32 %v1932_v58 }
 0x64d   :  { %v1489_v41 = vpop.eup %1488 }
 0x64e   :  { %600 = vrot.lane.b32.xlu0 %v1489_v41, %s1657_s0 }
 0x66f   :  { %v564_v59 = vpop.permute.xlu2 %563 }
 0x670   :  { %v566_v43 = vmul.f32 %v564_v59, %v547_v18 }
 0x672   :  { %605 = vrot.lane.b32.xlu1 %v566_v43, %s1658_s8 }
 0x6c0   :  { %v601_v60 = vpop.permute.xlu0 %600 }
 0x6c1   :  { %v1937_v61 = vmul.f32 %v601_v60, %v584_v39 }
 0x6c3   :  { %643 = vrot.lane.b32.xlu2 %v1937_v61, %s1658_s8 }
 0x6e4   :  { %v606_v62 = vpop.permute.xlu1 %605 }
 0x6e5   :  { %1400 = vst.msk [vmem:[%s2177_s4 + $0x10] sm:$0xff] %vm206_vm9, %v606_v62  ;;  %1402 = vmatmul.msk.f32.vlgmr.msrb.gmra.mxu2 %vm206_vm9, %v606_v62 }
 0x6e6   :  { %906 = vmatpush.msrb.mxu2 %v1721_v6 }
 0x6e8   :  { %907 = vmatpush.msrb.mxu2 %v1723_v7 }
 0x6ea   :  { %908 = vmatpush.msrb.mxu2 %v1732_v10 }
 0x6ec   :  { %909 = vmatpush.msrb.mxu2 %v1744_v14 }
 0x71d   :  { %v644_v52 = vpop.permute.xlu2 %643 }
 0x71e   :  { %1403 = vmatmul.msk.f32.vlgmr.msrb.gmra.mxu3 %vm206_vm9, %v644_v52 }
 0x71f   :  { %933 = vmatpush.msrb.mxu3 %v1777_v23 }
 0x721   :  { %934 = vmatpush.msrb.mxu3 %v1779_v24 }
 0x723   :  { %935 = vmatpush.msrb.mxu3 %v1791_v26 }
 0x725   :  { %936 = vmatpush.msrb.mxu3 %v1793_v27 }
 0x768   :  { %v637_v1 = vpop.f32.mrf.mxu2 }
 0x769   :  { %v640_v2 = vadd.f32 %v637_v1, %v110_v0 }
 0x76b   :  { %1490 = vtanh.f32 %v640_v2  ;;  %v1404_v9 = vmul.f32 -1.442695, %v640_v2 }
 0x771   :  { %v1491_v3 = vpop.eup %1490 }
 0x772   :  { %690 = vrot.lane.b32.xlu0 %v1491_v3, %s1657_s0  ;;  %v112_v3 = vpop.f32.mrf.mxu0 }
 0x7a1   :  { %v664_v4 = vpop.f32.mrf.mxu3 }
 0x7a2   :  { %v667_v5 = vadd.f32 %v664_v4, %v1849_v49 }
 0x7a4   :  { %1492 = vtanh.f32 %v667_v5  ;;  %v1405_v25 = vmul.f32 -1.442695, %v667_v5 }
 0x7a5   :  { %1494 = vpow2.f32 %v1404_v9 }
 0x7aa   :  { %v1493_v8 = vpop.eup %1492 }
 0x7ab   :  { %727 = vrot.lane.b32.xlu1 %v1493_v8, %s1657_s0  ;;  %v1495_v11 = vpop.eup %1494 }
 0x7ac   :  { %v671_v12 = vadd.f32 1.0, %v1495_v11 }
 0x7ae   :  { %1496 = vrcp.f32 %v671_v12  ;;  %v683_v17 = vand.u32 2147483648, %v671_v12  ;;  %vm677_vm12 = vweird.f32 %v671_v12  ;;  %v681_v18 = vand.u32 2147483647, %v671_v12 }
 0x7af   :  { %1498 = vpow2.f32 %v1405_v25 }
 0x7b0   :  { %v684_v19 = vor.u32 1.1754944e-38, %v683_v17  ;;  %vm682_vm14 = vcmp.eq.f32.partialorder %v681_v18, 8.507059e+37 }
 0x7b4   :  { %v1497_v53 = vpop.eup %1496 }
 0x7b5   :  { %v673_v13 = vmul.f32 %v1497_v53, %v671_v12  ;;  %vm678_vm11 = vweird.f32 %v1497_v53  ;;  %v1499_v28 = vpop.eup %1498 }
 0x7b6   :  { %vm679_vm13 = vmor %vm677_vm12, %vm678_vm11  ;;  %v708_v29 = vadd.f32 1.0, %v1499_v28 }
 0x7b7   :  { %v674_v15 = vsub.f32 1.0, %v673_v13 }
 0x7b8   :  { %1500 = vrcp.f32 %v708_v29  ;;  %v720_v37 = vand.u32 2147483648, %v708_v29  ;;  %vm714_vm0 = vweird.f32 %v708_v29  ;;  %v718_v39 = vand.u32 2147483647, %v708_v29 }
 0x7b9   :  { %v675_v16 = vmul.f32 %v1497_v53, %v674_v15 }
 0x7ba   :  { %v721_v44 = vor.u32 1.1754944e-38, %v720_v37  ;;  %vm719_vm2 = vcmp.eq.f32.partialorder %v718_v39, 8.507059e+37 }
 0x7bb   :  { %v676_v51 = vadd.f32 %v1497_v53, %v675_v16 }
 0x7bd   :  { %v680_v49 = vsel %vm679_vm13, %v1497_v53, %v676_v51 }
 0x7be   :  { %v685_v21 = vsel %vm682_vm14, %v684_v19, %v680_v49  ;;  %v1501_v30 = vpop.eup %1500 }
 0x7bf   :  { %v710_v31 = vmul.f32 %v1501_v30, %v708_v29  ;;  %vm715_vm15 = vweird.f32 %v1501_v30  ;;  %v688_v36 = vmul.f32 %v685_v21, %v1927_v54 }
 0x7c0   :  { %vm716_vm1 = vmor %vm714_vm0, %vm715_vm15 }
 0x7c1   :  { %v711_v32 = vsub.f32 1.0, %v710_v31 }
 0x7c3   :  { %v712_v34 = vmul.f32 %v1501_v30, %v711_v32 }
 0x7c5   :  { %v713_v35 = vadd.f32 %v1501_v30, %v712_v34 }
 0x7c7   :  { %v717_v40 = vsel %vm716_vm1, %v1501_v30, %v713_v35 }
 0x7c8   :  { %v722_v48 = vsel %vm719_vm2, %v721_v44, %v717_v40 }
 0x7c9   :  { %v725_v43 = vmul.f32 %v722_v48, %v1932_v58 }
 0x7e4   :  { %v691_v20 = vpop.permute.xlu0 %690 }
 0x7e5   :  { %v693_v22 = vmul.f32 %v691_v20, %v685_v21 }
 0x7e7   :  { %695 = vrot.lane.b32.xlu2 %v693_v22, %s1657_s0 }
 0x81d   :  { %v728_v46 = vpop.permute.xlu1 %727 }
 0x81e   :  { %v730_v55 = vmul.f32 %v728_v46, %v722_v48 }
 0x820   :  { %732 = vrot.lane.b32.xlu0 %v730_v55, %s1657_s0 }
 0x841   :  { %v696_v56 = vpop.permute.xlu2 %695 }
 0x842   :  { %v1962_v41 = vadd.f32 %v696_v56, %v688_v36 }
 0x844   :  { %1502 = vtanh.f32 %v1962_v41 }
 0x84a   :  { %v1503_v59 = vpop.eup %1502 }
 0x84b   :  { %701 = vrot.lane.b32.xlu1 %v1503_v59, %s1657_s0 }
 0x892   :  { %v733_v60 = vpop.permute.xlu0 %732 }
 0x893   :  { %v1967_v62 = vadd.f32 %v733_v60, %v725_v43 }
 0x895   :  { %1504 = vtanh.f32 %v1967_v62 }
 0x89b   :  { %v1505_v52 = vpop.eup %1504 }
 0x89c   :  { %738 = vrot.lane.b32.xlu2 %v1505_v52, %s1657_s0 }
 0x8bd   :  { %v702_v63 = vpop.permute.xlu1 %701 }
 0x8be   :  { %v704_v54 = vmul.f32 %v702_v63, %v685_v21 }
 0x8c0   :  { %743 = vrot.lane.b32.xlu0 %v704_v54, %s1658_s8 }
 0x8f6   :  { %v739_v0 = vpop.permute.xlu2 %738 }
 0x8f7   :  { %v1972_v1 = vmul.f32 %v739_v0, %v722_v48 }
 0x8f9   :  { %781 = vrot.lane.b32.xlu1 %v1972_v1, %s1658_s8 }
 0x932   :  { %v744_v2 = vpop.permute.xlu0 %743 }
 0x933   :  { %1406 = vst.msk [vmem:[%s2177_s4 + $0x18] sm:$0xff] %vm206_vm9, %v744_v2  ;;  %1408 = vmatmul.msk.f32.vlgmr.msra.gmra.mxu2 %vm206_vm9, %v744_v2 }
 0x934   :  { %1042 = vmatpush.msra.mxu2 %v1721_v6  ;;  %v113_v6 = vadd.f32 %v1834_v33, %v112_v3  ;;  %v1571_v3 = vld [vmem:[#allocation3 + $0x10] sm:$0xff] }
 0x936   :  { %1043 = vmatpush.msra.mxu2 %v1723_v7 }
 0x938   :  { %1044 = vmatpush.msra.mxu2 %v1732_v10 }
 0x93a   :  { %1045 = vmatpush.msra.mxu2 %v1744_v14 }
 0x96b   :  { %v782_v58 = vpop.permute.xlu1 %781 }
 0x96c   :  { %1409 = vmatmul.msk.f32.vlgmr.msra.gmra.mxu3 %vm206_vm9, %v782_v58 }
 0x96d   :  { %1069 = vmatpush.msra.mxu3 %v1777_v23 }
 0x96f   :  { %1070 = vmatpush.msra.mxu3 %v1779_v24 }
 0x971   :  { %1071 = vmatpush.msra.mxu3 %v1791_v26 }
 0x973   :  { %1072 = vmatpush.msra.mxu3 %v1793_v27 }
 0x9b6   :  { %v775_v4 = vpop.f32.mrf.mxu2 }
 0x9b7   :  { %v778_v7 = vadd.f32 %v775_v4, %v113_v6  ;;  %v1572_v6 = vld [vmem:[#allocation3 + $0x8] sm:$0xff]  ;;  %v1573_v4 = vld [vmem:[#allocation3] sm:$0xff] }
 0x9b9   :  { %1506 = vtanh.f32 %v778_v7  ;;  %v1410_v14 = vmul.f32 -1.442695, %v778_v7 }
 0x9bb   :  { %1508 = vpow2.f32 %v1410_v14 }
 0x9bf   :  { %v1507_v10 = vpop.eup %1506 }
 0x9c0   :  { %828 = vrot.lane.b32.xlu2 %v1507_v10, %s1657_s0  ;;  %v115_v10 = vpop.f32.mrf.mxu0 }
 0x9c1   :  { %v1509_v9 = vpop.eup %1508  ;;  %v116_v14 = vadd.f32 %v1834_v33, %v115_v10 }
 0x9c2   :  { %v809_v12 = vadd.f32 1.0, %v1509_v9 }
 0x9c4   :  { %v821_v17 = vand.u32 2147483648, %v809_v12  ;;  %vm815_vm4 = vweird.f32 %v809_v12  ;;  %v819_v18 = vand.u32 2147483647, %v809_v12 }
 0x9c6   :  { %vm820_vm6 = vcmp.eq.f32.partialorder %v819_v18, 8.507059e+37 }
 0x9ef   :  { %v802_v5 = vpop.f32.mrf.mxu3 }
 0x9f0   :  { %v805_v8 = vadd.f32 %v802_v5, %v1847_v47  ;;  %v822_v47 = vor.u32 1.1754944e-38, %v821_v17 }
 0x9f2   :  { %1510 = vtanh.f32 %v805_v8  ;;  %v1411_v22 = vmul.f32 -1.442695, %v805_v8 }
 0x9f3   :  { %1512 = vrcp.f32 %v809_v12 }
 0x9f4   :  { %1514 = vpow2.f32 %v1411_v22 }
 0x9f8   :  { %v1511_v11 = vpop.eup %1510 }
 0x9f9   :  { %865 = vrot.lane.b32.xlu0 %v1511_v11, %s1657_s0  ;;  %v1513_v53 = vpop.eup %1512 }
 0x9fa   :  { %v811_v13 = vmul.f32 %v1513_v53, %v809_v12  ;;  %vm816_vm3 = vweird.f32 %v1513_v53  ;;  %v1515_v25 = vpop.eup %1514 }
 0x9fb   :  { %vm817_vm5 = vmor %vm815_vm4, %vm816_vm3  ;;  %v846_v28 = vadd.f32 1.0, %v1515_v25 }
 0x9fc   :  { %v812_v15 = vsub.f32 1.0, %v811_v13 }
 0x9fd   :  { %1516 = vrcp.f32 %v846_v28  ;;  %v858_v35 = vand.u32 2147483648, %v846_v28  ;;  %vm852_vm8 = vweird.f32 %v846_v28  ;;  %v856_v37 = vand.u32 2147483647, %v846_v28 }
 0x9fe   :  { %v813_v16 = vmul.f32 %v1513_v53, %v812_v15 }
 0x9ff   :  { %v859_v40 = vor.u32 1.1754944e-38, %v858_v35  ;;  %vm857_vm11 = vcmp.eq.f32.partialorder %v856_v37, 8.507059e+37 }
 0xa00   :  { %v814_v51 = vadd.f32 %v1513_v53, %v813_v16 }
 0xa02   :  { %v818_v49 = vsel %vm817_vm5, %v1513_v53, %v814_v51 }
 0xa03   :  { %v823_v19 = vsel %vm820_vm6, %v822_v47, %v818_v49  ;;  %v1517_v29 = vpop.eup %1516 }
 0xa04   :  { %v848_v30 = vmul.f32 %v1517_v29, %v846_v28  ;;  %vm853_vm7 = vweird.f32 %v1517_v29  ;;  %v826_v55 = vmul.f32 %v823_v19, %v1962_v41 }
 0xa05   :  { %vm854_vm10 = vmor %vm852_vm8, %vm853_vm7 }
 0xa06   :  { %v849_v31 = vsub.f32 1.0, %v848_v30 }
 0xa08   :  { %v850_v32 = vmul.f32 %v1517_v29, %v849_v31 }
 0xa0a   :  { %v851_v34 = vadd.f32 %v1517_v29, %v850_v32 }
 0xa0c   :  { %v855_v39 = vsel %vm854_vm10, %v1517_v29, %v851_v34 }
 0xa0d   :  { %v860_v46 = vsel %vm857_vm11, %v859_v40, %v855_v39 }
 0xa0e   :  { %v863_v43 = vmul.f32 %v860_v46, %v1967_v62  ;;  %v1570_v62 = vld [vmem:[#allocation3 + $0x18] sm:$0xff] }
 0xa1a   :  { %v829_v20 = vpop.permute.xlu2 %828 }
 0xa1b   :  { %v831_v21 = vmul.f32 %v829_v20, %v823_v19 }
 0xa1d   :  { %833 = vrot.lane.b32.xlu1 %v831_v21, %s1657_s0 }
 0xa6b   :  { %v866_v44 = vpop.permute.xlu0 %865 }
 0xa6c   :  { %v868_v48 = vmul.f32 %v866_v44, %v860_v46 }
 0xa6e   :  { %870 = vrot.lane.b32.xlu2 %v868_v48, %s1657_s0 }
 0xa8f   :  { %v834_v36 = vpop.permute.xlu1 %833 }
 0xa90   :  { %v1997_v56 = vadd.f32 %v834_v36, %v826_v55 }
 0xa92   :  { %1518 = vtanh.f32 %v1997_v56 }
 0xa98   :  { %v1519_v59 = vpop.eup %1518 }
 0xa99   :  { %839 = vrot.lane.b32.xlu0 %v1519_v59, %s1657_s0 }
 0xac8   :  { %v871_v60 = vpop.permute.xlu2 %870 }
 0xac9   :  { %v2002_v52 = vadd.f32 %v871_v60, %v863_v43 }
 0xacb   :  { %1520 = vtanh.f32 %v2002_v52 }
 0xad1   :  { %v1521_v63 = vpop.eup %1520 }
 0xad2   :  { %876 = vrot.lane.b32.xlu1 %v1521_v63, %s1657_s0 }
 0xb0b   :  { %v840_v54 = vpop.permute.xlu0 %839 }
 0xb0c   :  { %v842_v41 = vmul.f32 %v840_v54, %v823_v19 }
 0xb0e   :  { %881 = vrot.lane.b32.xlu2 %v842_v41, %s1658_s8 }
 0xb44   :  { %v877_v0 = vpop.permute.xlu1 %876 }
 0xb45   :  { %v2007_v2 = vmul.f32 %v877_v0, %v860_v46 }
 0xb47   :  { %917 = vrot.lane.b32.xlu0 %v2007_v2, %s1658_s8 }
 0xb68   :  { %v2011_v58 = vpop.permute.xlu2 %881 }
 0xb69   :  { %1414 = vmatmul.msk.f32.vlgmr.msrb.gmra.mxu2 %vm206_vm9, %v2011_v58 }
 0xb6a   :  { %1178 = vmatpush.msrb.mxu2 %v1570_v62 }
 0xb6c   :  { %1179 = vmatpush.msrb.mxu2 %v1571_v3  ;;  %v118_v3 = vpop.f32.mrf.mxu0 }
 0xb6e   :  { %1180 = vmatpush.msrb.mxu2 %v1572_v6  ;;  %v2049_v6 = vld [vmem:[%s2176_s3] ss:$0 sm:$0xff]  ;;  %s1659_s3 = smov 96  }
 0xb70   :  { %1181 = vmatpush.msrb.mxu2 %v1573_v4  ;;  %v119_v4 = vadd.f32 %v2049_v6, %v118_v3 }
 0xbb9   :  { %v918_v7 = vpop.permute.xlu0 %917 }
 0xbba   :  { %1415 = vmatmul.msk.f32.vlgmr.msrb.gmra.mxu3 %vm206_vm9, %v918_v7 }
 0xbbb   :  { %1204 = vmatpush.msrb.mxu3 %v1777_v23 }
 0xbbd   :  { %1205 = vmatpush.msrb.mxu3 %v1779_v24 }
 0xbbf   :  { %1206 = vmatpush.msrb.mxu3 %v1791_v26 }
 0xbc1   :  { %1207 = vmatpush.msrb.mxu3 %v1793_v27 }
 0xbec   :  { %v911_v5 = vpop.f32.mrf.mxu2 }
 0xbed   :  { %v914_v8 = vadd.f32 %v911_v5, %v116_v14 }
 0xbef   :  { %1522 = vtanh.f32 %v914_v8  ;;  %v1416_v11 = vmul.f32 -1.442695, %v914_v8 }
 0xbf1   :  { %1524 = vpow2.f32 %v1416_v11 }
 0xbf5   :  { %v1523_v9 = vpop.eup %1522 }
 0xbf6   :  { %964 = vrot.lane.b32.xlu1 %v1523_v9, %s1657_s0 }
 0xbf7   :  { %v1525_v23 = vpop.eup %1524 }
 0xbf8   :  { %v945_v26 = vadd.f32 1.0, %v1525_v23 }
 0xbfa   :  { %v957_v51 = vand.u32 2147483648, %v945_v26  ;;  %vm951_vm13 = vweird.f32 %v945_v26  ;;  %v955_v17 = vand.u32 2147483647, %v945_v26 }
 0xbfc   :  { %vm956_vm15 = vcmp.eq.f32.partialorder %v955_v17, 8.507059e+37 }
 0xc3d   :  { %v938_v12 = vpop.f32.mrf.mxu3 }
 0xc3e   :  { %v941_v53 = vadd.f32 %v938_v12, %v1845_v45  ;;  %v958_v45 = vor.u32 1.1754944e-38, %v957_v51 }
 0xc40   :  { %1526 = vtanh.f32 %v941_v53  ;;  %v1417_v20 = vmul.f32 -1.442695, %v941_v53 }
 0xc41   :  { %1528 = vrcp.f32 %v945_v26 }
 0xc42   :  { %1530 = vpow2.f32 %v1417_v20 }
 0xc46   :  { %v1527_v24 = vpop.eup %1526 }
 0xc47   :  { %1001 = vrot.lane.b32.xlu2 %v1527_v24, %s1657_s0  ;;  %v1529_v27 = vpop.eup %1528 }
 0xc48   :  { %v947_v33 = vmul.f32 %v1529_v27, %v945_v26  ;;  %vm952_vm12 = vweird.f32 %v1529_v27  ;;  %v1531_v21 = vpop.eup %1530 }
 0xc49   :  { %vm953_vm14 = vmor %vm951_vm13, %vm952_vm12  ;;  %v982_v22 = vadd.f32 1.0, %v1531_v21 }
 0xc4a   :  { %v948_v13 = vsub.f32 1.0, %v947_v33 }
 0xc4b   :  { %1532 = vrcp.f32 %v982_v22  ;;  %v994_v32 = vand.u32 2147483648, %v982_v22  ;;  %vm988_vm1 = vweird.f32 %v982_v22  ;;  %v992_v34 = vand.u32 2147483647, %v982_v22 }
 0xc4c   :  { %v949_v15 = vmul.f32 %v1529_v27, %v948_v13 }
 0xc4d   :  { %v995_v37 = vor.u32 1.1754944e-38, %v994_v32  ;;  %vm993_vm3 = vcmp.eq.f32.partialorder %v992_v34, 8.507059e+37 }
 0xc4e   :  { %v950_v16 = vadd.f32 %v1529_v27, %v949_v15 }
 0xc50   :  { %v954_v18 = vsel %vm953_vm14, %v1529_v27, %v950_v16 }
 0xc51   :  { %v959_v47 = vsel %vm956_vm15, %v958_v45, %v954_v18  ;;  %v1533_v25 = vpop.eup %1532 }
 0xc52   :  { %v984_v28 = vmul.f32 %v1533_v25, %v982_v22  ;;  %vm989_vm0 = vweird.f32 %v1533_v25  ;;  %v962_v46 = vmul.f32 %v959_v47, %v1997_v56 }
 0xc53   :  { %vm990_vm2 = vmor %vm988_vm1, %vm989_vm0 }
 0xc54   :  { %v985_v29 = vsub.f32 1.0, %v984_v28 }
 0xc56   :  { %v986_v30 = vmul.f32 %v1533_v25, %v985_v29 }
 0xc58   :  { %v987_v31 = vadd.f32 %v1533_v25, %v986_v30 }
 0xc5a   :  { %v991_v35 = vsel %vm990_vm2, %v1533_v25, %v987_v31 }
 0xc5b   :  { %v996_v39 = vsel %vm993_vm3, %v995_v37, %v991_v35 }
 0xc5c   :  { %v999_v59 = vmul.f32 %v996_v39, %v2002_v52 }
 0xc68   :  { %v965_v49 = vpop.permute.xlu1 %964 }
 0xc69   :  { %v967_v19 = vmul.f32 %v965_v49, %v959_v47 }
 0xc6b   :  { %969 = vrot.lane.b32.xlu0 %v967_v19, %s1657_s0 }
 0xca1   :  { %v1002_v40 = vpop.permute.xlu2 %1001 }
 0xca2   :  { %v1004_v44 = vmul.f32 %v1002_v40, %v996_v39 }
 0xca4   :  { %1006 = vrot.lane.b32.xlu1 %v1004_v44, %s1657_s0 }
 0xcdd   :  { %v970_v48 = vpop.permute.xlu0 %969 }
 0xcde   :  { %v2027_v55 = vadd.f32 %v970_v48, %v962_v46 }
 0xce0   :  { %1534 = vtanh.f32 %v2027_v55 }
 0xce6   :  { %v1535_v36 = vpop.eup %1534 }
 0xce7   :  { %975 = vrot.lane.b32.xlu2 %v1535_v36, %s1657_s0 }
 0xd16   :  { %v1007_v43 = vpop.permute.xlu1 %1006 }
 0xd17   :  { %v2032_v60 = vadd.f32 %v1007_v43, %v999_v59 }
 0xd19   :  { %1536 = vtanh.f32 %v2032_v60 }
 0xd1f   :  { %v1537_v63 = vpop.eup %1536 }
 0xd20   :  { %1012 = vrot.lane.b32.xlu0 %v1537_v63, %s1657_s0 }
 0xd41   :  { %v976_v54 = vpop.permute.xlu2 %975 }
 0xd42   :  { %v978_v56 = vmul.f32 %v976_v54, %v959_v47 }
 0xd44   :  { %1017 = vrot.lane.b32.xlu1 %v978_v56, %s1658_s8 }
 0xd92   :  { %v1013_v41 = vpop.permute.xlu0 %1012 }
 0xd93   :  { %v2037_v0 = vmul.f32 %v1013_v41, %v996_v39  ;;  %v121_v41 = vpop.f32.mrf.mxu0 }
 0xd95   :  { %1053 = vrot.lane.b32.xlu2 %v2037_v0, %s1658_s8 }
 0xdb6   :  { %v2041_v62 = vpop.permute.xlu1 %1017 }
 0xdb7   :  { %1420 = vmatmul.msk.f32.vlgmr.msra.gmra.mxu2 %vm206_vm9, %v2041_v62 }
 0xdef   :  { %v1054_v52 = vpop.permute.xlu2 %1053 }
 0xdf0   :  { %1421 = vmatmul.msk.f32.vlgmr.msra.gmra.mxu3 %vm206_vm9, %v1054_v52  ;;  %v122_v52 = vadd.f32 %v2049_v6, %v121_v41 }
 0xe3a   :  { %v1047_v7 = vpop.f32.mrf.mxu2 }
 0xe3b   :  { %v1050_v10 = vadd.f32 %v1047_v7, %v119_v4 }
 0xe3d   :  { %1538 = vtanh.f32 %v1050_v10  ;;  %v1422_v11 = vmul.f32 -1.442695, %v1050_v10 }
 0xe43   :  { %v1539_v14 = vpop.eup %1538 }
 0xe44   :  { %1100 = vrot.lane.b32.xlu0 %v1539_v14, %s1657_s0 }
 0xe73   :  { %v1074_v5 = vpop.f32.mrf.mxu3 }
 0xe74   :  { %v1077_v8 = vadd.f32 %v1074_v5, %v1842_v42 }
 0xe76   :  { %1540 = vtanh.f32 %v1077_v8  ;;  %v1423_v45 = vmul.f32 -1.442695, %v1077_v8 }
 0xe77   :  { %1542 = vpow2.f32 %v1422_v11 }
 0xe7c   :  { %v1541_v9 = vpop.eup %1540 }
 0xe7d   :  { %1137 = vrot.lane.b32.xlu1 %v1541_v9, %s1657_s0  ;;  %v1543_v12 = vpop.eup %1542 }
 0xe7e   :  { %v1081_v53 = vadd.f32 1.0, %v1543_v12 }
 0xe80   :  { %1544 = vrcp.f32 %v1081_v53  ;;  %v1093_v13 = vand.u32 2147483648, %v1081_v53  ;;  %vm1087_vm5 = vweird.f32 %v1081_v53  ;;  %v1091_v15 = vand.u32 2147483647, %v1081_v53 }
 0xe81   :  { %1546 = vpow2.f32 %v1423_v45 }
 0xe82   :  { %v1094_v16 = vor.u32 1.1754944e-38, %v1093_v13  ;;  %vm1092_vm7 = vcmp.eq.f32.partialorder %v1091_v15, 8.507059e+37 }
 0xe86   :  { %v1545_v23 = vpop.eup %1544 }
 0xe87   :  { %v1083_v24 = vmul.f32 %v1545_v23, %v1081_v53  ;;  %vm1088_vm4 = vweird.f32 %v1545_v23  ;;  %v1547_v49 = vpop.eup %1546 }
 0xe88   :  { %vm1089_vm6 = vmor %vm1087_vm5, %vm1088_vm4  ;;  %v1118_v47 = vadd.f32 1.0, %v1547_v49  ;;  %vm338_vm5 = vcmask 523520  }
 0xe89   :  { %v1084_v26 = vsub.f32 1.0, %v1083_v24 }
 0xe8a   :  { %1548 = vrcp.f32 %v1118_v47  ;;  %v1130_v28 = vand.u32 2147483648, %v1118_v47  ;;  %vm1124_vm10 = vweird.f32 %v1118_v47  ;;  %v1128_v29 = vand.u32 2147483647, %v1118_v47 }
 0xe8b   :  { %v1085_v27 = vmul.f32 %v1545_v23, %v1084_v26 }
 0xe8c   :  { %v1131_v31 = vor.u32 1.1754944e-38, %v1130_v28  ;;  %vm1129_vm12 = vcmp.eq.f32.partialorder %v1128_v29, 8.507059e+37 }
 0xe8d   :  { %v1086_v33 = vadd.f32 %v1545_v23, %v1085_v27 }
 0xe8f   :  { %v1090_v42 = vsel %vm1089_vm6, %v1545_v23, %v1086_v33 }
 0xe90   :  { %v1095_v17 = vsel %vm1092_vm7, %v1094_v16, %v1090_v42  ;;  %v1549_v19 = vpop.eup %1548 }
 0xe91   :  { %v1120_v20 = vmul.f32 %v1549_v19, %v1118_v47  ;;  %vm1125_vm8 = vweird.f32 %v1549_v19  ;;  %v1098_v37 = vmul.f32 %v1095_v17, %v2027_v55 }
 0xe92   :  { %vm1126_vm11 = vmor %vm1124_vm10, %vm1125_vm8 }
 0xe93   :  { %v1121_v21 = vsub.f32 1.0, %v1120_v20 }
 0xe95   :  { %v1122_v22 = vmul.f32 %v1549_v19, %v1121_v21 }
 0xe97   :  { %v1123_v25 = vadd.f32 %v1549_v19, %v1122_v22 }
 0xe99   :  { %v1127_v30 = vsel %vm1126_vm11, %v1549_v19, %v1123_v25 }
 0xe9a   :  { %v1132_v34 = vsel %vm1129_vm12, %v1131_v31, %v1127_v30 }
 0xe9b   :  { %v1135_v46 = vmul.f32 %v1132_v34, %v2032_v60 }
 0xeb6   :  { %v1101_v51 = vpop.permute.xlu0 %1100 }
 0xeb7   :  { %v1103_v18 = vmul.f32 %v1101_v51, %v1095_v17 }
 0xeb9   :  { %1105 = vrot.lane.b32.xlu2 %v1103_v18, %s1657_s0 }
 0xeef   :  { %v1138_v32 = vpop.permute.xlu1 %1137 }
 0xef0   :  { %v1140_v35 = vmul.f32 %v1138_v32, %v1132_v34 }
 0xef2   :  { %1142 = vrot.lane.b32.xlu0 %v1140_v35, %s1657_s0 }
 0xf13   :  { %v1106_v39 = vpop.permute.xlu2 %1105 }
 0xf14   :  { %v2058_v40 = vadd.f32 %v1106_v39, %v1098_v37 }
 0xf16   :  { %1550 = vtanh.f32 %v2058_v40 }
 0xf1c   :  { %v1551_v44 = vpop.eup %1550 }
 0xf1d   :  { %1111 = vrot.lane.b32.xlu1 %v1551_v44, %s1657_s0 }
 0xf64   :  { %v1143_v48 = vpop.permute.xlu0 %1142 }
 0xf65   :  { %v2063_v36 = vadd.f32 %v1143_v48, %v1135_v46 }
 0xf67   :  { %1552 = vtanh.f32 %v2063_v36 }
 0xf6d   :  { %v1553_v59 = vpop.eup %1552 }
 0xf6e   :  { %1148 = vrot.lane.b32.xlu2 %v1553_v59, %s1657_s0 }
 0xf8f   :  { %v1112_v43 = vpop.permute.xlu1 %1111 }
 0xf90   :  { %v1114_v55 = vmul.f32 %v1112_v43, %v1095_v17 }
 0xf92   :  { %1153 = vrot.lane.b32.xlu0 %v1114_v55, %s1658_s8 }
 0xfc8   :  { %v1149_v63 = vpop.permute.xlu2 %1148 }
 0xfc9   :  { %v2068_v54 = vmul.f32 %v1149_v63, %v1132_v34 }
 0xfcb   :  { %1188 = vrot.lane.b32.xlu1 %v2068_v54, %s1658_s8 }
0x1004   :  { %v2072_v56 = vpop.permute.xlu0 %1153 }
0x1005   :  { %1426 = vmatmul.msk.f32.vlgmr.msrb.gmra.mxu2 %vm206_vm9, %v2072_v56 }
0x103d   :  { %v1189_v60 = vpop.permute.xlu1 %1188 }
0x103e   :  { %1427 = vmatmul.msk.f32.vlgmr.msrb.gmra.mxu3 %vm206_vm9, %v1189_v60 }
0x1088   :  { %v1183_v3 = vpop.f32.mrf.mxu2 }
0x1089   :  { %v1186_v4 = vadd.f32 %v1183_v3, %v122_v52 }
0x108b   :  { %1554 = vtanh.f32 %v1186_v4  ;;  %v1428_v10 = vmul.f32 -1.442695, %v1186_v4 }
0x108d   :  { %1556 = vpow2.f32 %v1428_v10 }
0x1091   :  { %v1555_v7 = vpop.eup %1554 }
0x1092   :  { %1235 = vrot.lane.b32.xlu2 %v1555_v7, %s1657_s0 }
0x1093   :  { %v1557_v8 = vpop.eup %1556 }
0x1094   :  { %v1216_v11 = vadd.f32 1.0, %v1557_v8 }
0x1096   :  { %v1228_v26 = vand.u32 2147483648, %v1216_v11  ;;  %vm1222_vm14 = vweird.f32 %v1216_v11  ;;  %v1226_v27 = vand.u32 2147483647, %v1216_v11 }
0x1098   :  { %vm1227_vm0 = vcmp.eq.f32.partialorder %v1226_v27, 8.507059e+37 }
0x10c1   :  { %v1209_v14 = vpop.f32.mrf.mxu3 }
0x10c2   :  { %v1212_v5 = vadd.f32 %v1209_v14, %v1840_v38  ;;  %v1229_v38 = vor.u32 1.1754944e-38, %v1228_v26 }
0x10c4   :  { %1558 = vtanh.f32 %v1212_v5  ;;  %v1429_v16 = vmul.f32 -1.442695, %v1212_v5 }
0x10c5   :  { %1560 = vrcp.f32 %v1216_v11 }
0x10c6   :  { %1562 = vpow2.f32 %v1429_v16 }
0x10ca   :  { %v1559_v9 = vpop.eup %1558 }
0x10cb   :  { %1272 = vrot.lane.b32.xlu0 %v1559_v9, %s1657_s0  ;;  %v1561_v12 = vpop.eup %1560 }
0x10cc   :  { %v1218_v6 = vmul.f32 %v1561_v12, %v1216_v11  ;;  %vm1223_vm13 = vweird.f32 %v1561_v12  ;;  %v1563_v51 = vpop.eup %1562 }
0x10cd   :  { %vm1224_vm15 = vmor %vm1222_vm14, %vm1223_vm13  ;;  %v1253_v17 = vadd.f32 1.0, %v1563_v51 }
0x10ce   :  { %v1219_v53 = vsub.f32 1.0, %v1218_v6 }
0x10cf   :  { %1564 = vrcp.f32 %v1253_v17  ;;  %v1265_v20 = vand.u32 2147483648, %v1253_v17  ;;  %vm1259_vm2 = vweird.f32 %v1253_v17  ;;  %v1263_v21 = vand.u32 2147483647, %v1253_v17 }
0x10d0   :  { %v1220_v23 = vmul.f32 %v1561_v12, %v1219_v53 }
0x10d1   :  { %v1266_v25 = vor.u32 1.1754944e-38, %v1265_v20  ;;  %vm1264_vm4 = vcmp.eq.f32.partialorder %v1263_v21, 8.507059e+37 }
0x10d2   :  { %v1221_v24 = vadd.f32 %v1561_v12, %v1220_v23 }
0x10d4   :  { %v1225_v33 = vsel %vm1224_vm15, %v1561_v12, %v1221_v24 }
0x10d5   :  { %v1230_v13 = vsel %vm1227_vm0, %v1229_v38, %v1225_v33  ;;  %v1565_v18 = vpop.eup %1564 }
0x10d6   :  { %v1255_v45 = vmul.f32 %v1565_v18, %v1253_v17  ;;  %vm1260_vm1 = vweird.f32 %v1565_v18  ;;  %v1233_v31 = vmul.f32 %v1230_v13, %v2058_v40 }
0x10d7   :  { %vm1261_vm3 = vmor %vm1259_vm2, %vm1260_vm1 }
0x10d8   :  { %v1256_v49 = vsub.f32 1.0, %v1255_v45 }
0x10da   :  { %v1257_v47 = vmul.f32 %v1565_v18, %v1256_v49 }
0x10dc   :  { %v1258_v19 = vadd.f32 %v1565_v18, %v1257_v47 }
0x10de   :  { %v1262_v22 = vsel %vm1261_vm3, %v1565_v18, %v1258_v19 }
0x10df   :  { %v1267_v29 = vsel %vm1264_vm4, %v1266_v25, %v1262_v22 }
0x10e0   :  { %v1270_v37 = vmul.f32 %v1267_v29, %v2063_v36 }
0x10ec   :  { %v1236_v15 = vpop.permute.xlu2 %1235 }
0x10ed   :  { %v1238_v42 = vmul.f32 %v1236_v15, %v1230_v13 }
0x10ef   :  { %1240 = vrot.lane.b32.xlu1 %v1238_v42, %s1657_s0 }
0x113d   :  { %v1273_v28 = vpop.permute.xlu0 %1272 }
0x113e   :  { %v1275_v30 = vmul.f32 %v1273_v28, %v1267_v29 }
0x1140   :  { %1277 = vrot.lane.b32.xlu2 %v1275_v30, %s1657_s0 }
0x1148   :  { %334 = vrot.lane.b32.xlu2 %v1867_v50, %s1659_s3 }
0x1150   :  { %749 = vrot.lane.b32.xlu2 %v1972_v1, %s1659_s3 }
0x1161   :  { %v1241_v32 = vpop.permute.xlu1 %1240 }
0x1162   :  { %v1243_v34 = vadd.f32 %v1241_v32, %v1233_v31 }
0x1164   :  { %1566 = vtanh.f32 %v1243_v34 }
0x116a   :  { %v1567_v35 = vpop.eup %1566 }
0x116b   :  { %1246 = vrot.lane.b32.xlu0 %v1567_v35, %s1657_s0 }
0x1173   :  { %473 = vrot.lane.b32.xlu0 %v1902_v57, %s1659_s3 }
0x119a   :  { %v1278_v39 = vpop.permute.xlu2 %1277 }
0x119b   :  { %v1280_v44 = vadd.f32 %v1278_v39, %v1270_v37 }
0x119d   :  { %1568 = vtanh.f32 %v1280_v44  ;;  %1309 = vrot.lane.b32.xlu0 %v1280_v44, %s1659_s3 }
0x11a2   :  { %v335_v50 = vpop.permute.xlu2 %334 }
0x11a3   :  { %v1569_v1 = vpop.eup %1568  ;;  %1389 = vst.msk [vmem:[%s2177_s4 + $0x38] sm:$0xff] %vm338_vm5, %v335_v50 }
0x11a4   :  { %1283 = vrot.lane.b32.xlu1 %v1569_v1, %s1657_s0 }
0x11aa   :  { %v750_v40 = vpop.permute.xlu2 %749 }
0x11ab   :  { %1407 = vst.msk [vmem:[%s2177_s4 + $0x20] sm:$0xff] %vm338_vm5, %v750_v40 }
0x11ac   :  { %1412 = vst.msk [vmem:[%s2177_s4 + $0x20] sm:$0xff] %vm206_vm9, %v2011_v58  ;;  %611 = vrot.lane.b32.xlu1 %v1937_v61, %s1659_s3 }
0x11b4   :  { %1299 = vrot.lane.b32.xlu1 %v1243_v34, %s1659_s3 }
0x11bc   :  { %886 = vrot.lane.b32.xlu1 %v2007_v2, %s1659_s3 }
0x11dd   :  { %v1247_v57 = vpop.permute.xlu0 %1246 }
0x11de   :  { %v1249_v46 = vmul.f32 %v1247_v57, %v1230_v13 }
0x11e0   :  { %1288 = vrot.lane.b32.xlu0 %v1249_v46, %s1658_s8 }
0x11e5   :  { %v474_v48 = vpop.permute.xlu0 %473 }
0x11e6   :  { %1395 = vst.msk [vmem:[%s2177_s4 + $0x30] sm:$0xff] %vm338_vm5, %v474_v48 }
0x11e7   :  { %1424 = vst.msk [vmem:[%s2177_s4 + $0x30] sm:$0xff] %vm206_vm9, %v2072_v56 }
0x11e8   :  { %1158 = vrot.lane.b32.xlu0 %v2068_v54, %s1659_s3 }
0x120f   :  { %v1310_v61 = vpop.permute.xlu0 %1309 }
0x1210   :  { %1313 = vst.msk [vmem:[#allocation7 + $0x8] sm:$0xff] %vm206_vm9, %v1310_v61 }
0x1216   :  { %v1284_v2 = vpop.permute.xlu1 %1283 }
0x1217   :  { %v1286_v58 = vmul.f32 %v1284_v2, %v1267_v29 }
0x1219   :  { %1293 = vrot.lane.b32.xlu1 %v1286_v58, %s1659_s3  ;;  %1303 = vrot.lane.b32.xlu2 %v1286_v58, %s1658_s8  ;;  %s1335_s8 = sshll.u32 %s2179_s6, 4  ;;  %s1336_s8 = int_to_ptr.hbm [resolvable:$true] %s1335_s8 }
0x121e   :  { %v612_v36 = vpop.permute.xlu1 %611 }
0x121f   :  { %1401 = vst.msk [vmem:[%s2177_s4 + $0x28] sm:$0xff] %vm338_vm5, %v612_v36 }
0x1220   :  { %1418 = vst.msk [vmem:[%s2177_s4 + $0x28] sm:$0xff] %vm206_vm9, %v2041_v62 }
0x1221   :  { %1022 = vrot.lane.b32.xlu2 %v2037_v0, %s1659_s3  ;;  %s1320_s3 = sshll.u32 %s1661_s17, 4  ;;  %s1321_s3 = int_to_ptr.vmem [resolvable:$true] %s1320_s3 }
0x1226   :  { %v1300_v59 = vpop.permute.xlu1 %1299 }
0x1227   :  { %1302 = vst.msk [vmem:[#allocation7] sm:$0xff] %vm206_vm9, %v1300_v59 }
0x1228   :  { %1341 = dma.vmem_to_hbm [thread:$0]  %s1334_s10, 256, %s1336_s8, [#allocation8], %s1654_s26, %s1654_s26, %s1655_s27  }
0x122e   :  { %v887_v43 = vpop.permute.xlu1 %886 }
0x122f   :  { %1413 = vst.msk [vmem:[%s2177_s4 + $0x18] sm:$0xff] %vm338_vm5, %v887_v43 }
0x1252   :  { %v1289_v0 = vpop.permute.xlu0 %1288 }
0x1253   :  { %1430 = vst.msk [vmem:[%s2177_s4 + $0x38] sm:$0xff] %vm206_vm9, %v1289_v0 }
0x1254   :  { %1297 = vst.msk [vmem:[#allocation6] sm:$0xff] %vm206_vm9, %v1289_v0 }
0x125a   :  { %v1159_v62 = vpop.permute.xlu0 %1158 }
0x125b   :  { %1425 = vst.msk [vmem:[%s2177_s4 + $0x8] sm:$0xff] %vm338_vm5, %v1159_v62 }
0x1273   :  { %v1304_v55 = vpop.permute.xlu2 %1303 }
0x1274   :  { %1307 = vst.msk [vmem:[#allocation6 + $0x8] sm:$0xff] %vm206_vm9, %v1304_v55 }
0x1275   :  { %1328 = dma.vmem_to_hbm [thread:$0]  %s1321_s3, 256, %s1323_s20, [#allocation5], %s1654_s26, %s1654_s26, %s1655_s27  }
0x127b   :  { %v1023_v63 = vpop.permute.xlu2 %1022 }
0x127c   :  { %1419 = vst.msk [vmem:[%s2177_s4 + $0x10] sm:$0xff] %vm338_vm5, %v1023_v63 }
0x128b   :  { %v1294_v54 = vpop.permute.xlu1 %1293 }
0x128c   :  { %1296 = vst.msk [vmem:[%s2177_s4] sm:$0xff] %vm338_vm5, %v1294_v54 }
0x128d   :  { %1649 = dma.done.wait [#allocation5], 256  }
0x128e   :  { %1650 = vsyncadd [#allocation5], 4294967040 }
0x128f   :  { %1651 = dma.done.wait [#allocation8], 256  }
0x1290   :  { %1652 = vsyncadd [#allocation8], 4294967040 }
0x1291   :  { %1352 = vsyncpa [#allocation4], 1 }
0x1292   :  { %1353 = vsyncpa [#allocation5], 1 }
0x1293   :  { %1354 = vsyncpa [#allocation8], 1 }

// kernel: encoder_forward.3
= control target key start
LH: loop header
LB: loop body
LE: loop exit
PB: predicated region body
PF: predicated region fallthrough
CT: control target
= control target key end

     0   :  { %vm36_vm0 = vcmask 261120   ;;  %v1515_v13 = vmov 0.0   ;;  %s1517_s24 = smov 64   ;;  %s2034_s1 = inlined_call_operand.vmem [shape: f32[2,32,128], index: 1, kind: input, shape index: {}]   ;;  %s2035_s2 = inlined_call_operand.vmem [shape: f32[2,32,128], index: 2, kind: input, shape index: {}]   ;;  %s2036_s0 = inlined_call_operand.vmem [shape: f32[8,8,32], index: 0, kind: input, shape index: {}]   ;;  %s2037_s3 = inlined_call_operand.vmem [shape: f32[2,1,128], index: 3, kind: input, shape index: {}]   ;;  %s2038_s4 = inlined_call_operand.vmem [shape: f32[8,8,64], index: 4, kind: output, shape index: {0}]   ;;  %s2039_s6 = inlined_call_operand.vmem [shape: f32[2,8,32], index: 6, kind: output, shape index: {2}]   ;;  %s2040_s5 = inlined_call_operand.vmem [shape: f32[2,8,32], index: 5, kind: output, shape index: {1}]  }
   0x1   :  { %v1317_v0 = vld [vmem:[%s2034_s1 + $0x38] sm:$0xff]  ;;  %v1316_v2 = vld [vmem:[%s2034_s1 + $0x30] sm:$0xff]  ;;  %v1315_v5 = vld [vmem:[%s2034_s1 + $0x28] sm:$0xff] }
   0x2   :  { %v1560_v1 = vld [vmem:[%s2035_s2 + $0x18] sm:$0xff]  ;;  %132 = vmatpush.msra.mxu1 %v1317_v0  ;;  %v1569_v3 = vld [vmem:[%s2035_s2 + $0x10] sm:$0xff]  ;;  %v1580_v6 = vld [vmem:[%s2035_s2 + $0x8] sm:$0xff] }
   0x3   :  { %195 = vmatpush.msra.mxu2 %v1560_v1  ;;  %v31_v4 = vld [vmem:[%s2034_s1 + $0x18] sm:$0xff]  ;;  %v30_v7 = vld [vmem:[%s2034_s1 + $0x10] sm:$0xff]  ;;  %v29_v8 = vld [vmem:[%s2034_s1 + $0x8] sm:$0xff] }
   0x4   :  { %73 = vmatpush.msra.mxu0 %v31_v4  ;;  %133 = vmatpush.msra.mxu1 %v1316_v2  ;;  %v1314_v9 = vld [vmem:[%s2034_s1 + $0x20] sm:$0xff]  ;;  %v21_v14 = vld [vmem:[%s2036_s0 + $0x8] sm:$0xff]  ;;  %v1618_v15 = vld [vmem:[%s2035_s2 + $0x38] sm:$0xff] }
   0x5   :  { %196 = vmatpush.msra.mxu2 %v1569_v3  ;;  %v1595_v10 = vld [vmem:[%s2035_s2] sm:$0xff]  ;;  %v1623_v16 = vld [vmem:[%s2035_s2 + $0x30] sm:$0xff]  ;;  %218 = vmatpush.msra.mxu3 %v1618_v15  ;;  %v1639_v18 = vld [vmem:[%s2035_s2 + $0x28] sm:$0xff] }
   0x6   :  { %74 = vmatpush.msra.mxu0 %v30_v7  ;;  %134 = vmatpush.msra.mxu1 %v1315_v5  ;;  %v20_v11 = vld [vmem:[%s2036_s0] sm:$0xff]  ;;  %v22_v17 = vld [vmem:[%s2036_s0 + $0x10] sm:$0xff]  ;;  %v23_v20 = vld [vmem:[%s2036_s0 + $0x18] sm:$0xff] }
   0x7   :  { %197 = vmatpush.msra.mxu2 %v1580_v6  ;;  %v28_v12 = vld [vmem:[%s2034_s1] sm:$0xff]  ;;  %219 = vmatpush.msra.mxu3 %v1623_v16  ;;  %v25_v22 = vld [vmem:[%s2036_s0 + $0x28] sm:$0xff]  ;;  %v26_v23 = vld [vmem:[%s2036_s0 + $0x30] sm:$0xff] }
   0x8   :  { %75 = vmatpush.msra.mxu0 %v29_v8  ;;  %135 = vmatpush.msra.mxu1 %v1314_v9  ;;  %v1644_v19 = vld [vmem:[%s2035_s2 + $0x20] sm:$0xff]  ;;  %v27_v24 = vld [vmem:[%s2036_s0 + $0x38] sm:$0xff] }
   0x9   :  { %198 = vmatpush.msra.mxu2 %v1595_v10  ;;  %1319 = vmatmul.msk.f32.vlgmr.msra.gmra.mxu1 %vm36_vm0, %v20_v11  ;;  %v24_v21 = vld [vmem:[%s2036_s0 + $0x20] sm:$0xff]  ;;  %s1516_s0 = smov 32  }
   0xa   :  { %199 = vmatmul.f32.vlgmr.msra.gmra.mxu2 %v1515_v13  ;;  %76 = vmatpush.msra.mxu0 %v28_v12  ;;  %v1381_v25 = vld [vmem:[%s2037_s3 + $0x1] ss:$0 sm:$0xff]  ;;  %v1688_v26 = vld [vmem:[%s2037_s3] ss:$0 sm:$0xff] }
   0xb   :  { %329 = vmatpush.msrb.mxu2 %v1560_v1  ;;  %1306 = vmatmul.msk.f32.vlgmr.msra.gmra.mxu0 %vm36_vm0, %v20_v11 }
   0xc   :  { %220 = vmatpush.msra.mxu3 %v1639_v18 }
   0xd   :  { %330 = vmatpush.msrb.mxu2 %v1569_v3 }
   0xe   :  { %221 = vmatpush.msra.mxu3 %v1644_v19 }
   0xf   :  { %331 = vmatpush.msrb.mxu2 %v1580_v6  ;;  %222 = vmatmul.f32.vlgmr.msra.gmra.mxu3 %v1515_v13 }
  0x10   :  { %356 = vmatpush.msrb.mxu3 %v1618_v15 }
  0x11   :  { %332 = vmatpush.msrb.mxu2 %v1595_v10  ;;  %1320 = vmatmul.msk.f32.gmra.mxu1 %vm36_vm0, %v21_v14 }
  0x12   :  { %357 = vmatpush.msrb.mxu3 %v1623_v16 }
  0x13   :  { %467 = vmatpush.msra.mxu2 %v1560_v1  ;;  %1307 = vmatmul.msk.f32.gmra.mxu0 %vm36_vm0, %v21_v14 }
  0x14   :  { %358 = vmatpush.msrb.mxu3 %v1639_v18 }
  0x15   :  { %468 = vmatpush.msra.mxu2 %v1569_v3 }
  0x16   :  { %359 = vmatpush.msrb.mxu3 %v1644_v19 }
  0x17   :  { %469 = vmatpush.msra.mxu2 %v1580_v6 }
  0x18   :  { %494 = vmatpush.msra.mxu3 %v1618_v15 }
  0x19   :  { %470 = vmatpush.msra.mxu2 %v1595_v10  ;;  %1321 = vmatmul.msk.f32.gmra.mxu1 %vm36_vm0, %v22_v17 }
  0x1a   :  { %495 = vmatpush.msra.mxu3 %v1623_v16 }
  0x1b   :  { %1308 = vmatmul.msk.f32.gmra.mxu0 %vm36_vm0, %v22_v17 }
  0x1c   :  { %496 = vmatpush.msra.mxu3 %v1639_v18 }
  0x1e   :  { %497 = vmatpush.msra.mxu3 %v1644_v19 }
  0x21   :  { %1322 = vmatmul.msk.f32.gmra.mxu1 %vm36_vm0, %v23_v20 }
  0x23   :  { %1309 = vmatmul.msk.f32.gmra.mxu0 %vm36_vm0, %v23_v20 }
  0x29   :  { %1323 = vmatmul.msk.f32.gmra.mxu1 %vm36_vm0, %v24_v21 }
  0x2b   :  { %1310 = vmatmul.msk.f32.gmra.mxu0 %vm36_vm0, %v24_v21 }
  0x31   :  { %1324 = vmatmul.msk.f32.gmra.mxu1 %vm36_vm0, %v25_v22 }
  0x33   :  { %1311 = vmatmul.msk.f32.gmra.mxu0 %vm36_vm0, %v25_v22 }
  0x39   :  { %1325 = vmatmul.msk.f32.gmra.mxu1 %vm36_vm0, %v26_v23 }
  0x3b   :  { %1312 = vmatmul.msk.f32.gmra.mxu0 %vm36_vm0, %v26_v23 }
  0x41   :  { %1326 = vmatmul.msk.f32.gmra.mxu1 %vm36_vm0, %v27_v24 }
  0x43   :  { %1313 = vmatmul.msk.f32.gmra.mxu0 %vm36_vm0, %v27_v24 }
  0x86   :  { %v137_v27 = vpop.f32.mrf.mxu1 }
  0x87   :  { %v1690_v28 = vadd.f32 %v1381_v25, %v137_v27 }
  0x88   :  { %v78_v29 = vpop.f32.mrf.mxu0 }
  0x89   :  { %v79_v30 = vadd.f32 %v1688_v26, %v78_v29 }
  0x8d   :  { %v200_v31 = vpop.f32.mrf.mxu2 }
  0x8e   :  { %v203_v32 = vadd.f32 %v200_v31, %v79_v30  ;;  %v140_v33 = vpop.f32.mrf.mxu1 }
  0x8f   :  { %v1693_v34 = vadd.f32 %v1381_v25, %v140_v33 }
  0x90   :  { %1383 = vtanh.f32 %v203_v32  ;;  %v1331_v51 = vmul.f32 -1.442695, %v203_v32 }
  0x92   :  { %v223_v47 = vpop.f32.mrf.mxu3 }
  0x96   :  { %v1384_v35 = vpop.eup %1383  ;;  %v143_v36 = vpop.f32.mrf.mxu1 }
  0x97   :  { %249 = vrot.lane.b32.xlu0 %v1384_v35, %s1516_s0  ;;  %v1696_v37 = vadd.f32 %v1381_v25, %v143_v36 }
  0x9e   :  { %v146_v38 = vpop.f32.mrf.mxu1 }
  0x9f   :  { %v1698_v39 = vadd.f32 %v1381_v25, %v146_v38 }
  0xa6   :  { %v149_v40 = vpop.f32.mrf.mxu1 }
  0xa7   :  { %v1700_v41 = vadd.f32 %v1381_v25, %v149_v40 }
  0xae   :  { %v152_v42 = vpop.f32.mrf.mxu1 }
  0xaf   :  { %v1702_v43 = vadd.f32 %v1381_v25, %v152_v42 }
  0xb6   :  { %v155_v44 = vpop.f32.mrf.mxu1 }
  0xb7   :  { %v1704_v45 = vadd.f32 %v1381_v25, %v155_v44 }
  0xbe   :  { %v158_v46 = vpop.f32.mrf.mxu1 }
  0xbf   :  { %v159_v48 = vadd.f32 %v1381_v25, %v158_v46 }
  0xc1   :  { %v226_v49 = vadd.f32 %v223_v47, %v159_v48  ;;  %v81_v47 = vpop.f32.mrf.mxu0 }
  0xc2   :  { %v82_v48 = vadd.f32 %v1688_v26, %v81_v47 }
  0xc3   :  { %1385 = vtanh.f32 %v226_v49  ;;  %v1332_v4 = vmul.f32 -1.442695, %v226_v49 }
  0xc4   :  { %1387 = vpow2.f32 %v1331_v51 }
  0xc9   :  { %v1386_v50 = vpop.eup %1385 }
  0xca   :  { %286 = vrot.lane.b32.xlu0 %v1386_v50, %s1516_s0  ;;  %v1388_v52 = vpop.eup %1387 }
  0xcb   :  { %v230_v53 = vadd.f32 1.0, %v1388_v52 }
  0xcd   :  { %1389 = vrcp.f32 %v230_v53  ;;  %vm236_vm1 = vweird.f32 %v230_v53  ;;  %v242_v58 = vand.u32 2147483648, %v230_v53  ;;  %v240_v60 = vand.u32 2147483647, %v230_v53 }
  0xce   :  { %1391 = vpow2.f32 %v1332_v4 }
  0xcf   :  { %v243_v61 = vor.u32 1.1754944e-38, %v242_v58  ;;  %vm241_vm4 = vcmp.eq.f32.partialorder %v240_v60, 8.507059e+37 }
  0xd3   :  { %v1390_v54 = vpop.eup %1389 }
  0xd4   :  { %v232_v55 = vmul.f32 %v1390_v54, %v230_v53  ;;  %vm237_vm2 = vweird.f32 %v1390_v54  ;;  %v1392_v5 = vpop.eup %1391 }
  0xd5   :  { %vm238_vm3 = vmor %vm236_vm1, %vm237_vm2  ;;  %v267_v7 = vadd.f32 1.0, %v1392_v5 }
  0xd6   :  { %v233_v56 = vsub.f32 1.0, %v232_v55 }
  0xd7   :  { %1393 = vrcp.f32 %v267_v7  ;;  %v279_v14 = vand.u32 2147483648, %v267_v7  ;;  %vm273_vm6 = vweird.f32 %v267_v7  ;;  %v277_v17 = vand.u32 2147483647, %v267_v7 }
  0xd8   :  { %v234_v57 = vmul.f32 %v1390_v54, %v233_v56 }
  0xd9   :  { %v280_v21 = vor.u32 1.1754944e-38, %v279_v14  ;;  %vm278_vm8 = vcmp.eq.f32.partialorder %v277_v17, 8.507059e+37 }
  0xda   :  { %v235_v59 = vadd.f32 %v1390_v54, %v234_v57 }
  0xdc   :  { %v239_v62 = vsel %vm238_vm3, %v1390_v54, %v235_v59 }
  0xdd   :  { %v244_v0 = vsel %vm241_vm4, %v243_v61, %v239_v62  ;;  %v1394_v8 = vpop.eup %1393 }
  0xde   :  { %v269_v9 = vmul.f32 %v1394_v8, %v267_v7  ;;  %vm274_vm5 = vweird.f32 %v1394_v8  ;;  %v247_v25 = vmul.f32 0.0, %v244_v0 }
  0xdf   :  { %vm275_vm7 = vmor %vm273_vm6, %vm274_vm5 }
  0xe0   :  { %v270_v11 = vsub.f32 1.0, %v269_v9 }
  0xe2   :  { %v271_v12 = vmul.f32 %v1394_v8, %v270_v11 }
  0xe4   :  { %v272_v13 = vadd.f32 %v1394_v8, %v271_v12 }
  0xe6   :  { %v276_v20 = vsel %vm275_vm7, %v1394_v8, %v272_v13 }
  0xe7   :  { %v281_v22 = vsel %vm278_vm8, %v280_v21, %v276_v20 }
  0xe8   :  { %v284_v31 = vmul.f32 0.0, %v281_v22 }
 0x109   :  { %v250_v63 = vpop.permute.xlu0 %249 }
 0x10a   :  { %v252_v2 = vmul.f32 %v250_v63, %v244_v0 }
 0x10c   :  { %254 = vrot.lane.b32.xlu1 %v252_v2, %s1516_s0 }
 0x13c   :  { %v287_v23 = vpop.permute.xlu0 %286 }
 0x13d   :  { %v289_v24 = vmul.f32 %v287_v23, %v281_v22 }
 0x13f   :  { %291 = vrot.lane.b32.xlu1 %v289_v24, %s1516_s0 }
 0x17e   :  { %v255_v27 = vpop.permute.xlu1 %254 }
 0x17f   :  { %v1709_v29 = vadd.f32 %v255_v27, %v247_v25 }
 0x181   :  { %1395 = vtanh.f32 %v1709_v29 }
 0x187   :  { %v1396_v30 = vpop.eup %1395 }
 0x188   :  { %260 = vrot.lane.b32.xlu2 %v1396_v30, %s1516_s0 }
 0x1b1   :  { %v292_v32 = vpop.permute.xlu1 %291 }
 0x1b2   :  { %v1713_v33 = vadd.f32 %v292_v32, %v284_v31 }
 0x1b4   :  { %1397 = vtanh.f32 %v1713_v33 }
 0x1ba   :  { %v1398_v35 = vpop.eup %1397 }
 0x1bb   :  { %297 = vrot.lane.b32.xlu2 %v1398_v35, %s1516_s0 }
 0x1e2   :  { %v261_v36 = vpop.permute.xlu2 %260 }
 0x1e3   :  { %v263_v38 = vmul.f32 %v261_v36, %v244_v0 }
 0x1e5   :  { %302 = vrot.lane.b32.xlu0 %v263_v38, %s1517_s24 }
 0x215   :  { %v298_v40 = vpop.permute.xlu2 %297 }
 0x216   :  { %v1718_v42 = vmul.f32 %v298_v40, %v281_v22 }
 0x218   :  { %340 = vrot.lane.b32.xlu1 %v1718_v42, %s1517_s24 }
 0x257   :  { %v303_v44 = vpop.permute.xlu0 %302 }
 0x258   :  { %305 = vst.msk [vmem:[%s2038_s4] sm:$0xff] %vm36_vm0, %v303_v44  ;;  %1334 = vmatmul.msk.f32.vlgmr.msrb.gmra.mxu2 %vm36_vm0, %v303_v44 }
 0x259   :  { %605 = vmatpush.msrb.mxu2 %v1560_v1 }
 0x25b   :  { %606 = vmatpush.msrb.mxu2 %v1569_v3 }
 0x25d   :  { %607 = vmatpush.msrb.mxu2 %v1580_v6 }
 0x25f   :  { %608 = vmatpush.msrb.mxu2 %v1595_v10 }
 0x28a   :  { %v341_v46 = vpop.permute.xlu1 %340 }
 0x28b   :  { %1335 = vmatmul.msk.f32.vlgmr.msrb.gmra.mxu3 %vm36_vm0, %v341_v46 }
 0x28c   :  { %632 = vmatpush.msrb.mxu3 %v1618_v15 }
 0x28e   :  { %633 = vmatpush.msrb.mxu3 %v1623_v16 }
 0x290   :  { %634 = vmatpush.msrb.mxu3 %v1639_v18 }
 0x292   :  { %635 = vmatpush.msrb.mxu3 %v1644_v19 }
 0x2db   :  { %v334_v49 = vpop.f32.mrf.mxu2 }
 0x2dc   :  { %v337_v50 = vadd.f32 %v334_v49, %v82_v48 }
 0x2de   :  { %1399 = vtanh.f32 %v337_v50  ;;  %v1336_v54 = vmul.f32 -1.442695, %v337_v50 }
 0x2e4   :  { %v1400_v51 = vpop.eup %1399 }
 0x2e5   :  { %387 = vrot.lane.b32.xlu2 %v1400_v51, %s1516_s0  ;;  %v84_v51 = vpop.f32.mrf.mxu0 }
 0x30e   :  { %v361_v52 = vpop.f32.mrf.mxu3 }
 0x30f   :  { %v364_v53 = vadd.f32 %v361_v52, %v1704_v45  ;;  %v85_v52 = vadd.f32 %v1688_v26, %v84_v51 }
 0x311   :  { %1401 = vtanh.f32 %v364_v53  ;;  %v1337_v8 = vmul.f32 -1.442695, %v364_v53 }
 0x312   :  { %1403 = vpow2.f32 %v1336_v54 }
 0x317   :  { %v1402_v55 = vpop.eup %1401 }
 0x318   :  { %424 = vrot.lane.b32.xlu0 %v1402_v55, %s1516_s0  ;;  %v1404_v56 = vpop.eup %1403 }
 0x319   :  { %v368_v57 = vadd.f32 1.0, %v1404_v56 }
 0x31b   :  { %1405 = vrcp.f32 %v368_v57  ;;  %v380_v63 = vand.u32 2147483648, %v368_v57  ;;  %vm374_vm10 = vweird.f32 %v368_v57  ;;  %v378_v0 = vand.u32 2147483647, %v368_v57 }
 0x31c   :  { %1407 = vpow2.f32 %v1337_v8 }
 0x31d   :  { %v381_v2 = vor.u32 1.1754944e-38, %v380_v63  ;;  %vm379_vm12 = vcmp.eq.f32.partialorder %v378_v0, 8.507059e+37 }
 0x321   :  { %v1406_v58 = vpop.eup %1405 }
 0x322   :  { %v370_v59 = vmul.f32 %v1406_v58, %v368_v57  ;;  %vm375_vm9 = vweird.f32 %v1406_v58  ;;  %v1408_v9 = vpop.eup %1407 }
 0x323   :  { %vm376_vm11 = vmor %vm374_vm10, %vm375_vm9  ;;  %v405_v11 = vadd.f32 1.0, %v1408_v9 }
 0x324   :  { %v371_v60 = vsub.f32 1.0, %v370_v59 }
 0x325   :  { %1409 = vrcp.f32 %v405_v11  ;;  %v417_v21 = vand.u32 2147483648, %v405_v11  ;;  %vm411_vm14 = vweird.f32 %v405_v11  ;;  %v415_v22 = vand.u32 2147483647, %v405_v11 }
 0x326   :  { %v372_v61 = vmul.f32 %v1406_v58, %v371_v60 }
 0x327   :  { %v418_v24 = vor.u32 1.1754944e-38, %v417_v21  ;;  %vm416_vm1 = vcmp.eq.f32.partialorder %v415_v22, 8.507059e+37 }
 0x328   :  { %v373_v62 = vadd.f32 %v1406_v58, %v372_v61 }
 0x32a   :  { %v377_v45 = vsel %vm376_vm11, %v1406_v58, %v373_v62 }
 0x32b   :  { %v382_v4 = vsel %vm379_vm12, %v381_v2, %v377_v45  ;;  %v1410_v12 = vpop.eup %1409 }
 0x32c   :  { %v407_v13 = vmul.f32 %v1410_v12, %v405_v11  ;;  %vm412_vm13 = vweird.f32 %v1410_v12  ;;  %v385_v31 = vmul.f32 %v382_v4, %v1709_v29 }
 0x32d   :  { %vm413_vm15 = vmor %vm411_vm14, %vm412_vm13 }
 0x32e   :  { %v408_v14 = vsub.f32 1.0, %v407_v13 }
 0x330   :  { %v409_v17 = vmul.f32 %v1410_v12, %v408_v14 }
 0x332   :  { %v410_v20 = vadd.f32 %v1410_v12, %v409_v17 }
 0x334   :  { %v414_v23 = vsel %vm413_vm15, %v1410_v12, %v410_v20 }
 0x335   :  { %v419_v27 = vsel %vm416_vm1, %v418_v24, %v414_v23 }
 0x336   :  { %v422_v38 = vmul.f32 %v419_v27, %v1713_v33 }
 0x33f   :  { %v388_v5 = vpop.permute.xlu2 %387 }
 0x340   :  { %v390_v7 = vmul.f32 %v388_v5, %v382_v4 }
 0x342   :  { %392 = vrot.lane.b32.xlu1 %v390_v7, %s1516_s0 }
 0x38a   :  { %v425_v25 = vpop.permute.xlu0 %424 }
 0x38b   :  { %v427_v30 = vmul.f32 %v425_v25, %v419_v27 }
 0x38d   :  { %429 = vrot.lane.b32.xlu2 %v427_v30, %s1516_s0 }
 0x3b4   :  { %v393_v32 = vpop.permute.xlu1 %392 }
 0x3b5   :  { %v1743_v35 = vadd.f32 %v393_v32, %v385_v31 }
 0x3b7   :  { %1411 = vtanh.f32 %v1743_v35 }
 0x3bd   :  { %v1412_v36 = vpop.eup %1411 }
 0x3be   :  { %398 = vrot.lane.b32.xlu0 %v1412_v36, %s1516_s0 }
 0x3e7   :  { %v430_v40 = vpop.permute.xlu2 %429 }
 0x3e8   :  { %v1748_v44 = vadd.f32 %v430_v40, %v422_v38 }
 0x3ea   :  { %1413 = vtanh.f32 %v1748_v44 }
 0x3f0   :  { %v1414_v46 = vpop.eup %1413 }
 0x3f1   :  { %435 = vrot.lane.b32.xlu1 %v1414_v46, %s1516_s0 }
 0x430   :  { %v399_v47 = vpop.permute.xlu0 %398 }
 0x431   :  { %v401_v29 = vmul.f32 %v399_v47, %v382_v4 }
 0x433   :  { %440 = vrot.lane.b32.xlu2 %v401_v29, %s1517_s24 }
 0x463   :  { %v436_v48 = vpop.permute.xlu1 %435 }
 0x464   :  { %v1753_v49 = vmul.f32 %v436_v48, %v419_v27 }
 0x466   :  { %478 = vrot.lane.b32.xlu0 %v1753_v49, %s1517_s24 }
 0x48d   :  { %v441_v50 = vpop.permute.xlu2 %440 }
 0x48e   :  { %1338 = vst.msk [vmem:[%s2038_s4 + $0x8] sm:$0xff] %vm36_vm0, %v441_v50  ;;  %1340 = vmatmul.msk.f32.vlgmr.msra.gmra.mxu2 %vm36_vm0, %v441_v50 }
 0x48f   :  { %743 = vmatpush.msra.mxu2 %v1560_v1 }
 0x491   :  { %744 = vmatpush.msra.mxu2 %v1569_v3 }
 0x493   :  { %745 = vmatpush.msra.mxu2 %v1580_v6 }
 0x495   :  { %746 = vmatpush.msra.mxu2 %v1595_v10 }
 0x4d8   :  { %v479_v33 = vpop.permute.xlu0 %478 }
 0x4d9   :  { %1341 = vmatmul.msk.f32.vlgmr.msra.gmra.mxu3 %vm36_vm0, %v479_v33 }
 0x4da   :  { %770 = vmatpush.msra.mxu3 %v1618_v15 }
 0x4dc   :  { %771 = vmatpush.msra.mxu3 %v1623_v16 }
 0x4de   :  { %772 = vmatpush.msra.mxu3 %v1639_v18 }
 0x4e0   :  { %773 = vmatpush.msra.mxu3 %v1644_v19 }
 0x511   :  { %v472_v53 = vpop.f32.mrf.mxu2 }
 0x512   :  { %v475_v54 = vadd.f32 %v472_v53, %v85_v52 }
 0x514   :  { %1415 = vtanh.f32 %v475_v54  ;;  %v1342_v58 = vmul.f32 -1.442695, %v475_v54 }
 0x51a   :  { %v1416_v55 = vpop.eup %1415 }
 0x51b   :  { %525 = vrot.lane.b32.xlu1 %v1416_v55, %s1516_s0  ;;  %v87_v55 = vpop.f32.mrf.mxu0 }
 0x55c   :  { %v499_v56 = vpop.f32.mrf.mxu3 }
 0x55d   :  { %v502_v57 = vadd.f32 %v499_v56, %v1702_v43  ;;  %v88_v56 = vadd.f32 %v1688_v26, %v87_v55 }
 0x55f   :  { %1417 = vtanh.f32 %v502_v57  ;;  %v1343_v12 = vmul.f32 -1.442695, %v502_v57 }
 0x560   :  { %1419 = vpow2.f32 %v1342_v58 }
 0x565   :  { %v1418_v59 = vpop.eup %1417 }
 0x566   :  { %562 = vrot.lane.b32.xlu2 %v1418_v59, %s1516_s0  ;;  %v1420_v60 = vpop.eup %1419 }
 0x567   :  { %v506_v61 = vadd.f32 1.0, %v1420_v60 }
 0x569   :  { %1421 = vrcp.f32 %v506_v61  ;;  %v518_v4 = vand.u32 2147483648, %v506_v61  ;;  %vm512_vm3 = vweird.f32 %v506_v61  ;;  %v516_v5 = vand.u32 2147483647, %v506_v61 }
 0x56a   :  { %1423 = vpow2.f32 %v1343_v12 }
 0x56b   :  { %v519_v7 = vor.u32 1.1754944e-38, %v518_v4  ;;  %vm517_vm5 = vcmp.eq.f32.partialorder %v516_v5, 8.507059e+37 }
 0x56f   :  { %v1422_v62 = vpop.eup %1421 }
 0x570   :  { %v508_v63 = vmul.f32 %v1422_v62, %v506_v61  ;;  %vm513_vm2 = vweird.f32 %v1422_v62  ;;  %v1424_v13 = vpop.eup %1423 }
 0x571   :  { %vm514_vm4 = vmor %vm512_vm3, %vm513_vm2  ;;  %v543_v14 = vadd.f32 1.0, %v1424_v13 }
 0x572   :  { %v509_v0 = vsub.f32 1.0, %v508_v63 }
 0x573   :  { %1425 = vrcp.f32 %v543_v14  ;;  %v555_v24 = vand.u32 2147483648, %v543_v14  ;;  %vm549_vm7 = vweird.f32 %v543_v14  ;;  %v553_v25 = vand.u32 2147483647, %v543_v14 }
 0x574   :  { %v510_v45 = vmul.f32 %v1422_v62, %v509_v0 }
 0x575   :  { %v556_v30 = vor.u32 1.1754944e-38, %v555_v24  ;;  %vm554_vm9 = vcmp.eq.f32.partialorder %v553_v25, 8.507059e+37 }
 0x576   :  { %v511_v2 = vadd.f32 %v1422_v62, %v510_v45 }
 0x578   :  { %v515_v43 = vsel %vm514_vm4, %v1422_v62, %v511_v2 }
 0x579   :  { %v520_v9 = vsel %vm517_vm5, %v519_v7, %v515_v43  ;;  %v1426_v17 = vpop.eup %1425 }
 0x57a   :  { %v545_v20 = vmul.f32 %v1426_v17, %v543_v14  ;;  %vm550_vm6 = vweird.f32 %v1426_v17  ;;  %v523_v38 = vmul.f32 %v520_v9, %v1743_v35 }
 0x57b   :  { %vm551_vm8 = vmor %vm549_vm7, %vm550_vm6 }
 0x57c   :  { %v546_v21 = vsub.f32 1.0, %v545_v20 }
 0x57e   :  { %v547_v22 = vmul.f32 %v1426_v17, %v546_v21 }
 0x580   :  { %v548_v23 = vadd.f32 %v1426_v17, %v547_v22 }
 0x582   :  { %v552_v27 = vsel %vm551_vm8, %v1426_v17, %v548_v23 }
 0x583   :  { %v557_v31 = vsel %vm554_vm9, %v556_v30, %v552_v27 }
 0x584   :  { %v560_v29 = vmul.f32 %v557_v31, %v1748_v44 }
 0x58d   :  { %v526_v8 = vpop.permute.xlu1 %525 }
 0x58e   :  { %v528_v11 = vmul.f32 %v526_v8, %v520_v9 }
 0x590   :  { %530 = vrot.lane.b32.xlu0 %v528_v11, %s1516_s0 }
 0x5c0   :  { %v563_v32 = vpop.permute.xlu2 %562 }
 0x5c1   :  { %v565_v36 = vmul.f32 %v563_v32, %v557_v31 }
 0x5c3   :  { %567 = vrot.lane.b32.xlu1 %v565_v36, %s1516_s0 }
 0x602   :  { %v531_v40 = vpop.permute.xlu0 %530 }
 0x603   :  { %v1778_v46 = vadd.f32 %v531_v40, %v523_v38 }
 0x605   :  { %1427 = vtanh.f32 %v1778_v46 }
 0x60b   :  { %v1428_v47 = vpop.eup %1427 }
 0x60c   :  { %536 = vrot.lane.b32.xlu2 %v1428_v47, %s1516_s0 }
 0x635   :  { %v568_v48 = vpop.permute.xlu1 %567 }
 0x636   :  { %v1783_v50 = vadd.f32 %v568_v48, %v560_v29 }
 0x638   :  { %1429 = vtanh.f32 %v1783_v50 }
 0x63e   :  { %v1430_v33 = vpop.eup %1429 }
 0x63f   :  { %573 = vrot.lane.b32.xlu0 %v1430_v33, %s1516_s0 }
 0x666   :  { %v537_v51 = vpop.permute.xlu2 %536 }
 0x667   :  { %v539_v35 = vmul.f32 %v537_v51, %v520_v9 }
 0x669   :  { %578 = vrot.lane.b32.xlu1 %v539_v35, %s1517_s24 }
 0x6b1   :  { %v574_v52 = vpop.permute.xlu0 %573 }
 0x6b2   :  { %v1788_v53 = vmul.f32 %v574_v52, %v557_v31 }
 0x6b4   :  { %616 = vrot.lane.b32.xlu2 %v1788_v53, %s1517_s24 }
 0x6db   :  { %v579_v54 = vpop.permute.xlu1 %578 }
 0x6dc   :  { %1344 = vst.msk [vmem:[%s2038_s4 + $0x10] sm:$0xff] %vm36_vm0, %v579_v54  ;;  %1346 = vmatmul.msk.f32.vlgmr.msrb.gmra.mxu2 %vm36_vm0, %v579_v54 }
 0x6dd   :  { %879 = vmatpush.msrb.mxu2 %v1560_v1 }
 0x6df   :  { %880 = vmatpush.msrb.mxu2 %v1569_v3 }
 0x6e1   :  { %881 = vmatpush.msrb.mxu2 %v1580_v6 }
 0x6e3   :  { %882 = vmatpush.msrb.mxu2 %v1595_v10 }
 0x70e   :  { %v617_v44 = vpop.permute.xlu2 %616 }
 0x70f   :  { %1347 = vmatmul.msk.f32.vlgmr.msrb.gmra.mxu3 %vm36_vm0, %v617_v44 }
 0x710   :  { %906 = vmatpush.msrb.mxu3 %v1618_v15 }
 0x712   :  { %907 = vmatpush.msrb.mxu3 %v1623_v16 }
 0x714   :  { %908 = vmatpush.msrb.mxu3 %v1639_v18 }
 0x716   :  { %909 = vmatpush.msrb.mxu3 %v1644_v19 }
 0x75f   :  { %v610_v57 = vpop.f32.mrf.mxu2 }
 0x760   :  { %v613_v58 = vadd.f32 %v610_v57, %v88_v56 }
 0x762   :  { %1431 = vtanh.f32 %v613_v58  ;;  %v1348_v63 = vmul.f32 -1.442695, %v613_v58 }
 0x768   :  { %v1432_v59 = vpop.eup %1431 }
 0x769   :  { %663 = vrot.lane.b32.xlu0 %v1432_v59, %s1516_s0  ;;  %v90_v59 = vpop.f32.mrf.mxu0 }
 0x792   :  { %v637_v60 = vpop.f32.mrf.mxu3 }
 0x793   :  { %v640_v61 = vadd.f32 %v637_v60, %v1700_v41 }
 0x795   :  { %1433 = vtanh.f32 %v640_v61  ;;  %v1349_v17 = vmul.f32 -1.442695, %v640_v61 }
 0x796   :  { %1435 = vpow2.f32 %v1348_v63 }
 0x79b   :  { %v1434_v62 = vpop.eup %1433 }
 0x79c   :  { %700 = vrot.lane.b32.xlu1 %v1434_v62, %s1516_s0  ;;  %v1436_v0 = vpop.eup %1435 }
 0x79d   :  { %v644_v45 = vadd.f32 1.0, %v1436_v0 }
 0x79f   :  { %1437 = vrcp.f32 %v644_v45  ;;  %v656_v8 = vand.u32 2147483648, %v644_v45  ;;  %vm650_vm11 = vweird.f32 %v644_v45  ;;  %v654_v9 = vand.u32 2147483647, %v644_v45 }
 0x7a0   :  { %1439 = vpow2.f32 %v1349_v17 }
 0x7a1   :  { %v657_v11 = vor.u32 1.1754944e-38, %v656_v8  ;;  %vm655_vm13 = vcmp.eq.f32.partialorder %v654_v9, 8.507059e+37 }
 0x7a5   :  { %v1438_v2 = vpop.eup %1437 }
 0x7a6   :  { %v646_v4 = vmul.f32 %v1438_v2, %v644_v45  ;;  %vm651_vm10 = vweird.f32 %v1438_v2  ;;  %v1440_v20 = vpop.eup %1439 }
 0x7a7   :  { %vm652_vm12 = vmor %vm650_vm11, %vm651_vm10  ;;  %v681_v21 = vadd.f32 1.0, %v1440_v20 }
 0x7a8   :  { %v647_v5 = vsub.f32 1.0, %v646_v4 }
 0x7a9   :  { %1441 = vrcp.f32 %v681_v21  ;;  %v693_v30 = vand.u32 2147483648, %v681_v21  ;;  %vm687_vm15 = vweird.f32 %v681_v21  ;;  %v691_v31 = vand.u32 2147483647, %v681_v21 }
 0x7aa   :  { %v648_v43 = vmul.f32 %v1438_v2, %v647_v5 }
 0x7ab   :  { %v694_v36 = vor.u32 1.1754944e-38, %v693_v30  ;;  %vm692_vm2 = vcmp.eq.f32.partialorder %v691_v31, 8.507059e+37 }
 0x7ac   :  { %v649_v7 = vadd.f32 %v1438_v2, %v648_v43 }
 0x7ae   :  { %v653_v41 = vsel %vm652_vm12, %v1438_v2, %v649_v7 }
 0x7af   :  { %v658_v13 = vsel %vm655_vm13, %v657_v11, %v653_v41  ;;  %v1442_v22 = vpop.eup %1441 }
 0x7b0   :  { %v683_v23 = vmul.f32 %v1442_v22, %v681_v21  ;;  %vm688_vm14 = vweird.f32 %v1442_v22  ;;  %v661_v29 = vmul.f32 %v658_v13, %v1778_v46 }
 0x7b1   :  { %vm689_vm1 = vmor %vm687_vm15, %vm688_vm14 }
 0x7b2   :  { %v684_v24 = vsub.f32 1.0, %v683_v23 }
 0x7b4   :  { %v685_v25 = vmul.f32 %v1442_v22, %v684_v24 }
 0x7b6   :  { %v686_v27 = vadd.f32 %v1442_v22, %v685_v25 }
 0x7b8   :  { %v690_v32 = vsel %vm689_vm1, %v1442_v22, %v686_v27 }
 0x7b9   :  { %v695_v40 = vsel %vm692_vm2, %v694_v36, %v690_v32 }
 0x7ba   :  { %v698_v35 = vmul.f32 %v695_v40, %v1783_v50 }
 0x7db   :  { %v664_v12 = vpop.permute.xlu0 %663 }
 0x7dc   :  { %v666_v14 = vmul.f32 %v664_v12, %v658_v13 }
 0x7de   :  { %668 = vrot.lane.b32.xlu2 %v666_v14, %s1516_s0 }
 0x80e   :  { %v701_v38 = vpop.permute.xlu1 %700 }
 0x80f   :  { %v703_v47 = vmul.f32 %v701_v38, %v695_v40 }
 0x811   :  { %705 = vrot.lane.b32.xlu0 %v703_v47, %s1516_s0 }
 0x838   :  { %v669_v48 = vpop.permute.xlu2 %668 }
 0x839   :  { %v1813_v33 = vadd.f32 %v669_v48, %v661_v29 }
 0x83b   :  { %1443 = vtanh.f32 %v1813_v33 }
 0x841   :  { %v1444_v51 = vpop.eup %1443 }
 0x842   :  { %674 = vrot.lane.b32.xlu1 %v1444_v51, %s1516_s0 }
 0x883   :  { %v706_v52 = vpop.permute.xlu0 %705 }
 0x884   :  { %v1818_v54 = vadd.f32 %v706_v52, %v698_v35 }
 0x886   :  { %1445 = vtanh.f32 %v1818_v54 }
 0x88c   :  { %v1446_v44 = vpop.eup %1445 }
 0x88d   :  { %711 = vrot.lane.b32.xlu2 %v1446_v44, %s1516_s0 }
 0x8b4   :  { %v675_v55 = vpop.permute.xlu1 %674 }
 0x8b5   :  { %v677_v46 = vmul.f32 %v675_v55, %v658_v13 }
 0x8b7   :  { %716 = vrot.lane.b32.xlu0 %v677_v46, %s1517_s24 }
 0x8e7   :  { %v712_v56 = vpop.permute.xlu2 %711 }
 0x8e8   :  { %v1823_v57 = vmul.f32 %v712_v56, %v695_v40 }
 0x8ea   :  { %754 = vrot.lane.b32.xlu1 %v1823_v57, %s1517_s24 }
 0x929   :  { %v717_v58 = vpop.permute.xlu0 %716 }
 0x92a   :  { %1350 = vst.msk [vmem:[%s2038_s4 + $0x18] sm:$0xff] %vm36_vm0, %v717_v58  ;;  %1352 = vmatmul.msk.f32.vlgmr.msra.gmra.mxu2 %vm36_vm0, %v717_v58 }
 0x92b   :  { %1015 = vmatpush.msra.mxu2 %v1560_v1  ;;  %v91_v1 = vadd.f32 %v1688_v26, %v90_v59 }
 0x92d   :  { %1016 = vmatpush.msra.mxu2 %v1569_v3 }
 0x92f   :  { %1017 = vmatpush.msra.mxu2 %v1580_v6 }
 0x931   :  { %1018 = vmatpush.msra.mxu2 %v1595_v10 }
 0x95c   :  { %v755_v50 = vpop.permute.xlu1 %754 }
 0x95d   :  { %1353 = vmatmul.msk.f32.vlgmr.msra.gmra.mxu3 %vm36_vm0, %v755_v50 }
 0x95e   :  { %1042 = vmatpush.msra.mxu3 %v1618_v15 }
 0x960   :  { %1043 = vmatpush.msra.mxu3 %v1623_v16 }
 0x962   :  { %1044 = vmatpush.msra.mxu3 %v1639_v18 }
 0x964   :  { %1045 = vmatpush.msra.mxu3 %v1644_v19 }
 0x9ad   :  { %v748_v60 = vpop.f32.mrf.mxu2 }
 0x9ae   :  { %v751_v3 = vadd.f32 %v748_v60, %v91_v1  ;;  %v1512_v1 = vld [vmem:[%s2035_s2 + $0x10] sm:$0xff]  ;;  %v1513_v60 = vld [vmem:[%s2035_s2 + $0x8] sm:$0xff] }
 0x9b0   :  { %1447 = vtanh.f32 %v751_v3  ;;  %v1354_v63 = vmul.f32 -1.442695, %v751_v3 }
 0x9b6   :  { %v1448_v6 = vpop.eup %1447 }
 0x9b7   :  { %801 = vrot.lane.b32.xlu2 %v1448_v6, %s1516_s0  ;;  %v93_v6 = vpop.f32.mrf.mxu0 }
 0x9e0   :  { %v775_v61 = vpop.f32.mrf.mxu3 }
 0x9e1   :  { %v778_v62 = vadd.f32 %v775_v61, %v1698_v39  ;;  %v94_v61 = vadd.f32 %v1688_v26, %v93_v6 }
 0x9e3   :  { %1449 = vtanh.f32 %v778_v62  ;;  %v1355_v17 = vmul.f32 -1.442695, %v778_v62 }
 0x9e4   :  { %1451 = vpow2.f32 %v1354_v63 }
 0x9e9   :  { %v1450_v0 = vpop.eup %1449 }
 0x9ea   :  { %838 = vrot.lane.b32.xlu0 %v1450_v0, %s1516_s0  ;;  %v1452_v45 = vpop.eup %1451 }
 0x9eb   :  { %v782_v2 = vadd.f32 1.0, %v1452_v45 }
 0x9ed   :  { %1453 = vrcp.f32 %v782_v2  ;;  %v794_v9 = vand.u32 2147483648, %v782_v2  ;;  %vm788_vm4 = vweird.f32 %v782_v2  ;;  %v792_v41 = vand.u32 2147483647, %v782_v2 }
 0x9ee   :  { %1455 = vpow2.f32 %v1355_v17 }
 0x9ef   :  { %v795_v11 = vor.u32 1.1754944e-38, %v794_v9  ;;  %vm793_vm6 = vcmp.eq.f32.partialorder %v792_v41, 8.507059e+37 }
 0x9f3   :  { %v1454_v4 = vpop.eup %1453 }
 0x9f4   :  { %v784_v5 = vmul.f32 %v1454_v4, %v782_v2  ;;  %vm789_vm3 = vweird.f32 %v1454_v4  ;;  %v1456_v20 = vpop.eup %1455 }
 0x9f5   :  { %vm790_vm5 = vmor %vm788_vm4, %vm789_vm3  ;;  %v819_v21 = vadd.f32 1.0, %v1456_v20 }
 0x9f6   :  { %v785_v43 = vsub.f32 1.0, %v784_v5 }
 0x9f7   :  { %1457 = vrcp.f32 %v819_v21  ;;  %v831_v30 = vand.u32 2147483648, %v819_v21  ;;  %vm825_vm8 = vweird.f32 %v819_v21  ;;  %v829_v31 = vand.u32 2147483647, %v819_v21 }
 0x9f8   :  { %v786_v7 = vmul.f32 %v1454_v4, %v785_v43 }
 0x9f9   :  { %v832_v36 = vor.u32 1.1754944e-38, %v831_v30  ;;  %vm830_vm10 = vcmp.eq.f32.partialorder %v829_v31, 8.507059e+37 }
 0x9fa   :  { %v787_v8 = vadd.f32 %v1454_v4, %v786_v7 }
 0x9fc   :  { %v791_v39 = vsel %vm790_vm5, %v1454_v4, %v787_v8 }
 0x9fd   :  { %v796_v12 = vsel %vm793_vm6, %v795_v11, %v791_v39  ;;  %v1458_v22 = vpop.eup %1457 }
 0x9fe   :  { %v821_v23 = vmul.f32 %v1458_v22, %v819_v21  ;;  %vm826_vm7 = vweird.f32 %v1458_v22  ;;  %v799_v29 = vmul.f32 %v796_v12, %v1813_v33 }
 0x9ff   :  { %vm827_vm9 = vmor %vm825_vm8, %vm826_vm7 }
 0xa00   :  { %v822_v24 = vsub.f32 1.0, %v821_v23 }
 0xa02   :  { %v823_v25 = vmul.f32 %v1458_v22, %v822_v24 }
 0xa04   :  { %v824_v27 = vadd.f32 %v1458_v22, %v823_v25 }
 0xa06   :  { %v828_v32 = vsel %vm827_vm9, %v1458_v22, %v824_v27 }
 0xa07   :  { %v833_v40 = vsel %vm830_vm10, %v832_v36, %v828_v32 }
 0xa08   :  { %v836_v52 = vmul.f32 %v833_v40, %v1818_v54  ;;  %v1511_v54 = vld [vmem:[%s2035_s2 + $0x18] sm:$0xff] }
 0xa11   :  { %v802_v13 = vpop.permute.xlu2 %801 }
 0xa12   :  { %v804_v14 = vmul.f32 %v802_v13, %v796_v12 }
 0xa14   :  { %806 = vrot.lane.b32.xlu1 %v804_v14, %s1516_s0 }
 0xa5c   :  { %v839_v38 = vpop.permute.xlu0 %838 }
 0xa5d   :  { %v841_v47 = vmul.f32 %v839_v38, %v833_v40 }
 0xa5f   :  { %843 = vrot.lane.b32.xlu2 %v841_v47, %s1516_s0 }
 0xa86   :  { %v807_v48 = vpop.permute.xlu1 %806 }
 0xa87   :  { %v1848_v51 = vadd.f32 %v807_v48, %v799_v29 }
 0xa89   :  { %1459 = vtanh.f32 %v1848_v51 }
 0xa8f   :  { %v1460_v35 = vpop.eup %1459 }
 0xa90   :  { %812 = vrot.lane.b32.xlu0 %v1460_v35, %s1516_s0 }
 0xab9   :  { %v844_v44 = vpop.permute.xlu2 %843 }
 0xaba   :  { %v1853_v55 = vadd.f32 %v844_v44, %v836_v52 }
 0xabc   :  { %1461 = vtanh.f32 %v1853_v55 }
 0xac2   :  { %v1462_v46 = vpop.eup %1461 }
 0xac3   :  { %849 = vrot.lane.b32.xlu1 %v1462_v46, %s1516_s0 }
 0xb02   :  { %v813_v56 = vpop.permute.xlu0 %812 }
 0xb03   :  { %v815_v33 = vmul.f32 %v813_v56, %v796_v12 }
 0xb05   :  { %854 = vrot.lane.b32.xlu2 %v815_v33, %s1517_s24 }
 0xb35   :  { %v850_v58 = vpop.permute.xlu1 %849 }
 0xb36   :  { %v1858_v50 = vmul.f32 %v850_v58, %v833_v40 }
 0xb38   :  { %890 = vrot.lane.b32.xlu0 %v1858_v50, %s1517_s24 }
 0xb5f   :  { %v1862_v59 = vpop.permute.xlu2 %854 }
 0xb60   :  { %1358 = vmatmul.msk.f32.vlgmr.msrb.gmra.mxu2 %vm36_vm0, %v1862_v59 }
 0xb61   :  { %1151 = vmatpush.msrb.mxu2 %v1511_v54  ;;  %v96_v54 = vpop.f32.mrf.mxu0 }
 0xb63   :  { %1152 = vmatpush.msrb.mxu2 %v1512_v1  ;;  %v1910_v1 = vld [vmem:[%s2037_s3] ss:$0 sm:$0xff]  ;;  %s1518_s3 = smov 96  }
 0xb65   :  { %1153 = vmatpush.msrb.mxu2 %v1513_v60  ;;  %v97_v60 = vadd.f32 %v1910_v1, %v96_v54 }
 0xb67   :  { %1154 = vmatpush.msrb.mxu2 %v1595_v10 }
 0xbaa   :  { %v891_v3 = vpop.permute.xlu0 %890 }
 0xbab   :  { %1359 = vmatmul.msk.f32.vlgmr.msrb.gmra.mxu3 %vm36_vm0, %v891_v3 }
 0xbac   :  { %1177 = vmatpush.msrb.mxu3 %v1618_v15 }
 0xbae   :  { %1178 = vmatpush.msrb.mxu3 %v1623_v16 }
 0xbb0   :  { %1179 = vmatpush.msrb.mxu3 %v1639_v18 }
 0xbb2   :  { %1180 = vmatpush.msrb.mxu3 %v1644_v19 }
 0xbe3   :  { %v884_v62 = vpop.f32.mrf.mxu2 }
 0xbe4   :  { %v887_v63 = vadd.f32 %v884_v62, %v94_v61 }
 0xbe6   :  { %1463 = vtanh.f32 %v887_v63  ;;  %v1360_v2 = vmul.f32 -1.442695, %v887_v63 }
 0xbec   :  { %v1464_v0 = vpop.eup %1463 }
 0xbed   :  { %937 = vrot.lane.b32.xlu1 %v1464_v0, %s1516_s0 }
 0xc2e   :  { %v911_v10 = vpop.f32.mrf.mxu3 }
 0xc2f   :  { %v914_v45 = vadd.f32 %v911_v10, %v1696_v37 }
 0xc31   :  { %1465 = vtanh.f32 %v914_v45  ;;  %v1361_v12 = vmul.f32 -1.442695, %v914_v45 }
 0xc32   :  { %1467 = vpow2.f32 %v1360_v2 }
 0xc37   :  { %v1466_v15 = vpop.eup %1465 }
 0xc38   :  { %974 = vrot.lane.b32.xlu2 %v1466_v15, %s1516_s0  ;;  %v1468_v16 = vpop.eup %1467 }
 0xc39   :  { %v918_v18 = vadd.f32 1.0, %v1468_v16 }
 0xc3b   :  { %1469 = vrcp.f32 %v918_v18  ;;  %v930_v7 = vand.u32 2147483648, %v918_v18  ;;  %vm924_vm12 = vweird.f32 %v918_v18  ;;  %v928_v8 = vand.u32 2147483647, %v918_v18 }
 0xc3c   :  { %1471 = vpow2.f32 %v1361_v12 }
 0xc3d   :  { %v931_v9 = vor.u32 1.1754944e-38, %v930_v7  ;;  %vm929_vm14 = vcmp.eq.f32.partialorder %v928_v8, 8.507059e+37 }
 0xc41   :  { %v1470_v19 = vpop.eup %1469 }
 0xc42   :  { %v920_v26 = vmul.f32 %v1470_v19, %v918_v18  ;;  %vm925_vm11 = vweird.f32 %v1470_v19  ;;  %v1472_v13 = vpop.eup %1471 }
 0xc43   :  { %vm926_vm13 = vmor %vm924_vm12, %vm925_vm11  ;;  %v955_v14 = vadd.f32 1.0, %v1472_v13 }
 0xc44   :  { %v921_v4 = vsub.f32 1.0, %v920_v26 }
 0xc45   :  { %1473 = vrcp.f32 %v955_v14  ;;  %v967_v24 = vand.u32 2147483648, %v955_v14  ;;  %vm961_vm1 = vweird.f32 %v955_v14  ;;  %v965_v25 = vand.u32 2147483647, %v955_v14 }
 0xc46   :  { %v922_v5 = vmul.f32 %v1470_v19, %v921_v4 }
 0xc47   :  { %v968_v30 = vor.u32 1.1754944e-38, %v967_v24  ;;  %vm966_vm3 = vcmp.eq.f32.partialorder %v965_v25, 8.507059e+37 }
 0xc48   :  { %v923_v43 = vadd.f32 %v1470_v19, %v922_v5 }
 0xc4a   :  { %v927_v37 = vsel %vm926_vm13, %v1470_v19, %v923_v43 }
 0xc4b   :  { %v932_v39 = vsel %vm929_vm14, %v931_v9, %v927_v37  ;;  %v1474_v17 = vpop.eup %1473 }
 0xc4c   :  { %v957_v20 = vmul.f32 %v1474_v17, %v955_v14  ;;  %vm962_vm15 = vweird.f32 %v1474_v17  ;;  %v935_v38 = vmul.f32 %v932_v39, %v1848_v51 }
 0xc4d   :  { %vm963_vm2 = vmor %vm961_vm1, %vm962_vm15 }
 0xc4e   :  { %v958_v21 = vsub.f32 1.0, %v957_v20 }
 0xc50   :  { %v959_v22 = vmul.f32 %v1474_v17, %v958_v21 }
 0xc52   :  { %v960_v23 = vadd.f32 %v1474_v17, %v959_v22 }
 0xc54   :  { %v964_v27 = vsel %vm963_vm2, %v1474_v17, %v960_v23 }
 0xc55   :  { %v969_v31 = vsel %vm966_vm3, %v968_v30, %v964_v27 }
 0xc56   :  { %v972_v48 = vmul.f32 %v969_v31, %v1853_v55 }
 0xc5f   :  { %v938_v41 = vpop.permute.xlu1 %937 }
 0xc60   :  { %v940_v11 = vmul.f32 %v938_v41, %v932_v39 }
 0xc62   :  { %942 = vrot.lane.b32.xlu0 %v940_v11, %s1516_s0 }
 0xc92   :  { %v975_v32 = vpop.permute.xlu2 %974 }
 0xc93   :  { %v977_v36 = vmul.f32 %v975_v32, %v969_v31 }
 0xc95   :  { %979 = vrot.lane.b32.xlu1 %v977_v36, %s1516_s0 }
 0xcd4   :  { %v943_v40 = vpop.permute.xlu0 %942 }
 0xcd5   :  { %v1888_v47 = vadd.f32 %v943_v40, %v935_v38 }
 0xcd7   :  { %1475 = vtanh.f32 %v1888_v47 }
 0xcdd   :  { %v1476_v29 = vpop.eup %1475 }
 0xcde   :  { %948 = vrot.lane.b32.xlu2 %v1476_v29, %s1516_s0 }
 0xd07   :  { %v980_v35 = vpop.permute.xlu1 %979 }
 0xd08   :  { %v1893_v52 = vadd.f32 %v980_v35, %v972_v48 }
 0xd0a   :  { %1477 = vtanh.f32 %v1893_v52 }
 0xd10   :  { %v1478_v44 = vpop.eup %1477 }
 0xd11   :  { %985 = vrot.lane.b32.xlu0 %v1478_v44, %s1516_s0 }
 0xd38   :  { %v949_v46 = vpop.permute.xlu2 %948 }
 0xd39   :  { %v951_v51 = vmul.f32 %v949_v46, %v932_v39 }
 0xd3b   :  { %990 = vrot.lane.b32.xlu1 %v951_v51, %s1517_s24 }
 0xd83   :  { %v986_v56 = vpop.permute.xlu0 %985 }
 0xd84   :  { %v1898_v33 = vmul.f32 %v986_v56, %v969_v31  ;;  %v99_v56 = vpop.f32.mrf.mxu0 }
 0xd86   :  { %1026 = vrot.lane.b32.xlu2 %v1898_v33, %s1517_s24 }
 0xdad   :  { %v1902_v58 = vpop.permute.xlu1 %990 }
 0xdae   :  { %1364 = vmatmul.msk.f32.vlgmr.msra.gmra.mxu2 %vm36_vm0, %v1902_v58 }
 0xde0   :  { %v1027_v55 = vpop.permute.xlu2 %1026 }
 0xde1   :  { %1365 = vmatmul.msk.f32.vlgmr.msra.gmra.mxu3 %vm36_vm0, %v1027_v55  ;;  %v100_v55 = vadd.f32 %v1910_v1, %v99_v56 }
 0xe31   :  { %v1020_v3 = vpop.f32.mrf.mxu2 }
 0xe32   :  { %v1023_v6 = vadd.f32 %v1020_v3, %v97_v60 }
 0xe34   :  { %1479 = vtanh.f32 %v1023_v6  ;;  %v1366_v10 = vmul.f32 -1.442695, %v1023_v6 }
 0xe3a   :  { %v1480_v61 = vpop.eup %1479 }
 0xe3b   :  { %1073 = vrot.lane.b32.xlu0 %v1480_v61, %s1516_s0 }
 0xe64   :  { %v1047_v62 = vpop.f32.mrf.mxu3 }
 0xe65   :  { %v1050_v63 = vadd.f32 %v1047_v62, %v1693_v34 }
 0xe67   :  { %1481 = vtanh.f32 %v1050_v63  ;;  %v1367_v9 = vmul.f32 -1.442695, %v1050_v63 }
 0xe68   :  { %1483 = vpow2.f32 %v1366_v10 }
 0xe6d   :  { %v1482_v0 = vpop.eup %1481 }
 0xe6e   :  { %1110 = vrot.lane.b32.xlu1 %v1482_v0, %s1516_s0  ;;  %v1484_v45 = vpop.eup %1483 }
 0xe6f   :  { %v1054_v2 = vadd.f32 1.0, %v1484_v45 }
 0xe71   :  { %1485 = vrcp.f32 %v1054_v2  ;;  %v1066_v4 = vand.u32 2147483648, %v1054_v2  ;;  %vm1060_vm5 = vweird.f32 %v1054_v2  ;;  %v1064_v5 = vand.u32 2147483647, %v1054_v2 }
 0xe72   :  { %1487 = vpow2.f32 %v1367_v9 }
 0xe73   :  { %v1067_v43 = vor.u32 1.1754944e-38, %v1066_v4  ;;  %vm1065_vm7 = vcmp.eq.f32.partialorder %v1064_v5, 8.507059e+37 }
 0xe77   :  { %v1486_v15 = vpop.eup %1485 }
 0xe78   :  { %v1056_v16 = vmul.f32 %v1486_v15, %v1054_v2  ;;  %vm1061_vm4 = vweird.f32 %v1486_v15  ;;  %v1488_v41 = vpop.eup %1487 }
 0xe79   :  { %vm1062_vm6 = vmor %vm1060_vm5, %vm1061_vm4  ;;  %v1091_v39 = vadd.f32 1.0, %v1488_v41  ;;  %vm311_vm5 = vcmask 523520  }
 0xe7a   :  { %v1057_v18 = vsub.f32 1.0, %v1056_v16 }
 0xe7b   :  { %1489 = vrcp.f32 %v1091_v39  ;;  %v1103_v20 = vand.u32 2147483648, %v1091_v39  ;;  %vm1097_vm9 = vweird.f32 %v1091_v39  ;;  %v1101_v21 = vand.u32 2147483647, %v1091_v39 }
 0xe7c   :  { %v1058_v19 = vmul.f32 %v1486_v15, %v1057_v18 }
 0xe7d   :  { %v1104_v23 = vor.u32 1.1754944e-38, %v1103_v20  ;;  %vm1102_vm11 = vcmp.eq.f32.partialorder %v1101_v21, 8.507059e+37 }
 0xe7e   :  { %v1059_v26 = vadd.f32 %v1486_v15, %v1058_v19 }
 0xe80   :  { %v1063_v34 = vsel %vm1062_vm6, %v1486_v15, %v1059_v26 }
 0xe81   :  { %v1068_v8 = vsel %vm1065_vm7, %v1067_v43, %v1063_v34  ;;  %v1490_v11 = vpop.eup %1489 }
 0xe82   :  { %v1093_v12 = vmul.f32 %v1490_v11, %v1091_v39  ;;  %vm1098_vm8 = vweird.f32 %v1490_v11  ;;  %v1071_v30 = vmul.f32 %v1068_v8, %v1888_v47 }
 0xe83   :  { %vm1099_vm10 = vmor %vm1097_vm9, %vm1098_vm8 }
 0xe84   :  { %v1094_v13 = vsub.f32 1.0, %v1093_v12 }
 0xe86   :  { %v1095_v14 = vmul.f32 %v1490_v11, %v1094_v13 }
 0xe88   :  { %v1096_v17 = vadd.f32 %v1490_v11, %v1095_v14 }
 0xe8a   :  { %v1100_v22 = vsel %vm1099_vm10, %v1490_v11, %v1096_v17 }
 0xe8b   :  { %v1105_v25 = vsel %vm1102_vm11, %v1104_v23, %v1100_v22 }
 0xe8c   :  { %v1108_v38 = vmul.f32 %v1105_v25, %v1893_v52 }
 0xead   :  { %v1074_v7 = vpop.permute.xlu0 %1073 }
 0xeae   :  { %v1076_v37 = vmul.f32 %v1074_v7, %v1068_v8 }
 0xeb0   :  { %1078 = vrot.lane.b32.xlu2 %v1076_v37, %s1516_s0 }
 0xee0   :  { %v1111_v24 = vpop.permute.xlu1 %1110 }
 0xee1   :  { %v1113_v27 = vmul.f32 %v1111_v24, %v1105_v25 }
 0xee3   :  { %1115 = vrot.lane.b32.xlu0 %v1113_v27, %s1516_s0 }
 0xf0a   :  { %v1079_v31 = vpop.permute.xlu2 %1078 }
 0xf0b   :  { %v1919_v32 = vadd.f32 %v1079_v31, %v1071_v30 }
 0xf0d   :  { %1491 = vtanh.f32 %v1919_v32 }
 0xf13   :  { %v1492_v36 = vpop.eup %1491 }
 0xf14   :  { %1084 = vrot.lane.b32.xlu1 %v1492_v36, %s1516_s0 }
 0xf55   :  { %v1116_v40 = vpop.permute.xlu0 %1115 }
 0xf56   :  { %v1924_v29 = vadd.f32 %v1116_v40, %v1108_v38 }
 0xf58   :  { %1493 = vtanh.f32 %v1924_v29 }
 0xf5e   :  { %v1494_v48 = vpop.eup %1493 }
 0xf5f   :  { %1121 = vrot.lane.b32.xlu2 %v1494_v48, %s1516_s0 }
 0xf86   :  { %v1085_v35 = vpop.permute.xlu1 %1084 }
 0xf87   :  { %v1087_v47 = vmul.f32 %v1085_v35, %v1068_v8 }
 0xf89   :  { %1126 = vrot.lane.b32.xlu0 %v1087_v47, %s1517_s24 }
 0xfb9   :  { %v1122_v44 = vpop.permute.xlu2 %1121 }
 0xfba   :  { %v1929_v46 = vmul.f32 %v1122_v44, %v1105_v25 }
 0xfbc   :  { %1161 = vrot.lane.b32.xlu1 %v1929_v46, %s1517_s24 }
 0xffb   :  { %v1933_v51 = vpop.permute.xlu0 %1126 }
 0xffc   :  { %1370 = vmatmul.msk.f32.vlgmr.msrb.gmra.mxu2 %vm36_vm0, %v1933_v51 }
0x102e   :  { %v1162_v52 = vpop.permute.xlu1 %1161 }
0x102f   :  { %1371 = vmatmul.msk.f32.vlgmr.msrb.gmra.mxu3 %vm36_vm0, %v1162_v52 }
0x107f   :  { %v1156_v54 = vpop.f32.mrf.mxu2 }
0x1080   :  { %v1159_v60 = vadd.f32 %v1156_v54, %v100_v55 }
0x1082   :  { %1495 = vtanh.f32 %v1159_v60  ;;  %v1372_v62 = vmul.f32 -1.442695, %v1159_v60 }
0x1088   :  { %v1496_v3 = vpop.eup %1495 }
0x1089   :  { %1208 = vrot.lane.b32.xlu2 %v1496_v3, %s1516_s0 }
0x10b2   :  { %v1182_v6 = vpop.f32.mrf.mxu3 }
0x10b3   :  { %v1185_v61 = vadd.f32 %v1182_v6, %v1690_v28 }
0x10b5   :  { %1497 = vtanh.f32 %v1185_v61  ;;  %v1373_v43 = vmul.f32 -1.442695, %v1185_v61 }
0x10b6   :  { %1499 = vpow2.f32 %v1372_v62 }
0x10bb   :  { %v1498_v63 = vpop.eup %1497 }
0x10bc   :  { %1245 = vrot.lane.b32.xlu0 %v1498_v63, %s1516_s0  ;;  %v1500_v0 = vpop.eup %1499 }
0x10bd   :  { %v1189_v10 = vadd.f32 1.0, %v1500_v0 }
0x10bf   :  { %1501 = vrcp.f32 %v1189_v10  ;;  %v1201_v18 = vand.u32 2147483648, %v1189_v10  ;;  %vm1195_vm13 = vweird.f32 %v1189_v10  ;;  %v1199_v19 = vand.u32 2147483647, %v1189_v10 }
0x10c0   :  { %1503 = vpow2.f32 %v1373_v43 }
0x10c1   :  { %v1202_v26 = vor.u32 1.1754944e-38, %v1201_v18  ;;  %vm1200_vm15 = vcmp.eq.f32.partialorder %v1199_v19, 8.507059e+37 }
0x10c5   :  { %v1502_v45 = vpop.eup %1501 }
0x10c6   :  { %v1191_v1 = vmul.f32 %v1502_v45, %v1189_v10  ;;  %vm1196_vm12 = vweird.f32 %v1502_v45  ;;  %v1504_v7 = vpop.eup %1503 }
0x10c7   :  { %vm1197_vm14 = vmor %vm1195_vm13, %vm1196_vm12  ;;  %v1226_v8 = vadd.f32 1.0, %v1504_v7 }
0x10c8   :  { %v1192_v2 = vsub.f32 1.0, %v1191_v1 }
0x10c9   :  { %1505 = vrcp.f32 %v1226_v8  ;;  %v1238_v12 = vand.u32 2147483648, %v1226_v8  ;;  %vm1232_vm2 = vweird.f32 %v1226_v8  ;;  %v1236_v13 = vand.u32 2147483647, %v1226_v8 }
0x10ca   :  { %v1193_v15 = vmul.f32 %v1502_v45, %v1192_v2 }
0x10cb   :  { %v1239_v17 = vor.u32 1.1754944e-38, %v1238_v12  ;;  %vm1237_vm4 = vcmp.eq.f32.partialorder %v1236_v13, 8.507059e+37 }
0x10cc   :  { %v1194_v16 = vadd.f32 %v1502_v45, %v1193_v15 }
0x10ce   :  { %v1198_v28 = vsel %vm1197_vm14, %v1502_v45, %v1194_v16 }
0x10cf   :  { %v1203_v4 = vsel %vm1200_vm15, %v1202_v26, %v1198_v28  ;;  %v1506_v37 = vpop.eup %1505 }
0x10d0   :  { %v1228_v9 = vmul.f32 %v1506_v37, %v1226_v8  ;;  %vm1233_vm1 = vweird.f32 %v1506_v37  ;;  %v1206_v23 = vmul.f32 %v1203_v4, %v1919_v32 }
0x10d1   :  { %vm1234_vm3 = vmor %vm1232_vm2, %vm1233_vm1 }
0x10d2   :  { %v1229_v41 = vsub.f32 1.0, %v1228_v9 }
0x10d4   :  { %v1230_v39 = vmul.f32 %v1506_v37, %v1229_v41 }
0x10d6   :  { %v1231_v11 = vadd.f32 %v1506_v37, %v1230_v39 }
0x10d8   :  { %v1235_v14 = vsel %vm1234_vm3, %v1506_v37, %v1231_v11 }
0x10d9   :  { %v1240_v21 = vsel %vm1237_vm4, %v1239_v17, %v1235_v14 }
0x10e3   :  { %v1209_v5 = vpop.permute.xlu2 %1208 }
0x10e4   :  { %v1211_v34 = vmul.f32 %v1209_v5, %v1203_v4 }
0x10e6   :  { %1213 = vrot.lane.b32.xlu1 %v1211_v34, %s1516_s0 }
0x112e   :  { %v1246_v20 = vpop.permute.xlu0 %1245 }
0x112f   :  { %v1248_v22 = vmul.f32 %v1246_v20, %v1240_v21 }
0x1131   :  { %1250 = vrot.lane.b32.xlu2 %v1248_v22, %s1516_s0 }
0x1139   :  { %307 = vrot.lane.b32.xlu2 %v1718_v42, %s1518_s3  ;;  %v1243_v42 = vmul.f32 %v1240_v21, %v1924_v29 }
0x1141   :  { %722 = vrot.lane.b32.xlu2 %v1823_v57, %s1518_s3 }
0x1149   :  { %1131 = vrot.lane.b32.xlu2 %v1929_v46, %s1518_s3 }
0x1158   :  { %v1214_v24 = vpop.permute.xlu1 %1213 }
0x1159   :  { %v1216_v25 = vadd.f32 %v1214_v24, %v1206_v23 }
0x115b   :  { %1507 = vtanh.f32 %v1216_v25  ;;  %1272 = vrot.lane.b32.xlu2 %v1216_v25, %s1518_s3 }
0x1161   :  { %v1508_v27 = vpop.eup %1507 }
0x1162   :  { %1219 = vrot.lane.b32.xlu0 %v1508_v27, %s1516_s0 }
0x116a   :  { %446 = vrot.lane.b32.xlu0 %v1753_v49, %s1518_s3 }
0x1172   :  { %859 = vrot.lane.b32.xlu0 %v1858_v50, %s1518_s3 }
0x118b   :  { %v1251_v57 = vpop.permute.xlu2 %1250 }
0x118c   :  { %v1253_v30 = vadd.f32 %v1251_v57, %v1243_v42 }
0x118e   :  { %1509 = vtanh.f32 %v1253_v30 }
0x1193   :  { %v308_v31 = vpop.permute.xlu2 %307 }
0x1194   :  { %v1510_v32 = vpop.eup %1509  ;;  %1333 = vst.msk [vmem:[%s2038_s4 + $0x38] sm:$0xff] %vm311_vm5, %v308_v31 }
0x1195   :  { %1256 = vrot.lane.b32.xlu1 %v1510_v32, %s1516_s0 }
0x119b   :  { %v723_v36 = vpop.permute.xlu2 %722 }
0x119c   :  { %1351 = vst.msk [vmem:[%s2038_s4 + $0x20] sm:$0xff] %vm311_vm5, %v723_v36 }
0x119d   :  { %1356 = vst.msk [vmem:[%s2038_s4 + $0x20] sm:$0xff] %vm36_vm0, %v1862_v59  ;;  %584 = vrot.lane.b32.xlu1 %v1788_v53, %s1518_s3 }
0x11a3   :  { %v1132_v49 = vpop.permute.xlu2 %1131 }
0x11a4   :  { %1369 = vst.msk [vmem:[%s2038_s4 + $0x8] sm:$0xff] %vm311_vm5, %v1132_v49 }
0x11a5   :  { %995 = vrot.lane.b32.xlu1 %v1898_v33, %s1518_s3 }
0x11b5   :  { %v1273_v50 = vpop.permute.xlu2 %1272 }
0x11b6   :  { %1275 = vst.msk [vmem:[%s2039_s6] sm:$0xff] %vm36_vm0, %v1273_v50 }
0x11d4   :  { %v1220_v38 = vpop.permute.xlu0 %1219 }
0x11d5   :  { %v1222_v59 = vmul.f32 %v1220_v38, %v1203_v4 }
0x11d7   :  { %1261 = vrot.lane.b32.xlu0 %v1222_v59, %s1517_s24 }
0x11dc   :  { %v447_v53 = vpop.permute.xlu0 %446 }
0x11dd   :  { %1339 = vst.msk [vmem:[%s2038_s4 + $0x30] sm:$0xff] %vm311_vm5, %v447_v53 }
0x11de   :  { %1368 = vst.msk [vmem:[%s2038_s4 + $0x30] sm:$0xff] %vm36_vm0, %v1933_v51 }
0x11e4   :  { %v860_v33 = vpop.permute.xlu0 %859 }
0x11e5   :  { %1357 = vst.msk [vmem:[%s2038_s4 + $0x18] sm:$0xff] %vm311_vm5, %v860_v33 }
0x1207   :  { %v1257_v40 = vpop.permute.xlu1 %1256 }
0x1208   :  { %v1259_v29 = vmul.f32 %v1257_v40, %v1240_v21 }
0x120a   :  { %1276 = vrot.lane.b32.xlu0 %v1259_v29, %s1517_s24  ;;  %1266 = vrot.lane.b32.xlu1 %v1259_v29, %s1518_s3 }
0x120f   :  { %v585_v48 = vpop.permute.xlu1 %584 }
0x1210   :  { %1345 = vst.msk [vmem:[%s2038_s4 + $0x28] sm:$0xff] %vm311_vm5, %v585_v48 }
0x1211   :  { %1362 = vst.msk [vmem:[%s2038_s4 + $0x28] sm:$0xff] %vm36_vm0, %v1902_v58 }
0x1212   :  { %1282 = vrot.lane.b32.xlu1 %v1253_v30, %s1518_s3 }
0x1217   :  { %v996_v35 = vpop.permute.xlu1 %995 }
0x1218   :  { %1363 = vst.msk [vmem:[%s2038_s4 + $0x10] sm:$0xff] %vm311_vm5, %v996_v35 }
0x1249   :  { %v1262_v47 = vpop.permute.xlu0 %1261 }
0x124a   :  { %1374 = vst.msk [vmem:[%s2038_s4 + $0x38] sm:$0xff] %vm36_vm0, %v1262_v47 }
0x124b   :  { %1270 = vst.msk [vmem:[%s2040_s5] sm:$0xff] %vm36_vm0, %v1262_v47 }
0x127c   :  { %v1277_v58 = vpop.permute.xlu0 %1276  ;;  %v1267_v44 = vpop.permute.xlu1 %1266 }
0x127d   :  { %1375 = vst.msk [vmem:[%s2040_s5 + $0x8] sm:$0xff] %vm36_vm0, %v1277_v58 }
0x127e   :  { %1269 = vst.msk [vmem:[%s2038_s4] sm:$0xff] %vm311_vm5, %v1267_v44 }
0x1284   :  { %v1283_v46 = vpop.permute.xlu1 %1282 }
0x1285   :  { %1376 = vst.msk [vmem:[%s2039_s6 + $0x8] sm:$0xff] %vm36_vm0, %v1283_v46 }

</bundles_post_ra>
